<compile_context>
chip_gen: v6e
topology: v6e:2x2x1
jax: 0.10.0
libtpu: 0.0.40
codegen_flags: <defaults>
</compile_context>

<pallas_src>
import numpy as np
import jax
import jax.numpy as jnp
from jax.experimental import pallas as pl
from jax.experimental.pallas import tpu as pltpu

EMB = 64
CONS_NFEATS = 5
EDGE_NFEATS = 1
VAR_NFEATS = 19

ROW_TILE = 1024      # node-row tile for row-parallel kernels (embed / conv epilogue / critic)
NODE_PAD = ROW_TILE  # node arrays padded to this multiple
R_TILE = 256         # target-row block of the scatter output (divides NODE_PAD)
EDGE_TILE = 1024     # edges per scatter grid step (multiple of 128)
PAD_VALUE = -100000000.0

_FULL = lambda i: (0, 0)                   # resident block (1-D grid)
_FULL3 = lambda k, blk, first: (0, 0)      # resident block (scatter grid w/ 2 prefetch refs)


def _round_up(n, m):
    return ((n + m - 1) // m) * m


# ---------------------------------------------------------------------------
# Kernels
# ---------------------------------------------------------------------------
def _embed_proj1_kernel(x_ref, shift_ref, scale_ref, w1_ref, b1_ref, w2_ref, b2_ref,
                        wa_ref, o_ref, pa_ref):
    """PreNorm + Linear + ReLU + Linear + ReLU, plus one fused node projection (bf16)."""
    bf16 = jnp.bfloat16
    x = (x_ref[...] + shift_ref[...]) * scale_ref[...]
    h = jnp.maximum(
        jnp.dot(x.astype(bf16), w1_ref[...].astype(bf16),
                preferred_element_type=jnp.float32) + b1_ref[...], 0.0)
    emb = jnp.maximum(
        jnp.dot(h.astype(bf16), w2_ref[...].astype(bf16),
                preferred_element_type=jnp.float32) + b2_ref[...], 0.0)
    o_ref[...] = emb
    e16 = emb.astype(bf16)
    pa_ref[...] = jnp.dot(e16, wa_ref[...].astype(bf16),
                          preferred_element_type=jnp.float32).astype(bf16)


def _embed_proj2_kernel(x_ref, shift_ref, scale_ref, w1_ref, b1_ref, w2_ref, b2_ref,
                        wa_ref, wb_ref, o_ref, pa_ref, pb_ref):
    """Same as above but with two fused node projections (j-side of conv1, i-side of conv2)."""
    bf16 = jnp.bfloat16
    x = (x_ref[...] + shift_ref[...]) * scale_ref[...]
    h = jnp.maximum(
        jnp.dot(x.astype(bf16), w1_ref[...].astype(bf16),
                preferred_element_type=jnp.float32) + b1_ref[...], 0.0)
    emb = jnp.maximum(
        jnp.dot(h.astype(bf16), w2_ref[...].astype(bf16),
                preferred_element_type=jnp.float32) + b2_ref[...], 0.0)
    o_ref[...] = emb
    e16 = emb.astype(bf16)
    pa_ref[...] = jnp.dot(e16, wa_ref[...].astype(bf16),
                          preferred_element_type=jnp.float32).astype(bf16)
    pb_ref[...] = jnp.dot(e16, wb_ref[...].astype(bf16),
                          preferred_element_type=jnp.float32).astype(bf16)


def _conv_scatter_kernel(blk_ref, first_ref, xi_ref, xje_ref, tgt_ref,
                         wf_ref, bf_ref, out_ref):
    """Per-edge message tail (add + ReLU + wf matmul) and row-block-tiled scatter-add.

    Edges are pre-sorted/packed by target row block host-side; the output block index
    for step k is blk_ref[k] (scalar prefetch), so the one-hot is only (R_TILE, EDGE_TILE)
    and the accumulator is the output block itself (zeroed on the first tile of each block).
    Dummy/padded edges carry tgt_local == -1 and never match the iota rows.
    """
    k = pl.program_id(0)
    bf16 = jnp.bfloat16

    pre = xi_ref[...].astype(jnp.float32) + xje_ref[...].astype(jnp.float32)
    h = jnp.maximum(pre, 0.0)
    msg = jnp.dot(h.astype(bf16), wf_ref[...].astype(bf16),
                  preferred_element_type=jnp.float32) + bf_ref[...]

    rows = jax.lax.broadcasted_iota(jnp.int32, (out_ref.shape[0], tgt_ref.shape[1]), 0)
    onehot = (rows == tgt_ref[...]).astype(bf16)                       # exact 0/1 in bf16
    contrib = jnp.dot(onehot, msg.astype(bf16), preferred_element_type=jnp.float32)

    is_first = first_ref[k] == 1

    @pl.when(is_first)
    def _():
        out_ref[...] = contrib

    @pl.when(jnp.logical_not(is_first))
    def _():
        out_ref[...] = out_ref[...] + contrib


def _conv_out_proj_kernel(agg_ref, right_ref, w1a_ref, w1b_ref, b1_ref,
                          w2_ref, b2_ref, wproj_ref, proj_ref):
    """output_module(cat([post_conv(agg), right])) fused with the next conv's wr-projection."""
    bf16 = jnp.bfloat16
    h = jnp.maximum(
        jnp.dot(agg_ref[...].astype(bf16), w1a_ref[...].astype(bf16),
                preferred_element_type=jnp.float32)
        + jnp.dot(right_ref[...].astype(bf16), w1b_ref[...].astype(bf16),
                  preferred_element_type=jnp.float32)
        + b1_ref[...], 0.0)
    new_emb = jnp.dot(h.astype(bf16), w2_ref[...].astype(bf16),
                      preferred_element_type=jnp.float32) + b2_ref[...]
    proj_ref[...] = jnp.dot(new_emb.astype(bf16), wproj_ref[...].astype(bf16),
                            preferred_element_type=jnp.float32).astype(bf16)


def _conv_out_critic_kernel(agg_ref, right_ref, w1a_ref, w1b_ref, b1_ref,
                            w2_ref, b2_ref, cw1_ref, cb1_ref, cw2t_ref, o_ref):
    """output_module of the c->v conv fused with the Critic head (Linear+ReLU+Linear(.,1))."""
    bf16 = jnp.bfloat16
    h = jnp.maximum(
        jnp.dot(agg_ref[...].astype(bf16), w1a_ref[...].astype(bf16),
                preferred_element_type=jnp.float32)
        + jnp.dot(right_ref[...].astype(bf16), w1b_ref[...].astype(bf16),
                  preferred_element_type=jnp.float32)
        + b1_ref[...], 0.0)
    new_emb = jnp.dot(h.astype(bf16), w2_ref[...].astype(bf16),
                      preferred_element_type=jnp.float32) + b2_ref[...]
    hc = jnp.maximum(
        jnp.dot(new_emb.astype(bf16), cw1_ref[...].astype(bf16),
                preferred_element_type=jnp.float32) + cb1_ref[...], 0.0)
    # final (emb -> 1) as a lane reduction (avoids a degenerate N=1 MXU matmul)
    o_ref[...] = jnp.sum(hc * cw2t_ref[...], axis=-1, keepdims=True)


# ---------------------------------------------------------------------------
# Pallas wrappers
# ---------------------------------------------------------------------------
def _embed_proj(x_pad, p, n_feats, proj_ws):
    n_pad = x_pad.shape[0]
    n_proj = len(proj_ws)
    kernel = _embed_proj1_kernel if n_proj == 1 else _embed_proj2_kernel
    out_shape = tuple(
        [jax.ShapeDtypeStruct((n_pad, EMB), jnp.float32)]
        + [jax.ShapeDtypeStruct((n_pad, EMB), jnp.bfloat16)] * n_proj)
    out_specs = tuple([pl.BlockSpec((ROW_TILE, EMB), lambda i: (i, 0))] * (1 + n_proj))
    in_specs = ([
        pl.BlockSpec((ROW_TILE, n_feats), lambda i: (i, 0)),
        pl.BlockSpec((1, n_feats), _FULL),
        pl.BlockSpec((1, n_feats), _FULL),
        pl.BlockSpec((n_feats, EMB), _FULL),
        pl.BlockSpec((1, EMB), _FULL),
        pl.BlockSpec((EMB, EMB), _FULL),
        pl.BlockSpec((1, EMB), _FULL),
    ] + [pl.BlockSpec((EMB, EMB), _FULL)] * n_proj)
    return pl.pallas_call(
        kernel,
        out_shape=out_shape,
        grid=(n_pad // ROW_TILE,),
        in_specs=in_specs,
        out_specs=out_specs,
        compiler_params=pltpu.CompilerParams(dimension_semantics=("parallel",)),
    )(x_pad, p["shift"], p["scale"], p["w1"], p["b1"], p["w2"], p["b2"], *proj_ws)


def _conv_scatter(xi, xje, tgt_local, blk_of_tile, first_flag, wf, bf, n_right_pad):
    n_tiles = int(blk_of_tile.shape[0])
    return pl.pallas_call(
        _conv_scatter_kernel,
        out_shape=jax.ShapeDtypeStruct((n_right_pad, EMB), jnp.float32),
        grid_spec=pltpu.PrefetchScalarGridSpec(
            num_scalar_prefetch=2,
            grid=(n_tiles,),
            in_specs=[
                pl.BlockSpec((EDGE_TILE, EMB), lambda k, blk, first: (k, 0)),   # xi (bf16)
                pl.BlockSpec((EDGE_TILE, EMB), lambda k, blk, first: (k, 0)),   # xje (bf16)
                pl.BlockSpec((1, EDGE_TILE), lambda k, blk, first: (0, k)),     # tgt_local
                pl.BlockSpec((EMB, EMB), _FULL3),                               # wf
                pl.BlockSpec((1, EMB), _FULL3),                                 # bf
            ],
            out_specs=pl.BlockSpec((R_TILE, EMB), lambda k, blk, first: (blk[k], 0)),
        ),
        compiler_params=pltpu.CompilerParams(dimension_semantics=("arbitrary",)),
    )(blk_of_tile, first_flag, xi, xje, tgt_local, wf, bf)


def _conv_output_proj(agg, right, fp, wproj):
    n_pad = agg.shape[0]
    return pl.pallas_call(
        _conv_out_proj_kernel,
        out_shape=jax.ShapeDtypeStruct((n_pad, EMB), jnp.bfloat16),
        grid=(n_pad // ROW_TILE,),
        in_specs=[
            pl.BlockSpec((ROW_TILE, EMB), lambda i: (i, 0)),   # agg
            pl.BlockSpec((ROW_TILE, EMB), lambda i: (i, 0)),   # right feats
            pl.BlockSpec((EMB, EMB), _FULL),                   # w1[:EMB] (pscale folded)
            pl.BlockSpec((EMB, EMB), _FULL),                   # w1[EMB:]
            pl.BlockSpec((1, EMB), _FULL),                     # b1
            pl.BlockSpec((EMB, EMB), _FULL),                   # w2
            pl.BlockSpec((1, EMB), _FULL),                     # b2
            pl.BlockSpec((EMB, EMB), _FULL),                   # next conv wr (fscale folded)
        ],
        out_specs=pl.BlockSpec((ROW_TILE, EMB), lambda i: (i, 0)),
        compiler_params=pltpu.CompilerParams(dimension_semantics=("parallel",)),
    )(agg, right, fp["w1a"], fp["w1b"], fp["b1"], fp["w2"], fp["b2"], wproj)


def _conv_output_critic(agg, right, fp, cp):
    n_pad = agg.shape[0]
    w2t = cp["w2"].reshape(1, EMB)   # (emb, 1) -> (1, emb)
    return pl.pallas_call(
        _conv_out_critic_kernel,
        out_shape=jax.ShapeDtypeStruct((n_pad, 1), jnp.float32),
        grid=(n_pad // ROW_TILE,),
        in_specs=[
            pl.BlockSpec((ROW_TILE, EMB), lambda i: (i, 0)),   # agg
            pl.BlockSpec((ROW_TILE, EMB), lambda i: (i, 0)),   # right feats
            pl.BlockSpec((EMB, EMB), _FULL),                   # w1[:EMB] (pscale folded)
            pl.BlockSpec((EMB, EMB), _FULL),                   # w1[EMB:]
            pl.BlockSpec((1, EMB), _FULL),                     # b1
            pl.BlockSpec((EMB, EMB), _FULL),                   # w2
            pl.BlockSpec((1, EMB), _FULL),                     # b2
            pl.BlockSpec((EMB, EMB), _FULL),                   # critic w1
            pl.BlockSpec((1, EMB), _FULL),                     # critic b1
            pl.BlockSpec((1, EMB), _FULL),                     # critic w2^T
        ],
        out_specs=pl.BlockSpec((ROW_TILE, 1), lambda i: (i, 0)),
        compiler_params=pltpu.CompilerParams(dimension_semantics=("parallel",)),
    )(agg, right, fp["w1a"], fp["w1b"], fp["b1"], fp["w2"], fp["b2"],
      cp["w1"], cp["b1"], w2t)


# ---------------------------------------------------------------------------
# Host-side edge packing (sort by target, group into row blocks, pad per block)
# ---------------------------------------------------------------------------
def _pack_edges_by_target(tgt_np, n_right_pad, r_tile, edge_tile):
    """Sort edges by target, group by R_TILE row block, pad each group to edge tiles.

    Returns (perm into the original edge arrays, local target row per slot (-1 = dummy),
    block id per tile, first-tile-of-block flag per tile)."""
    n_blocks = n_right_pad // r_tile
    order = np.argsort(tgt_np, kind="stable")
    tgt_sorted = tgt_np[order]
    bounds = np.searchsorted(tgt_sorted, np.arange(n_blocks + 1) * r_tile)
    perm_parts, tl_parts, blk_of_tile, first_flag = [], [], [], []
    for b in range(n_blocks):
        sel = order[bounds[b]:bounds[b + 1]]
        cnt = int(sel.shape[0])
        n_tiles_b = max(1, -(-cnt // edge_tile))
        padded = n_tiles_b * edge_tile
        perm_b = np.zeros(padded, dtype=np.int64)           # dummies point at edge 0
        perm_b[:cnt] = sel
        tl_b = np.full(padded, -1, dtype=np.int32)          # dummies never match the iota
        tl_b[:cnt] = tgt_np[sel].astype(np.int32) - b * r_tile
        perm_parts.append(perm_b)
        tl_parts.append(tl_b)
        blk_of_tile.extend([b] * n_tiles_b)
        first_flag.extend([1] + [0] * (n_tiles_b - 1))
    perm = np.concatenate(perm_parts)
    tgt_local = np.concatenate(tl_parts).reshape(1, -1)
    return (perm,
            jnp.asarray(tgt_local, dtype=jnp.int32),
            jnp.asarray(np.asarray(blk_of_tile, dtype=np.int32)),
            jnp.asarray(np.asarray(first_flag, dtype=np.int32)))


def _conv_pass(proj_i, proj_j, tgt_idx_np, src_idx_np, edge_features, fp, n_right_pad):
    """One bipartite conv's message + scatter: gathers (XLA glue) + Pallas scatter kernel."""
    perm, tgt_local, blk_of_tile, first_flag = _pack_edges_by_target(
        tgt_idx_np, n_right_pad, R_TILE, EDGE_TILE)
    tgt_g = jnp.asarray(tgt_idx_np[perm], dtype=jnp.int32)
    src_g = jnp.asarray(src_idx_np[perm], dtype=jnp.int32)
    perm_j = jnp.asarray(perm, dtype=jnp.int32)
    xi = jnp.take(proj_i, tgt_g, axis=0)                      # (E_pack, EMB) bf16
    xj = jnp.take(proj_j, src_g, axis=0)                      # (E_pack, EMB) bf16
    e_g = jnp.take(edge_features, perm_j, axis=0)             # (E_pack, 1) f32
    # fold edge contribution (e*we) and the left-module bias into the j-side stream
    xje = (xj.astype(jnp.float32) + e_g * fp["we"] + fp["bl"]).astype(jnp.bfloat16)
    return _conv_scatter(xi, xje, tgt_local, blk_of_tile, first_flag,
                         fp["wf"], fp["bf"], n_right_pad)


# ---------------------------------------------------------------------------
# Parameter initialization (deterministic, PyTorch-Linear-style uniform init)
# ---------------------------------------------------------------------------
def _init_linear(key, fan_in, fan_out, bias=True):
    bound = 1.0 / float(fan_in) ** 0.5
    kw, kb = jax.random.split(key)
    w = jax.random.uniform(kw, (fan_in, fan_out), jnp.float32, -bound, bound)
    b = (jax.random.uniform(kb, (1, fan_out), jnp.float32, -bound, bound) if bias else None)
    return w, b


def _init_conv_params(key):
    ks = jax.random.split(key, 6)
    wl, bl = _init_linear(ks[0], EMB, EMB, bias=True)          # feature_module_left
    we, _ = _init_linear(ks[1], EDGE_NFEATS, EMB, bias=False)  # feature_module_edge
    wr, _ = _init_linear(ks[2], EMB, EMB, bias=False)          # feature_module_right
    wf, bf = _init_linear(ks[3], EMB, EMB, bias=True)          # feature_module_final Linear
    w1, b1 = _init_linear(ks[4], 2 * EMB, EMB, bias=True)      # output_module Linear 1
    w2, b2 = _init_linear(ks[5], EMB, EMB, bias=True)          # output_module Linear 2
    return dict(wl=wl, bl=bl, we=we, wr=wr,
                fscale=jnp.ones((1, 1), jnp.float32),   # PreNormLayer(1, shift=False)
                wf=wf, bf=bf,
                pscale=jnp.ones((1, 1), jnp.float32),   # post_conv PreNormLayer
                w1=w1, b1=b1, w2=w2, b2=b2)


def init_critic_params(seed=0):
    key = jax.random.PRNGKey(seed)
    k = jax.random.split(key, 8)
    cw1, cb1 = _init_linear(k[0], CONS_NFEATS, EMB)
    cw2, cb2 = _init_linear(k[1], EMB, EMB)
    vw1, vb1 = _init_linear(k[2], VAR_NFEATS, EMB)
    vw2, vb2 = _init_linear(k[3], EMB, EMB)
    ow1, ob1 = _init_linear(k[6], EMB, EMB, bias=True)   # Critic.output_module Linear 1
    ow2, _ = _init_linear(k[7], EMB, 1, bias=False)      # Critic.output_module Linear 2
    return dict(
        cons=dict(shift=jnp.zeros((1, CONS_NFEATS), jnp.float32),
                  scale=jnp.ones((1, CONS_NFEATS), jnp.float32),
                  w1=cw1, b1=cb1, w2=cw2, b2=cb2),
        edge=dict(shift=jnp.zeros((1, EDGE_NFEATS), jnp.float32),
                  scale=jnp.ones((1, EDGE_NFEATS), jnp.float32)),
        var=dict(shift=jnp.zeros((1, VAR_NFEATS), jnp.float32),
                 scale=jnp.ones((1, VAR_NFEATS), jnp.float32),
                 w1=vw1, b1=vb1, w2=vw2, b2=vb2),
        v_to_c=_init_conv_params(k[4]),
        c_to_v=_init_conv_params(k[5]),
        critic=dict(w1=ow1, b1=ob1, w2=ow2),
    )


def _fold_conv_params(p, e_shift, e_scale):
    """Fold the (E,1) edge PreNorm and the scalar fscale/pscale PreNorms into the weights.

    Exact algebra:
      ((e + s) * c) @ we = e @ (c*we) + s*c*we ;  fscale*(x@W + b) = x@(fscale*W) + fscale*b
      cat([pscale*agg, right]) @ w1 = agg @ (pscale*w1[:emb]) + right @ w1[emb:]
    """
    fs = p["fscale"][0, 0]
    we_s = p["we"] * e_scale[0, 0]          # EDGE_NFEATS == 1
    return dict(
        wl=p["wl"] * fs,                                    # projection weight (i-side)
        wr=p["wr"] * fs,                                    # projection weight (j-side)
        we=we_s * fs,                                       # (1, EMB) per-edge scale
        bl=(p["bl"] + e_shift[0, 0] * we_s) * fs,           # (1, EMB) per-edge bias
        wf=p["wf"], bf=p["bf"],
        w1a=p["w1"][:EMB] * p["pscale"][0, 0],
        w1b=p["w1"][EMB:],
        b1=p["b1"], w2=p["w2"], b2=p["b2"],
    )


# ---------------------------------------------------------------------------
# Forward pass (glue in plain JAX/numpy, all matmul/reduction hot paths in Pallas)
# ---------------------------------------------------------------------------
def _pad_rows(x, multiple):
    n = x.shape[0]
    n_pad = _round_up(max(n, 1), multiple)
    if n_pad == n:
        return x
    return jnp.pad(x, ((0, n_pad - n), (0, 0)))


def _pad_tensor(values, nb_candidates, pad_value=PAD_VALUE):
    """Port of pad_tensor(..., value=False): split by counts, pad with pad_value, stack."""
    nb = np.asarray(nb_candidates, dtype=np.int64)
    max_nb = int(nb.max())
    offsets = np.concatenate([[0], np.cumsum(nb)[:-1]])
    col = np.arange(max_nb)[None, :]
    idx = offsets[:, None] + col
    valid = col < nb[:, None]
    idx = np.minimum(idx, values.shape[0] - 1)
    gathered = jnp.take(values, jnp.asarray(idx, dtype=jnp.int32), axis=0)
    return jnp.where(jnp.asarray(valid), gathered, pad_value)


def critic_forward(params, constraint_features, edge_indices, edge_features,
                   variable_features, candidates, nb_candidates):
    n_vars = variable_features.shape[0]

    fp_vc = _fold_conv_params(params["v_to_c"], params["edge"]["shift"], params["edge"]["scale"])
    fp_cv = _fold_conv_params(params["c_to_v"], params["edge"]["shift"], params["edge"]["scale"])

    cons_pad = _pad_rows(constraint_features, NODE_PAD)
    var_pad = _pad_rows(variable_features, NODE_PAD)

    # node embeddings + fused per-node projections (bf16), row-tiled "parallel" kernels
    cons_emb, cons_i_vc = _embed_proj(cons_pad, params["cons"], CONS_NFEATS, [fp_vc["wl"]])
    var_emb, var_j_vc, var_i_cv = _embed_proj(var_pad, params["var"], VAR_NFEATS,
                                              [fp_vc["wr"], fp_cv["wl"]])

    # host-side edge indices (data-dependent packing is host glue)
    ei = np.asarray(jax.device_get(edge_indices)).astype(np.int64)
    cons_idx_np, var_idx_np = ei[0], ei[1]

    # conv 1: variables -> constraints (target = constraints)
    agg1 = _conv_pass(cons_i_vc, var_j_vc, cons_idx_np, var_idx_np, edge_features,
                      fp_vc, cons_pad.shape[0])
    # output_module of conv1 fused with conv2's wr projection (cons_new never hits HBM in f32)
    cons_j_cv = _conv_output_proj(agg1, cons_emb, fp_vc, fp_cv["wr"])

    # conv 2: constraints -> variables (target = variables)
    agg2 = _conv_pass(var_i_cv, cons_j_cv, var_idx_np, cons_idx_np, edge_features,
                      fp_cv, var_pad.shape[0])
    # output_module of conv2 fused with the Critic value head
    critic_val = _conv_output_critic(agg2, var_emb, fp_cv, params["critic"])[:n_vars, 0]

    # candidate gather + ragged pad (data-dependent packing = glue)
    cand_vals = jnp.take(critic_val, candidates.astype(jnp.int32), axis=0)
    return _pad_tensor(cand_vals, nb_candidates)


# ---------------------------------------------------------------------------
# Demo
# ---------------------------------------------------------------------------
if __name__ == "__main__":
    key = jax.random.PRNGKey(0)
    k1, k2, k3, k4, k5 = jax.random.split(key, 5)

    n_cons, n_vars, n_edges = 6, 8, 12
    constraint_features = jax.random.normal(k1, (n_cons, CONS_NFEATS), jnp.float32)
    variable_features = jax.random.normal(k2, (n_vars, VAR_NFEATS), jnp.float32)
    edge_features = jax.random.normal(k3, (n_edges, EDGE_NFEATS), jnp.float32)
    edge_indices = jnp.stack(
        [jax.random.randint(k4, (n_edges,), 0, n_cons, dtype=jnp.int32),
         jax.random.randint(k5, (n_edges,), 0, n_vars, dtype=jnp.int32)], axis=0)

    candidates = jnp.array([0, 2, 5, 1, 3, 4, 7], dtype=jnp.int32)   # 2 samples: 3 + 4 cands
    nb_candidates = np.array([3, 4], dtype=np.int32)

    params = init_critic_params(seed=0)

    out = critic_forward(params, constraint_features, edge_indices, edge_features,
                         variable_features, candidates, nb_candidates)
    out = jax.block_until_ready(out)

    assert out.shape == (nb_candidates.shape[0], int(nb_candidates.max())), out.shape
    assert bool(jnp.all(jnp.isfinite(out)))
    print("KERNEL_OK")
</pallas_src>

<mosaic_0001>
module attributes {stable_mosaic.version = 11 : i64} {
  func.func @_embed_proj1_kernel(%arg0: i32, %arg1: memref<1024x5xf32, #tpu.memory_space<vmem>>, %arg2: memref<1x5xf32, #tpu.memory_space<vmem>>, %arg3: memref<1x5xf32, #tpu.memory_space<vmem>>, %arg4: memref<5x64xf32, #tpu.memory_space<vmem>>, %arg5: memref<1x64xf32, #tpu.memory_space<vmem>>, %arg6: memref<64x64xf32, #tpu.memory_space<vmem>>, %arg7: memref<1x64xf32, #tpu.memory_space<vmem>>, %arg8: memref<64x64xf32, #tpu.memory_space<vmem>>, %arg9: memref<1024x64xf32, #tpu.memory_space<vmem>>, %arg10: memref<1024x64xbf16, #tpu.memory_space<vmem>>) attributes {dimension_semantics = [#tpu.dimension_semantics<parallel>], iteration_bounds = array<i64: 1>, scalar_prefetch = 0 : i64, scratch_operands = 0 : i64, tpu.core_type = #tpu.core_type<tc>, window_params = [{transform_indices = @transform_0, window_bounds = array<i64: 1024, 5>}, {pipeline_mode = #tpu.pipeline_mode<synchronous>, transform_indices = @transform_1, window_bounds = array<i64: 1, 5>}, {pipeline_mode = #tpu.pipeline_mode<synchronous>, transform_indices = @transform_2, window_bounds = array<i64: 1, 5>}, {pipeline_mode = #tpu.pipeline_mode<synchronous>, transform_indices = @transform_3, window_bounds = array<i64: 5, 64>}, {pipeline_mode = #tpu.pipeline_mode<synchronous>, transform_indices = @transform_4, window_bounds = array<i64: 1, 64>}, {pipeline_mode = #tpu.pipeline_mode<synchronous>, transform_indices = @transform_5, window_bounds = array<i64: 64, 64>}, {pipeline_mode = #tpu.pipeline_mode<synchronous>, transform_indices = @transform_6, window_bounds = array<i64: 1, 64>}, {pipeline_mode = #tpu.pipeline_mode<synchronous>, transform_indices = @transform_7, window_bounds = array<i64: 64, 64>}, {transform_indices = @transform_8, window_bounds = array<i64: 1024, 64>}, {transform_indices = @transform_9, window_bounds = array<i64: 1024, 64>}]} {
    %c0 = arith.constant 0 : index
    %c0_0 = arith.constant 0 : index
    %0 = vector.load %arg1[%c0, %c0_0] : memref<1024x5xf32, #tpu.memory_space<vmem>>, vector<1024x5xf32>
    %c0_1 = arith.constant 0 : index
    %c0_2 = arith.constant 0 : index
    %1 = vector.load %arg2[%c0_1, %c0_2] : memref<1x5xf32, #tpu.memory_space<vmem>>, vector<1x5xf32>
    %2 = vector.broadcast %1 : vector<1x5xf32> to vector<1024x5xf32>
    %3 = arith.addf %0, %2 : vector<1024x5xf32>
    %c0_3 = arith.constant 0 : index
    %c0_4 = arith.constant 0 : index
    %4 = vector.load %arg3[%c0_3, %c0_4] : memref<1x5xf32, #tpu.memory_space<vmem>>, vector<1x5xf32>
    %5 = vector.broadcast %4 : vector<1x5xf32> to vector<1024x5xf32>
    %6 = arith.mulf %3, %5 : vector<1024x5xf32>
    %7 = arith.truncf %6 : vector<1024x5xf32> to vector<1024x5xbf16>
    %c0_5 = arith.constant 0 : index
    %c0_6 = arith.constant 0 : index
    %8 = vector.load %arg4[%c0_5, %c0_6] : memref<5x64xf32, #tpu.memory_space<vmem>>, vector<5x64xf32>
    %9 = arith.truncf %8 : vector<5x64xf32> to vector<5x64xbf16>
    %cst = arith.constant dense<0.000000e+00> : vector<1024x64xf32>
    %10 = tpu.matmul %7, %9, %cst {dimension_numbers = #tpu.dot_dimension_numbers<[1], [0], [0], [1], [0, 0, 1, 1], [], []>} : vector<1024x5xbf16>, vector<5x64xbf16>, vector<1024x64xf32> -> vector<1024x64xf32>
    %c0_7 = arith.constant 0 : index
    %c0_8 = arith.constant 0 : index
    %11 = vector.load %arg5[%c0_7, %c0_8] : memref<1x64xf32, #tpu.memory_space<vmem>>, vector<1x64xf32>
    %12 = vector.broadcast %11 : vector<1x64xf32> to vector<1024x64xf32>
    %13 = arith.addf %10, %12 : vector<1024x64xf32>
    %cst_9 = arith.constant 0.000000e+00 : f32
    %14 = vector.broadcast %cst_9 : f32 to vector<1024x64xf32>
    %15 = arith.maximumf %13, %14 : vector<1024x64xf32>
    %16 = arith.truncf %15 : vector<1024x64xf32> to vector<1024x64xbf16>
    %c0_10 = arith.constant 0 : index
    %c0_11 = arith.constant 0 : index
    %17 = vector.load %arg6[%c0_10, %c0_11] : memref<64x64xf32, #tpu.memory_space<vmem>>, vector<64x64xf32>
    %18 = arith.truncf %17 : vector<64x64xf32> to vector<64x64xbf16>
    %cst_12 = arith.constant dense<0.000000e+00> : vector<1024x64xf32>
    %19 = tpu.matmul %16, %18, %cst_12 {dimension_numbers = #tpu.dot_dimension_numbers<[1], [0], [0], [1], [0, 0, 1, 1], [], []>} : vector<1024x64xbf16>, vector<64x64xbf16>, vector<1024x64xf32> -> vector<1024x64xf32>
    %c0_13 = arith.constant 0 : index
    %c0_14 = arith.constant 0 : index
    %20 = vector.load %arg7[%c0_13, %c0_14] : memref<1x64xf32, #tpu.memory_space<vmem>>, vector<1x64xf32>
    %21 = vector.broadcast %20 : vector<1x64xf32> to vector<1024x64xf32>
    %22 = arith.addf %19, %21 : vector<1024x64xf32>
    %cst_15 = arith.constant 0.000000e+00 : f32
    %23 = vector.broadcast %cst_15 : f32 to vector<1024x64xf32>
    %24 = arith.maximumf %22, %23 : vector<1024x64xf32>
    %c0_16 = arith.constant 0 : index
    %c0_17 = arith.constant 0 : index
    %25 = vector.load %arg9[%c0_16, %c0_17] : memref<1024x64xf32, #tpu.memory_space<vmem>>, vector<1024x64xf32>
    tpu.vector_store %arg9[%c0_16, %c0_17], %24 {strides = array<i32>} : memref<1024x64xf32, #tpu.memory_space<vmem>>, vector<1024x64xf32>,
    %26 = arith.truncf %24 : vector<1024x64xf32> to vector<1024x64xbf16>
    %c0_18 = arith.constant 0 : index
    %c0_19 = arith.constant 0 : index
    %27 = vector.load %arg8[%c0_18, %c0_19] : memref<64x64xf32, #tpu.memory_space<vmem>>, vector<64x64xf32>
    %28 = arith.truncf %27 : vector<64x64xf32> to vector<64x64xbf16>
    %cst_20 = arith.constant dense<0.000000e+00> : vector<1024x64xf32>
    %29 = tpu.matmul %26, %28, %cst_20 {dimension_numbers = #tpu.dot_dimension_numbers<[1], [0], [0], [1], [0, 0, 1, 1], [], []>} : vector<1024x64xbf16>, vector<64x64xbf16>, vector<1024x64xf32> -> vector<1024x64xf32>
    %30 = arith.truncf %29 : vector<1024x64xf32> to vector<1024x64xbf16>
    %c0_21 = arith.constant 0 : index
    %c0_22 = arith.constant 0 : index
    %31 = vector.load %arg10[%c0_21, %c0_22] : memref<1024x64xbf16, #tpu.memory_space<vmem>>, vector<1024x64xbf16>
    tpu.vector_store %arg10[%c0_21, %c0_22], %30 {strides = array<i32>} : memref<1024x64xbf16, #tpu.memory_space<vmem>>, vector<1024x64xbf16>,
    return
  }
  func.func @transform_0(%arg0: i32) -> (i32, i32) {
    %c0_i32 = arith.constant 0 : i32
    %c0_i32_0 = arith.constant 0 : i32
    return %arg0, %c0_i32 : i32, i32
  }
  func.func @transform_1(%arg0: i32) -> (i32, i32) {
    %c0_i32 = arith.constant 0 : i32
    %c0_i32_0 = arith.constant 0 : i32
    %c0_i32_1 = arith.constant 0 : i32
    return %c0_i32, %c0_i32_0 : i32, i32
  }
  func.func @transform_2(%arg0: i32) -> (i32, i32) {
    %c0_i32 = arith.constant 0 : i32
    %c0_i32_0 = arith.constant 0 : i32
    %c0_i32_1 = arith.constant 0 : i32
    return %c0_i32, %c0_i32_0 : i32, i32
  }
  func.func @transform_3(%arg0: i32) -> (i32, i32) {
    %c0_i32 = arith.constant 0 : i32
    %c0_i32_0 = arith.constant 0 : i32
    %c0_i32_1 = arith.constant 0 : i32
    return %c0_i32, %c0_i32_0 : i32, i32
  }
  func.func @transform_4(%arg0: i32) -> (i32, i32) {
    %c0_i32 = arith.constant 0 : i32
    %c0_i32_0 = arith.constant 0 : i32
    %c0_i32_1 = arith.constant 0 : i32
    return %c0_i32, %c0_i32_0 : i32, i32
  }
  func.func @transform_5(%arg0: i32) -> (i32, i32) {
    %c0_i32 = arith.constant 0 : i32
    %c0_i32_0 = arith.constant 0 : i32
    %c0_i32_1 = arith.constant 0 : i32
    return %c0_i32, %c0_i32_0 : i32, i32
  }
  func.func @transform_6(%arg0: i32) -> (i32, i32) {
    %c0_i32 = arith.constant 0 : i32
    %c0_i32_0 = arith.constant 0 : i32
    %c0_i32_1 = arith.constant 0 : i32
    return %c0_i32, %c0_i32_0 : i32, i32
  }
  func.func @transform_7(%arg0: i32) -> (i32, i32) {
    %c0_i32 = arith.constant 0 : i32
    %c0_i32_0 = arith.constant 0 : i32
    %c0_i32_1 = arith.constant 0 : i32
    return %c0_i32, %c0_i32_0 : i32, i32
  }
  func.func @transform_8(%arg0: i32) -> (i32, i32) {
    %c0_i32 = arith.constant 0 : i32
    %c0_i32_0 = arith.constant 0 : i32
    return %arg0, %c0_i32 : i32, i32
  }
  func.func @transform_9(%arg0: i32) -> (i32, i32) {
    %c0_i32 = arith.constant 0 : i32
    %c0_i32_0 = arith.constant 0 : i32
    return %arg0, %c0_i32 : i32, i32
  }
}

</mosaic_0001>

<bundles_post_ra>
// kernel: tpu_custom_call.1
= control target key start
LH: loop header
LB: loop body
LE: loop exit
PB: predicated region body
PF: predicated region fallthrough
CT: control target
= control target key end

     0   :  { %vm696_vm0 = vcmask 1041408   ;;  %vm697_vm1 = vcmask 1042432   ;;  %v4977_v1 = vmov 65535   ;;  %vm503_vm2 = vcmask 39936   ;;  %s7407_s3 = inlined_call_operand.vmem [shape: f32[5,64], index: 3, kind: input, shape index: {}]   ;;  %s7408_s0 = inlined_call_operand.vmem [shape: f32[1024,5], index: 0, kind: input, shape index: {}]   ;;  %s7409_s1 = inlined_call_operand.vmem [shape: f32[1,5], index: 1, kind: input, shape index: {}]   ;;  %s7410_s2 = inlined_call_operand.vmem [shape: f32[1,5], index: 2, kind: input, shape index: {}]   ;;  %s7411_s5 = inlined_call_operand.vmem [shape: f32[64,64], index: 5, kind: input, shape index: {}]   ;;  %s7412_s7 = inlined_call_operand.vmem [shape: f32[64,64], index: 7, kind: input, shape index: {}]   ;;  %s7413_s4 = inlined_call_operand.vmem [shape: f32[1,64], index: 4, kind: input, shape index: {}]   ;;  %s7414_s6 = inlined_call_operand.vmem [shape: f32[1,64], index: 6, kind: input, shape index: {}]   ;;  %s7415_s8 = inlined_call_operand.vmem [shape: f32[1024,64], index: 8, kind: output, shape index: {0}]   ;;  %s7416_s9 = inlined_call_operand.vmem [shape: bf16[1024,64], index: 9, kind: output, shape index: {1}]  }
   0x1   :  { %v494_v0 = vld [vmem:[%s7407_s3] sm:$0x1f]  ;;  %v698_v2 = vsel %vm696_vm0, 4294967295, %v4977_v1  ;;  %v33_v4 = vld [vmem:[%s7408_s0 + $0x8] sm:$0xff]  ;;  %v34_v9 = vld [vmem:[%s7408_s0 + $0x10] sm:$0xff]  ;;  %vm1459_vm3 = vcmask 523264  }
   0x2   :  { %v32_v3 = vld [vmem:[%s7408_s0] sm:$0xff]  ;;  %v495_v5 = vpack.c.bf16 %v494_v0, %v494_v0  ;;  %v699_v6 = vsel %vm697_vm1, %v698_v2, 0  ;;  %v35_v12 = vld [vmem:[%s7408_s0 + $0x18] sm:$0xff]  ;;  %v37_v15 = vld [vmem:[%s7408_s0 + $0x28] sm:$0xff]  ;;  %vm3778_vm4 = vcmask 519168  }
   0x3   :  { %v5040_v7 = vld [vmem:[%s7409_s1] ss:$0 sm:$0xff]  ;;  %v38_v20 = vld [vmem:[%s7408_s0 + $0x30] sm:$0xff]  ;;  %v39_v21 = vld [vmem:[%s7408_s0 + $0x38] sm:$0xff] }
   0x4   :  { %v5045_v8 = vld [vmem:[%s7410_s2] ss:$0 sm:$0xff]  ;;  %v167_v10 = vadd.f32 %v5040_v7, %v32_v3  ;;  %v168_v11 = vadd.f32 %v5040_v7, %v33_v4  ;;  %v169_v13 = vadd.f32 %v5040_v7, %v34_v9  ;;  %v701_v16 = vand.u32 %v699_v6, %v495_v5  ;;  %v41_v27 = vld [vmem:[%s7408_s0 + $0x48] sm:$0xff]  ;;  %v42_v41 = vld [vmem:[%s7408_s0 + $0x50] sm:$0xff] }
   0x5   :  { %v36_v14 = vld [vmem:[%s7408_s0 + $0x20] sm:$0xff]  ;;  %v170_v17 = vadd.f32 %v5040_v7, %v35_v12  ;;  %v172_v19 = vadd.f32 %v5040_v7, %v37_v15  ;;  %v173_v26 = vadd.f32 %v5040_v7, %v38_v20  ;;  %v174_v31 = vadd.f32 %v5040_v7, %v39_v21  ;;  %v43_v42 = vld [vmem:[%s7408_s0 + $0x58] sm:$0xff]  ;;  %v45_v44 = vld [vmem:[%s7408_s0 + $0x68] sm:$0xff] }
   0x6   :  { %v171_v18 = vadd.f32 %v5040_v7, %v36_v14  ;;  %v40_v22 = vld [vmem:[%s7408_s0 + $0x40] sm:$0xff]  ;;  %v302_v23 = vmul.f32 %v5045_v8, %v167_v10  ;;  %v303_v24 = vmul.f32 %v5045_v8, %v168_v11  ;;  %v304_v25 = vmul.f32 %v5045_v8, %v169_v13  ;;  %4568 = vmatprep.subr.bf16.mxu0 %v701_v16  ;;  %v46_v55 = vld [vmem:[%s7408_s0 + $0x70] sm:$0xff]  ;;  %v47_v56 = vld [vmem:[%s7408_s0 + $0x78] sm:$0xff] }
   0x7   :  { %v305_v28 = vmul.f32 %v5045_v8, %v170_v17  ;;  %v307_v30 = vmul.f32 %v5045_v8, %v172_v19  ;;  %4569 = vmatpush3.bf16.msra.mxu0 %v701_v16  ;;  %v175_v33 = vadd.f32 %v5040_v7, %v40_v22  ;;  %v176_v34 = vadd.f32 %v5040_v7, %v41_v27  ;;  %v44_v43 = vld [vmem:[%s7408_s0 + $0x60] sm:$0xff]  ;;  %v49_v58 = vld [vmem:[%s7408_s0 + $0x88] sm:$0xff]  ;;  %v50_v3 = vld [vmem:[%s7408_s0 + $0x90] sm:$0xff] }
   0x8   :  { %v306_v29 = vmul.f32 %v5045_v8, %v171_v18  ;;  %v430_v32 = vpack.c.bf16 %v303_v24, %v302_v23  ;;  %4970 = vmatprep.subr.bf16.mxu1 %v701_v16  ;;  %v308_v37 = vmul.f32 %v5045_v8, %v173_v26  ;;  %v309_v38 = vmul.f32 %v5045_v8, %v174_v31  ;;  %v48_v57 = vld [vmem:[%s7408_s0 + $0x80] sm:$0xff]  ;;  %v97_v2 = vld [vmem:[%s7408_s0 + $0x208] sm:$0xff]  ;;  %v51_v4 = vld [vmem:[%s7408_s0 + $0x98] sm:$0xff] }
   0x9   :  { %v431_v35 = vpack.c.bf16 %v305_v28, %v304_v25  ;;  %v310_v39 = vmul.f32 %v5045_v8, %v175_v33  ;;  %v311_v40 = vmul.f32 %v5045_v8, %v176_v34  ;;  %4971 = vmatpush3.bf16.msra.mxu1 %v701_v16  ;;  %v177_v46 = vadd.f32 %v5040_v7, %v42_v41  ;;  %v96_v1 = vld [vmem:[%s7408_s0 + $0x200] sm:$0xff]  ;;  %v98_v5 = vld [vmem:[%s7408_s0 + $0x210] sm:$0xff]  ;;  %v99_v6 = vld [vmem:[%s7408_s0 + $0x218] sm:$0xff] }
   0xa   :  { %v432_v36 = vpack.c.bf16 %v307_v30, %v306_v29  ;;  %4570 = vmatprep.mubr.msk.bf16.mxu0 %vm503_vm2, %v430_v32  ;;  %v433_v45 = vpack.c.bf16 %v309_v38, %v308_v37  ;;  %v178_v47 = vadd.f32 %v5040_v7, %v43_v42  ;;  %v179_v49 = vadd.f32 %v5040_v7, %v44_v43  ;;  %v52_v11 = vld [vmem:[%s7408_s0 + $0xa0] sm:$0xff]  ;;  %v1446_v14 = vld [vmem:[%s7411_s5 + $0x30] sm:$0xff]  ;;  %v1447_v15 = vld [vmem:[%s7411_s5 + $0x38] sm:$0xff] }
   0xb   :  { %4571 = vmatmul.mubr.msk.bf16.vlgmr.msra.gmra.mxu0 %vm503_vm2, %v431_v35  ;;  %v434_v48 = vpack.c.bf16 %v311_v40, %v310_v39  ;;  %v180_v50 = vadd.f32 %v5040_v7, %v45_v44  ;;  %v312_v51 = vmul.f32 %v5045_v8, %v177_v46  ;;  %v181_v60 = vadd.f32 %v5040_v7, %v46_v55  ;;  %v53_v18 = vld [vmem:[%s7408_s0 + $0xa8] sm:$0xff]  ;;  %v100_v23 = vld [vmem:[%s7408_s0 + $0x220] sm:$0xff]  ;;  %v102_v33 = vld [vmem:[%s7408_s0 + $0x230] sm:$0xff] }
   0xc   :  { %4574 = vmatprep.mubr.msk.bf16.mxu0 %vm503_vm2, %v432_v36  ;;  %v313_v52 = vmul.f32 %v5045_v8, %v178_v47  ;;  %v314_v53 = vmul.f32 %v5045_v8, %v179_v49  ;;  %v182_v61 = vadd.f32 %v5040_v7, %v47_v56  ;;  %v183_v63 = vadd.f32 %v5040_v7, %v48_v57  ;;  %v101_v24 = vld [vmem:[%s7408_s0 + $0x228] sm:$0xff]  ;;  %v103_v38 = vld [vmem:[%s7408_s0 + $0x238] sm:$0xff]  ;;  %v54_v41 = vld [vmem:[%s7408_s0 + $0xb0] sm:$0xff] }
   0xd   :  { %v315_v54 = vmul.f32 %v5045_v8, %v180_v50  ;;  %v184_v0 = vadd.f32 %v5040_v7, %v49_v58  ;;  %v316_v9 = vmul.f32 %v5045_v8, %v181_v60  ;;  %v231_v12 = vadd.f32 %v5040_v7, %v96_v1  ;;  %v55_v47 = vld [vmem:[%s7408_s0 + $0xb8] sm:$0xff]  ;;  %v104_v49 = vld [vmem:[%s7408_s0 + $0x240] sm:$0xff]  ;;  %v105_v50 = vld [vmem:[%s7408_s0 + $0x248] sm:$0xff] }
   0xe   :  { %v435_v59 = vpack.c.bf16 %v313_v52, %v312_v51  ;;  %v317_v10 = vmul.f32 %v5045_v8, %v182_v61  ;;  %v232_v13 = vadd.f32 %v5040_v7, %v97_v2  ;;  %v318_v16 = vmul.f32 %v5045_v8, %v183_v63  ;;  %v56_v52 = vld [vmem:[%s7408_s0 + $0xc0] sm:$0xff]  ;;  %v106_v55 = vld [vmem:[%s7408_s0 + $0x250] sm:$0xff]  ;;  %v57_v56 = vld [vmem:[%s7408_s0 + $0xc8] sm:$0xff] }
   0xf   :  { %v436_v62 = vpack.c.bf16 %v315_v54, %v314_v53  ;;  %v319_v17 = vmul.f32 %v5045_v8, %v184_v0  ;;  %v366_v19 = vmul.f32 %v5045_v8, %v231_v12  ;;  %v233_v21 = vadd.f32 %v5040_v7, %v98_v5 }
  0x10   :  { %v367_v20 = vmul.f32 %v5045_v8, %v232_v13  ;;  %v234_v22 = vadd.f32 %v5040_v7, %v99_v6  ;;  %v185_v25 = vadd.f32 %v5040_v7, %v50_v3  ;;  %v186_v26 = vadd.f32 %v5040_v7, %v51_v4  ;;  %v108_v3 = vld [vmem:[%s7408_s0 + $0x260] sm:$0xff] }
  0x11   :  { %v187_v27 = vadd.f32 %v5040_v7, %v52_v11  ;;  %v1451_v28 = vpack.c.bf16 %v1447_v15, %v1446_v14  ;;  %v437_v29 = vpack.c.bf16 %v317_v10, %v316_v9  ;;  %v368_v31 = vmul.f32 %v5045_v8, %v233_v21  ;;  %v109_v10 = vld [vmem:[%s7408_s0 + $0x268] sm:$0xff] }
  0x12   :  { %v462_v30 = vpack.c.bf16 %v367_v20, %v366_v19  ;;  %v369_v32 = vmul.f32 %v5045_v8, %v234_v22  ;;  %v438_v34 = vpack.c.bf16 %v319_v17, %v318_v16  ;;  %v188_v35 = vadd.f32 %v5040_v7, %v53_v18  ;;  %v58_v16 = vld [vmem:[%s7408_s0 + $0xd0] sm:$0xff]  ;;  %v59_v17 = vld [vmem:[%s7408_s0 + $0xd8] sm:$0xff]  ;;  %v60_v18 = vld [vmem:[%s7408_s0 + $0xe0] sm:$0xff] }
  0x13   :  { %4575 = vmatmul.mubr.msk.bf16.gmra.mxu0 %vm503_vm2, %v433_v45  ;;  %4698 = vmatprep.subr.bf16.mxu1 %v1451_v28  ;;  %v235_v36 = vadd.f32 %v5040_v7, %v100_v23  ;;  %v236_v37 = vadd.f32 %v5040_v7, %v101_v24  ;;  %v320_v40 = vmul.f32 %v5045_v8, %v185_v25  ;;  %v61_v24 = vld [vmem:[%s7408_s0 + $0xe8] sm:$0xff] }
  0x14   :  { %4578 = vmatprep.mubr.msk.bf16.mxu0 %vm503_vm2, %v434_v48  ;;  %4634 = vmatprep.mubr.msk.bf16.mxu1 %vm503_vm2, %v462_v30  ;;  %v463_v39 = vpack.c.bf16 %v369_v32, %v368_v31  ;;  %v237_v44 = vadd.f32 %v5040_v7, %v102_v33  ;;  %v321_v45 = vmul.f32 %v5045_v8, %v186_v26  ;;  %v110_v26 = vld [vmem:[%s7408_s0 + $0x270] sm:$0xff]  ;;  %v113_v30 = vld [vmem:[%s7408_s0 + $0x288] sm:$0xff] }
  0x15   :  { %v370_v42 = vmul.f32 %v5045_v8, %v235_v36  ;;  %v371_v43 = vmul.f32 %v5045_v8, %v236_v37  ;;  %v322_v46 = vmul.f32 %v5045_v8, %v187_v27  ;;  %v238_v48 = vadd.f32 %v5040_v7, %v103_v38  ;;  %v111_v27 = vld [vmem:[%s7408_s0 + $0x278] sm:$0xff] }
  0x16   :  { %4635 = vmatmul.mubr.msk.bf16.vlgmr.msra.gmra.mxu1 %vm503_vm2, %v463_v39  ;;  %v323_v51 = vmul.f32 %v5045_v8, %v188_v35  ;;  %v372_v54 = vmul.f32 %v5045_v8, %v237_v44  ;;  %v189_v58 = vadd.f32 %v5040_v7, %v54_v41  ;;  %v239_v60 = vadd.f32 %v5040_v7, %v104_v49  ;;  %v63_v49 = vld [vmem:[%s7408_s0 + $0xf8] sm:$0xff] }
  0x17   :  { %4699 = vmatpush3.bf16.msra.mxu1 %v1451_v28  ;;  %v464_v53 = vpack.c.bf16 %v371_v43, %v370_v42  ;;  %v373_v57 = vmul.f32 %v5045_v8, %v238_v48  ;;  %v240_v61 = vadd.f32 %v5040_v7, %v105_v50  ;;  %v439_v63 = vpack.c.bf16 %v321_v45, %v320_v40  ;;  %v1444_v45 = vld [vmem:[%s7411_s5 + $0x20] sm:$0xff]  ;;  %v62_v48 = vld [vmem:[%s7408_s0 + $0xf0] sm:$0xff] }
  0x18   :  { %v191_v0 = vadd.f32 %v5040_v7, %v56_v52  ;;  %v241_v2 = vadd.f32 %v5040_v7, %v106_v55  ;;  %v440_v4 = vpack.c.bf16 %v323_v51, %v322_v46  ;;  %v192_v5 = vadd.f32 %v5040_v7, %v57_v56  ;;  %v1445_v46 = vld [vmem:[%s7411_s5 + $0x28] sm:$0xff]  ;;  %v64_v50 = vld [vmem:[%s7408_s0 + $0x100] sm:$0xff] }
  0x19   :  { %4638 = vmatprep.mubr.msk.bf16.mxu1 %vm503_vm2, %v464_v53  ;;  %v465_v1 = vpack.c.bf16 %v373_v57, %v372_v54  ;;  %v374_v6 = vmul.f32 %v5045_v8, %v239_v60  ;;  %v375_v9 = vmul.f32 %v5045_v8, %v240_v61  ;;  %v324_v12 = vmul.f32 %v5045_v8, %v189_v58  ;;  %v65_v54 = vld [vmem:[%s7408_s0 + $0x108] sm:$0xff]  ;;  %v114_v57 = vld [vmem:[%s7408_s0 + $0x290] sm:$0xff]  ;;  %v115_v58 = vld [vmem:[%s7408_s0 + $0x298] sm:$0xff] }
  0x1a   :  { %v243_v15 = vadd.f32 %v5040_v7, %v108_v3  ;;  %v376_v19 = vmul.f32 %v5045_v8, %v241_v2  ;;  %v244_v21 = vadd.f32 %v5040_v7, %v109_v10  ;;  %v326_v22 = vmul.f32 %v5045_v8, %v191_v0  ;;  %v116_v60 = vld [vmem:[%s7408_s0 + $0x2a0] sm:$0xff]  ;;  %v117_v61 = vld [vmem:[%s7408_s0 + $0x2a8] sm:$0xff] }
  0x1b   :  { %4579 = vmatmul.mubr.msk.bf16.gmra.mxu0 %vm503_vm2, %v435_v59  ;;  %v190_v59 = vadd.f32 %v5040_v7, %v55_v47  ;;  %v466_v14 = vpack.c.bf16 %v375_v9, %v374_v6  ;;  %v327_v23 = vmul.f32 %v5045_v8, %v192_v5  ;;  %v193_v32 = vadd.f32 %v5040_v7, %v58_v16  ;;  %v67_v16 = vld [vmem:[%s7408_s0 + $0x118] sm:$0xff] }
  0x1c   :  { %4582 = vmatprep.mubr.msk.bf16.mxu0 %vm503_vm2, %v436_v62  ;;  %v107_v62 = vld [vmem:[%s7408_s0 + $0x258] sm:$0xff]  ;;  %v378_v25 = vmul.f32 %v5045_v8, %v243_v15  ;;  %v379_v28 = vmul.f32 %v5045_v8, %v244_v21  ;;  %v194_v33 = vadd.f32 %v5040_v7, %v59_v17  ;;  %v196_v35 = vadd.f32 %v5040_v7, %v61_v24  ;;  %v66_v15 = vld [vmem:[%s7408_s0 + $0x110] sm:$0xff]  ;;  %v68_v17 = vld [vmem:[%s7408_s0 + $0x120] sm:$0xff] }
  0x1d   :  { %v242_v11 = vadd.f32 %v5040_v7, %v107_v62  ;;  %v325_v13 = vmul.f32 %v5045_v8, %v190_v59  ;;  %v245_v37 = vadd.f32 %v5040_v7, %v110_v26  ;;  %v246_v38 = vadd.f32 %v5040_v7, %v111_v27  ;;  %v69_v21 = vld [vmem:[%s7408_s0 + $0x128] sm:$0xff]  ;;  %v118_v24 = vld [vmem:[%s7408_s0 + $0x2b0] sm:$0xff]  ;;  %v120_v26 = vld [vmem:[%s7408_s0 + $0x2c0] sm:$0xff] }
  0x1e   :  { %4639 = vmatmul.mubr.msk.bf16.gmra.mxu1 %vm503_vm2, %v465_v1  ;;  %v442_v39 = vpack.c.bf16 %v327_v23, %v326_v22  ;;  %v468_v40 = vpack.c.bf16 %v379_v28, %v378_v25  ;;  %v248_v42 = vadd.f32 %v5040_v7, %v113_v30  ;;  %v328_v43 = vmul.f32 %v5045_v8, %v193_v32  ;;  %v119_v25 = vld [vmem:[%s7408_s0 + $0x2b8] sm:$0xff]  ;;  %v121_v27 = vld [vmem:[%s7408_s0 + $0x2c8] sm:$0xff] }
  0x1f   :  { %v377_v20 = vmul.f32 %v5045_v8, %v242_v11  ;;  %4642 = vmatprep.mubr.msk.bf16.mxu1 %vm503_vm2, %v466_v14  ;;  %v441_v31 = vpack.c.bf16 %v325_v13, %v324_v12  ;;  %v329_v44 = vmul.f32 %v5045_v8, %v194_v33  ;;  %v380_v51 = vmul.f32 %v5045_v8, %v245_v37 }
  0x20   :  { %v381_v52 = vmul.f32 %v5045_v8, %v246_v38  ;;  %v331_v53 = vmul.f32 %v5045_v8, %v196_v35  ;;  %v383_v56 = vmul.f32 %v5045_v8, %v248_v42  ;;  %v1450_v59 = vpack.c.bf16 %v1445_v46, %v1444_v45  ;;  %v1443_v45 = vld [vmem:[%s7411_s5 + $0x18] sm:$0xff] }
  0x21   :  { %v467_v36 = vpack.c.bf16 %v377_v20, %v376_v19  ;;  %v443_v62 = vpack.c.bf16 %v329_v44, %v328_v43  ;;  %v198_v0 = vadd.f32 %v5040_v7, %v63_v49  ;;  %v199_v1 = vadd.f32 %v5040_v7, %v64_v50  ;;  %v71_v43 = vld [vmem:[%s7408_s0 + $0x138] sm:$0xff]  ;;  %v1442_v44 = vld [vmem:[%s7411_s5 + $0x10] sm:$0xff] }
  0x22   :  { %v200_v2 = vadd.f32 %v5040_v7, %v65_v54  ;;  %v469_v3 = vpack.c.bf16 %v381_v52, %v380_v51  ;;  %v250_v5 = vadd.f32 %v5040_v7, %v115_v58  ;;  %4700 = vmatprep.subr.bf16.mxu1 %v1450_v59  ;;  %v251_v10 = vadd.f32 %v5040_v7, %v116_v60  ;;  %v122_v54 = vld [vmem:[%s7408_s0 + $0x2d0] sm:$0xff]  ;;  %v124_v58 = vld [vmem:[%s7408_s0 + $0x2e0] sm:$0xff] }
  0x23   :  { %4583 = vmatmul.mubr.msk.bf16.gmra.mxu0 %vm503_vm2, %v437_v29  ;;  %v112_v29 = vld [vmem:[%s7408_s0 + $0x280] sm:$0xff]  ;;  %4701 = vmatpush3.bf16.msra.mxu1 %v1450_v59  ;;  %v252_v11 = vadd.f32 %v5040_v7, %v117_v61  ;;  %v333_v13 = vmul.f32 %v5045_v8, %v198_v0  ;;  %v334_v14 = vmul.f32 %v5045_v8, %v199_v1  ;;  %v125_v59 = vld [vmem:[%s7408_s0 + $0x2e8] sm:$0xff] }
  0x24   :  { %4586 = vmatprep.mubr.msk.bf16.mxu0 %vm503_vm2, %v438_v34  ;;  %v195_v34 = vadd.f32 %v5040_v7, %v60_v18  ;;  %v247_v41 = vadd.f32 %v5040_v7, %v112_v29  ;;  %v385_v19 = vmul.f32 %v5045_v8, %v250_v5  ;;  %v335_v20 = vmul.f32 %v5045_v8, %v200_v2 }
  0x25   :  { %v386_v22 = vmul.f32 %v5045_v8, %v251_v10  ;;  %v387_v23 = vmul.f32 %v5045_v8, %v252_v11  ;;  %v201_v29 = vadd.f32 %v5040_v7, %v66_v15  ;;  %v202_v30 = vadd.f32 %v5040_v7, %v67_v16  ;;  %v76_v15 = vld [vmem:[%s7408_s0 + $0x160] sm:$0xff] }
  0x26   :  { %v330_v47 = vmul.f32 %v5045_v8, %v195_v34  ;;  %4643 = vmatmul.mubr.msk.bf16.gmra.mxu1 %vm503_vm2, %v467_v36  ;;  %v382_v55 = vmul.f32 %v5045_v8, %v247_v41  ;;  %v204_v32 = vadd.f32 %v5040_v7, %v69_v21  ;;  %v253_v34 = vadd.f32 %v5040_v7, %v118_v24  ;;  %v127_v21 = vld [vmem:[%s7408_s0 + $0x2f8] sm:$0xff] }
  0x27   :  { %4646 = vmatprep.mubr.msk.bf16.mxu1 %vm503_vm2, %v468_v40  ;;  %v254_v35 = vadd.f32 %v5040_v7, %v119_v25  ;;  %v446_v36 = vpack.c.bf16 %v335_v20, %v334_v14  ;;  %v472_v37 = vpack.c.bf16 %v387_v23, %v386_v22  ;;  %v255_v38 = vadd.f32 %v5040_v7, %v120_v26  ;;  %v70_v40 = vld [vmem:[%s7408_s0 + $0x130] sm:$0xff]  ;;  %v75_v14 = vld [vmem:[%s7408_s0 + $0x158] sm:$0xff]  ;;  %v1440_v22 = vld [vmem:[%s7411_s5] sm:$0xff] }
  0x28   :  { %v444_v6 = vpack.c.bf16 %v331_v53, %v330_v47  ;;  %v470_v9 = vpack.c.bf16 %v383_v56, %v382_v55  ;;  %v336_v41 = vmul.f32 %v5045_v8, %v201_v29  ;;  %v337_v42 = vmul.f32 %v5045_v8, %v202_v30  ;;  %v72_v47 = vld [vmem:[%s7408_s0 + $0x140] sm:$0xff]  ;;  %v123_v55 = vld [vmem:[%s7408_s0 + $0x2d8] sm:$0xff]  ;;  %v1441_v23 = vld [vmem:[%s7411_s5 + $0x8] sm:$0xff] }
  0x29   :  { %v388_v49 = vmul.f32 %v5045_v8, %v253_v34  ;;  %v389_v50 = vmul.f32 %v5045_v8, %v254_v35  ;;  %v339_v51 = vmul.f32 %v5045_v8, %v204_v32  ;;  %v390_v52 = vmul.f32 %v5045_v8, %v255_v38  ;;  %v77_v25 = vld [vmem:[%s7408_s0 + $0x168] sm:$0xff]  ;;  %v128_v26 = vld [vmem:[%s7408_s0 + $0x300] sm:$0xff] }
  0x2a   :  { %v205_v56 = vadd.f32 %v5040_v7, %v70_v40  ;;  %v1449_v60 = vpack.c.bf16 %v1443_v45, %v1442_v44  ;;  %v207_v61 = vadd.f32 %v5040_v7, %v72_v47  ;;  %v257_v1 = vadd.f32 %v5040_v7, %v122_v54  ;;  %v79_v44 = vld [vmem:[%s7408_s0 + $0x178] sm:$0xff]  ;;  %v80_v45 = vld [vmem:[%s7408_s0 + $0x180] sm:$0xff] }
  0x2b   :  { %4587 = vmatmul.mubr.msk.bf16.gmra.mxu0 %vm503_vm2, %v439_v63  ;;  %v197_v63 = vadd.f32 %v5040_v7, %v62_v48  ;;  %v73_v48 = vld [vmem:[%s7408_s0 + $0x148] sm:$0xff]  ;;  %v473_v0 = vpack.c.bf16 %v389_v50, %v388_v49  ;;  %v258_v2 = vadd.f32 %v5040_v7, %v123_v55  ;;  %v259_v5 = vadd.f32 %v5040_v7, %v124_v58  ;;  %v132_v54 = vld [vmem:[%s7408_s0 + $0x320] sm:$0xff] }
  0x2c   :  { %4590 = vmatprep.mubr.msk.bf16.mxu0 %vm503_vm2, %v440_v4  ;;  %v249_v4 = vadd.f32 %v5040_v7, %v114_v57  ;;  %v206_v57 = vadd.f32 %v5040_v7, %v71_v43  ;;  %4702 = vmatprep.subr.bf16.mxu1 %v1449_v60  ;;  %v342_v11 = vmul.f32 %v5045_v8, %v207_v61  ;;  %v133_v55 = vld [vmem:[%s7408_s0 + $0x328] sm:$0xff] }
  0x2d   :  { %v332_v12 = vmul.f32 %v5045_v8, %v197_v63  ;;  %v447_v63 = vpack.c.bf16 %v337_v42, %v336_v41  ;;  %4703 = vmatpush3.bf16.msra.mxu1 %v1449_v60  ;;  %v392_v16 = vmul.f32 %v5045_v8, %v257_v1  ;;  %v210_v30 = vadd.f32 %v5040_v7, %v75_v14  ;;  %v78_v42 = vld [vmem:[%s7408_s0 + $0x170] sm:$0xff]  ;;  %v84_v14 = vld [vmem:[%s7408_s0 + $0x1a0] sm:$0xff] }
  0x2e   :  { %4647 = vmatmul.mubr.msk.bf16.gmra.mxu1 %vm503_vm2, %v469_v3  ;;  %v384_v18 = vmul.f32 %v5045_v8, %v249_v4  ;;  %v341_v10 = vmul.f32 %v5045_v8, %v206_v57  ;;  %v262_v34 = vadd.f32 %v5040_v7, %v127_v21  ;;  %v1448_v35 = vpack.c.bf16 %v1441_v23, %v1440_v22  ;;  %v137_v21 = vld [vmem:[%s7408_s0 + $0x348] sm:$0xff] }
  0x2f   :  { %4650 = vmatprep.mubr.msk.bf16.mxu1 %vm503_vm2, %v470_v9  ;;  %v445_v28 = vpack.c.bf16 %v333_v13, %v332_v12  ;;  %v340_v9 = vmul.f32 %v5045_v8, %v205_v56  ;;  %v74_v13 = vld [vmem:[%s7408_s0 + $0x150] sm:$0xff]  ;;  %v263_v38 = vadd.f32 %v5040_v7, %v128_v26  ;;  %v345_v41 = vmul.f32 %v5045_v8, %v210_v30 }
  0x30   :  { %v471_v33 = vpack.c.bf16 %v385_v19, %v384_v18  ;;  %v126_v18 = vld [vmem:[%s7408_s0 + $0x2f0] sm:$0xff]  ;;  %v394_v19 = vmul.f32 %v5045_v8, %v259_v5  ;;  %v209_v29 = vadd.f32 %v5040_v7, %v74_v13  ;;  %4704 = vmatprep.subr.bf16.mxu1 %v1448_v35  ;;  %v213_v56 = vadd.f32 %v5040_v7, %v78_v42 }
  0x31   :  { %v449_v24 = vpack.c.bf16 %v341_v10, %v340_v9  ;;  %4705 = vmatpush3.bf16.msra.mxu1 %v1448_v35  ;;  %v398_v50 = vmul.f32 %v5045_v8, %v263_v38  ;;  %v214_v57 = vadd.f32 %v5040_v7, %v79_v44  ;;  %v215_v58 = vadd.f32 %v5040_v7, %v80_v45  ;;  %v82_v10 = vld [vmem:[%s7408_s0 + $0x190] sm:$0xff]  ;;  %v87_v38 = vld [vmem:[%s7408_s0 + $0x1b8] sm:$0xff] }
  0x32   :  { %v344_v40 = vmul.f32 %v5045_v8, %v209_v29  ;;  %v219_v26 = vadd.f32 %v5040_v7, %v84_v14  ;;  %v144_v14 = vld [vmem:[%s7408_s0 + $0x380] sm:$0xff] }
  0x33   :  { %4591 = vmatmul.mubr.msk.bf16.gmra.mxu0 %vm503_vm2, %v441_v31  ;;  %v203_v31 = vadd.f32 %v5040_v7, %v68_v17  ;;  %v393_v17 = vmul.f32 %v5045_v8, %v258_v2  ;;  %v267_v2 = vadd.f32 %v5040_v7, %v132_v54  ;;  %v349_v5 = vmul.f32 %v5045_v8, %v214_v57 }
  0x34   :  { %4594 = vmatprep.mubr.msk.bf16.mxu0 %vm503_vm2, %v442_v39  ;;  %v256_v39 = vadd.f32 %v5040_v7, %v121_v27  ;;  %v129_v27 = vld [vmem:[%s7408_s0 + $0x308] sm:$0xff]  ;;  %v451_v60 = vpack.c.bf16 %v345_v41, %v344_v40 }
  0x35   :  { %v338_v46 = vmul.f32 %v5045_v8, %v203_v31  ;;  %v211_v31 = vadd.f32 %v5040_v7, %v76_v15  ;;  %v475_v32 = vpack.c.bf16 %v393_v17, %v392_v16  ;;  %v402_v15 = vmul.f32 %v5045_v8, %v267_v2  ;;  %v134_v17 = vld [vmem:[%s7408_s0 + $0x330] sm:$0xff]  ;;  %v89_v40 = vld [vmem:[%s7408_s0 + $0x1c8] sm:$0xff] }
  0x36   :  { %4651 = vmatmul.mubr.msk.bf16.gmra.mxu1 %vm503_vm2, %v471_v33  ;;  %v391_v53 = vmul.f32 %v5045_v8, %v256_v39  ;;  %v261_v33 = vadd.f32 %v5040_v7, %v126_v18  ;;  %v264_v39 = vadd.f32 %v5040_v7, %v129_v27  ;;  %v135_v18 = vld [vmem:[%s7408_s0 + $0x338] sm:$0xff]  ;;  %v90_v2 = vld [vmem:[%s7408_s0 + $0x1d0] sm:$0xff] }
  0x37   :  { %4654 = vmatprep.mubr.msk.bf16.mxu1 %vm503_vm2, %v472_v37  ;;  %v448_v3 = vpack.c.bf16 %v339_v51, %v338_v46  ;;  %v346_v43 = vmul.f32 %v5045_v8, %v211_v31  ;;  %v81_v46 = vld [vmem:[%s7408_s0 + $0x188] sm:$0xff]  ;;  %v270_v29 = vadd.f32 %v5040_v7, %v135_v18  ;;  %v225_v18 = vadd.f32 %v5040_v7, %v90_v2 }
  0x38   :  { %v474_v4 = vpack.c.bf16 %v391_v53, %v390_v52  ;;  %v396_v47 = vmul.f32 %v5045_v8, %v261_v33  ;;  %v399_v51 = vmul.f32 %v5045_v8, %v264_v39  ;;  %v130_v52 = vld [vmem:[%s7408_s0 + $0x310] sm:$0xff]  ;;  %v131_v53 = vld [vmem:[%s7408_s0 + $0x318] sm:$0xff]  ;;  %v272_v33 = vadd.f32 %v5040_v7, %v137_v21  ;;  %v88_v39 = vld [vmem:[%s7408_s0 + $0x1c0] sm:$0xff] }
  0x39   :  { %v405_v42 = vmul.f32 %v5045_v8, %v270_v29 }
  0x3a   :  { %v478_v1 = vpack.c.bf16 %v399_v51, %v398_v50  ;;  %v407_v45 = vmul.f32 %v5045_v8, %v272_v33  ;;  %v222_v51 = vadd.f32 %v5040_v7, %v87_v38  ;;  %v146_v38 = vld [vmem:[%s7408_s0 + $0x390] sm:$0xff] }
  0x3b   :  { %4595 = vmatmul.mubr.msk.bf16.gmra.mxu0 %vm503_vm2, %v443_v62  ;;  %v208_v62 = vadd.f32 %v5040_v7, %v73_v48  ;;  %v397_v48 = vmul.f32 %v5045_v8, %v262_v34 }
  0x3c   :  { %4598 = vmatprep.mubr.msk.bf16.mxu0 %vm503_vm2, %v444_v6  ;;  %v260_v6 = vadd.f32 %v5040_v7, %v125_v59  ;;  %v216_v59 = vadd.f32 %v5040_v7, %v81_v46  ;;  %v138_v46 = vld [vmem:[%s7408_s0 + $0x350] sm:$0xff] }
  0x3d   :  { %v343_v12 = vmul.f32 %v5045_v8, %v208_v62  ;;  %v477_v61 = vpack.c.bf16 %v397_v48, %v396_v47  ;;  %v265_v62 = vadd.f32 %v5040_v7, %v130_v52  ;;  %v139_v47 = vld [vmem:[%s7408_s0 + $0x358] sm:$0xff]  ;;  %v140_v48 = vld [vmem:[%s7408_s0 + $0x360] sm:$0xff]  ;;  %v223_v52 = vadd.f32 %v5040_v7, %v88_v39 }
  0x3e   :  { %4655 = vmatmul.mubr.msk.bf16.gmra.mxu1 %vm503_vm2, %v473_v0  ;;  %v395_v20 = vmul.f32 %v5045_v8, %v260_v6  ;;  %v350_v6 = vmul.f32 %v5045_v8, %v215_v58  ;;  %v351_v9 = vmul.f32 %v5045_v8, %v216_v59  ;;  %v274_v57 = vadd.f32 %v5040_v7, %v139_v47  ;;  %v147_v39 = vld [vmem:[%s7408_s0 + $0x398] sm:$0xff] }
  0x3f   :  { %4658 = vmatprep.mubr.msk.bf16.mxu1 %vm503_vm2, %v474_v4  ;;  %v348_v4 = vmul.f32 %v5045_v8, %v213_v56  ;;  %v273_v56 = vadd.f32 %v5040_v7, %v138_v46  ;;  %v281_v46 = vadd.f32 %v5040_v7, %v146_v38  ;;  %v282_v47 = vadd.f32 %v5040_v7, %v147_v39  ;;  %v2522_v38 = vld [vmem:[%s7412_s7 + $0x28] sm:$0xff] }
  0x40   :  { %v476_v37 = vpack.c.bf16 %v395_v20, %v394_v19  ;;  %v85_v19 = vld [vmem:[%s7408_s0 + $0x1a8] sm:$0xff]  ;;  %v136_v20 = vld [vmem:[%s7408_s0 + $0x340] sm:$0xff]  ;;  %v454_v23 = vpack.c.bf16 %v351_v9, %v350_v6 }
  0x41   :  { %v453_v22 = vpack.c.bf16 %v349_v5, %v348_v4  ;;  %v220_v30 = vadd.f32 %v5040_v7, %v85_v19  ;;  %v408_v4 = vmul.f32 %v5045_v8, %v273_v56  ;;  %v409_v5 = vmul.f32 %v5045_v8, %v274_v57  ;;  %v92_v6 = vld [vmem:[%s7408_s0 + $0x1e0] sm:$0xff] }
  0x43   :  { %4599 = vmatmul.mubr.msk.bf16.gmra.mxu0 %vm503_vm2, %v445_v28  ;;  %v450_v28 = vpack.c.bf16 %v343_v12, %v342_v11  ;;  %v83_v11 = vld [vmem:[%s7408_s0 + $0x198] sm:$0xff]  ;;  %v400_v12 = vmul.f32 %v5045_v8, %v265_v62  ;;  %v483_v21 = vpack.c.bf16 %v409_v5, %v408_v4 }
  0x44   :  { %4602 = vmatprep.mubr.msk.bf16.mxu0 %vm503_vm2, %v446_v36  ;;  %v212_v36 = vadd.f32 %v5040_v7, %v77_v25  ;;  %v218_v25 = vadd.f32 %v5040_v7, %v83_v11  ;;  %v142_v11 = vld [vmem:[%s7408_s0 + $0x370] sm:$0xff] }
  0x46   :  { %4659 = vmatmul.mubr.msk.bf16.gmra.mxu1 %vm503_vm2, %v475_v32  ;;  %v347_v49 = vmul.f32 %v5045_v8, %v212_v36  ;;  %v271_v32 = vadd.f32 %v5040_v7, %v136_v20  ;;  %v353_v35 = vmul.f32 %v5045_v8, %v218_v25  ;;  %v86_v36 = vld [vmem:[%s7408_s0 + $0x1b0] sm:$0xff]  ;;  %v227_v20 = vadd.f32 %v5040_v7, %v92_v6 }
  0x47   :  { %4662 = vmatprep.mubr.msk.bf16.mxu1 %vm503_vm2, %v476_v37  ;;  %v354_v37 = vmul.f32 %v5045_v8, %v219_v26  ;;  %v221_v50 = vadd.f32 %v5040_v7, %v86_v36  ;;  %v279_v26 = vadd.f32 %v5040_v7, %v144_v14 }
  0x48   :  { %v452_v0 = vpack.c.bf16 %v347_v49, %v346_v43  ;;  %v355_v43 = vmul.f32 %v5045_v8, %v220_v30  ;;  %v406_v44 = vmul.f32 %v5045_v8, %v271_v32  ;;  %v141_v49 = vld [vmem:[%s7408_s0 + $0x368] sm:$0xff]  ;;  %v362_v30 = vmul.f32 %v5045_v8, %v227_v20  ;;  %v4974_v20 = vld [vmem:[%s7410_s2] ss:$0 sm:$0xff] }
  0x49   :  { %v356_v62 = vmul.f32 %v5045_v8, %v221_v50  ;;  %v414_v36 = vmul.f32 %v5045_v8, %v279_v26  ;;  %v159_v26 = vld [vmem:[%s7408_s0 + $0x3f8] sm:$0xff] }
  0x4a   :  { %v456_v58 = vpack.c.bf16 %v355_v43, %v354_v37  ;;  %v482_v59 = vpack.c.bf16 %v407_v45, %v406_v44 }
  0x4b   :  { %4603 = vmatmul.mubr.msk.bf16.gmra.mxu0 %vm503_vm2, %v447_v63  ;;  %v266_v63 = vadd.f32 %v5040_v7, %v131_v53  ;;  %v224_v53 = vadd.f32 %v5040_v7, %v89_v40  ;;  %v148_v40 = vld [vmem:[%s7408_s0 + $0x3a0] sm:$0xff] }
  0x4c   :  { %4606 = vmatprep.mubr.msk.bf16.mxu0 %vm503_vm2, %v448_v3  ;;  %v268_v3 = vadd.f32 %v5040_v7, %v133_v55  ;;  %v283_v50 = vadd.f32 %v5040_v7, %v148_v40 }
  0x4d   :  { %v401_v13 = vmul.f32 %v5045_v8, %v266_v63  ;;  %v357_v63 = vmul.f32 %v5045_v8, %v222_v51 }
  0x4e   :  { %4663 = vmatmul.mubr.msk.bf16.gmra.mxu1 %vm503_vm2, %v477_v61  ;;  %v403_v16 = vmul.f32 %v5045_v8, %v268_v3  ;;  %v276_v61 = vadd.f32 %v5040_v7, %v141_v49  ;;  %v91_v3 = vld [vmem:[%s7408_s0 + $0x1d8] sm:$0xff]  ;;  %v418_v56 = vmul.f32 %v5045_v8, %v283_v50 }
  0x4f   :  { %4666 = vmatprep.mubr.msk.bf16.mxu1 %vm503_vm2, %v478_v1  ;;  %v479_v27 = vpack.c.bf16 %v401_v13, %v400_v12  ;;  %v359_v1 = vmul.f32 %v5045_v8, %v224_v53  ;;  %v143_v12 = vld [vmem:[%s7408_s0 + $0x378] sm:$0xff]  ;;  %v93_v13 = vld [vmem:[%s7408_s0 + $0x1e8] sm:$0xff]  ;;  %v226_v19 = vadd.f32 %v5040_v7, %v91_v3 }
  0x50   :  { %v480_v31 = vpack.c.bf16 %v403_v16, %v402_v15  ;;  %v145_v15 = vld [vmem:[%s7408_s0 + $0x388] sm:$0xff]  ;;  %v457_v16 = vpack.c.bf16 %v357_v63, %v356_v62 }
  0x51   :  { %v361_v29 = vmul.f32 %v5045_v8, %v226_v19 }
  0x53   :  { %4607 = vmatmul.mubr.msk.bf16.gmra.mxu0 %vm503_vm2, %v449_v24  ;;  %v217_v24 = vadd.f32 %v5040_v7, %v82_v10  ;;  %v411_v10 = vmul.f32 %v5045_v8, %v276_v61  ;;  %v153_v61 = vld [vmem:[%s7408_s0 + $0x3c8] sm:$0xff] }
  0x54   :  { %4610 = vmatprep.mubr.msk.bf16.mxu0 %vm503_vm2, %v450_v28  ;;  %v269_v28 = vadd.f32 %v5040_v7, %v134_v17  ;;  %v288_v4 = vadd.f32 %v5040_v7, %v153_v61 }
  0x55   :  { %v352_v34 = vmul.f32 %v5045_v8, %v217_v24  ;;  %v228_v24 = vadd.f32 %v5040_v7, %v93_v13  ;;  %v157_v13 = vld [vmem:[%s7408_s0 + $0x3e8] sm:$0xff] }
  0x56   :  { %4667 = vmatmul.mubr.msk.bf16.gmra.mxu1 %vm503_vm2, %v479_v27  ;;  %v404_v41 = vmul.f32 %v5045_v8, %v269_v28  ;;  %v280_v27 = vadd.f32 %v5040_v7, %v145_v15  ;;  %v360_v28 = vmul.f32 %v5045_v8, %v225_v18 }
  0x57   :  { %4670 = vmatprep.mubr.msk.bf16.mxu1 %vm503_vm2, %v480_v31  ;;  %v455_v54 = vpack.c.bf16 %v353_v35, %v352_v34  ;;  %v94_v31 = vld [vmem:[%s7408_s0 + $0x1f0] sm:$0xff]  ;;  %v363_v34 = vmul.f32 %v5045_v8, %v228_v24  ;;  %v95_v35 = vld [vmem:[%s7408_s0 + $0x1f8] sm:$0xff] }
  0x58   :  { %v481_v55 = vpack.c.bf16 %v405_v42, %v404_v41  ;;  %v415_v37 = vmul.f32 %v5045_v8, %v280_v27  ;;  %v149_v41 = vld [vmem:[%s7408_s0 + $0x3a8] sm:$0xff]  ;;  %v459_v42 = vpack.c.bf16 %v361_v29, %v360_v28  ;;  %v229_v43 = vadd.f32 %v5040_v7, %v94_v31 }
  0x59   :  { %v230_v44 = vadd.f32 %v5040_v7, %v95_v35  ;;  %v284_v51 = vadd.f32 %v5040_v7, %v149_v41  ;;  %v2524_v35 = vld [vmem:[%s7412_s7 + $0x38] sm:$0xff] }
  0x5a   :  { %v486_v49 = vpack.c.bf16 %v415_v37, %v414_v36  ;;  %v2521_v37 = vld [vmem:[%s7412_s7 + $0x20] sm:$0xff] }
  0x5b   :  { %4611 = vmatmul.mubr.msk.bf16.gmra.mxu0 %vm503_vm2, %v451_v60  ;;  %v275_v60 = vadd.f32 %v5040_v7, %v140_v48  ;;  %v460_v48 = vpack.c.bf16 %v363_v34, %v362_v30  ;;  %v365_v53 = vmul.f32 %v5045_v8, %v230_v44  ;;  %v419_v57 = vmul.f32 %v5045_v8, %v284_v51  ;;  %v2523_v34 = vld [vmem:[%s7412_s7 + $0x30] sm:$0xff] }
  0x5c   :  { %4614 = vmatprep.mubr.msk.bf16.mxu0 %vm503_vm2, %v452_v0  ;;  %v358_v0 = vmul.f32 %v5045_v8, %v223_v52  ;;  %v364_v52 = vmul.f32 %v5045_v8, %v229_v43  ;;  %v2528_v36 = vpack.c.bf16 %v2524_v35, %v2523_v34  ;;  %v2527_v39 = vpack.c.bf16 %v2522_v38, %v2521_v37 }
  0x5d   :  { %v410_v9 = vmul.f32 %v5045_v8, %v275_v60  ;;  %v152_v60 = vld [vmem:[%s7408_s0 + $0x3c0] sm:$0xff]  ;;  %v488_v2 = vpack.c.bf16 %v419_v57, %v418_v56 }
  0x5e   :  { %4671 = vmatmul.mubr.msk.bf16.gmra.mxu1 %vm503_vm2, %v481_v55  ;;  %v458_v17 = vpack.c.bf16 %v359_v1, %v358_v0  ;;  %v417_v55 = vmul.f32 %v5045_v8, %v282_v47  ;;  %v461_v62 = vpack.c.bf16 %v365_v53, %v364_v52  ;;  %v287_v3 = vadd.f32 %v5040_v7, %v152_v60 }
  0x5f   :  { %4674 = vmatprep.mubr.msk.bf16.mxu1 %vm503_vm2, %v482_v59  ;;  %v484_v25 = vpack.c.bf16 %v411_v10, %v410_v9  ;;  %v151_v59 = vld [vmem:[%s7408_s0 + $0x3b8] sm:$0xff]  ;;  %v423_v10 = vmul.f32 %v5045_v8, %v288_v4  ;;  %4834 = vmatprep.subr.bf16.mxu0 %v2528_v36 }
  0x60   :  { %v286_v1 = vadd.f32 %v5040_v7, %v151_v59  ;;  %v422_v9 = vmul.f32 %v5045_v8, %v287_v3  ;;  %4835 = vmatpush3.bf16.msra.mxu0 %v2528_v36 }
  0x61   :  { %4836 = vmatprep.subr.bf16.mxu0 %v2527_v39 }
  0x62   :  { %v421_v6 = vmul.f32 %v5045_v8, %v286_v1 }
  0x63   :  { %4615 = vmatmul.mubr.msk.bf16.gmra.mxu0 %vm503_vm2, %v453_v22  ;;  %v277_v22 = vadd.f32 %v5040_v7, %v142_v11  ;;  %v154_v11 = vld [vmem:[%s7408_s0 + $0x3d0] sm:$0xff] }
  0x64   :  { %4618 = vmatprep.mubr.msk.bf16.mxu0 %vm503_vm2, %v454_v23  ;;  %v278_v23 = vadd.f32 %v5040_v7, %v143_v12  ;;  %v156_v12 = vld [vmem:[%s7408_s0 + $0x3e0] sm:$0xff]  ;;  %4837 = vmatpush3.bf16.msra.mxu0 %v2527_v39 }
  0x65   :  { %v412_v32 = vmul.f32 %v5045_v8, %v277_v22 }
  0x66   :  { %4675 = vmatmul.mubr.msk.bf16.gmra.mxu1 %vm503_vm2, %v483_v21  ;;  %v413_v33 = vmul.f32 %v5045_v8, %v278_v23 }
  0x67   :  { %4678 = vmatprep.mubr.msk.bf16.mxu1 %vm503_vm2, %v484_v25  ;;  %v158_v25 = vld [vmem:[%s7408_s0 + $0x3f0] sm:$0xff] }
  0x68   :  { %v485_v45 = vpack.c.bf16 %v413_v33, %v412_v32 }
  0x6b   :  { %4619 = vmatmul.mubr.msk.bf16.gmra.mxu0 %vm503_vm2, %v455_v54  ;;  %v416_v54 = vmul.f32 %v5045_v8, %v281_v46 }
  0x6c   :  { %4622 = vmatprep.mubr.msk.bf16.mxu0 %vm503_vm2, %v456_v58  ;;  %v150_v58 = vld [vmem:[%s7408_s0 + $0x3b0] sm:$0xff] }
  0x6d   :  { %v487_v63 = vpack.c.bf16 %v417_v55, %v416_v54  ;;  %v285_v0 = vadd.f32 %v5040_v7, %v150_v58  ;;  %v155_v7 = vld [vmem:[%s7408_s0 + $0x3d8] sm:$0xff] }
  0x6e   :  { %4679 = vmatmul.mubr.msk.bf16.gmra.mxu1 %vm503_vm2, %v485_v45 }
  0x6f   :  { %4682 = vmatprep.mubr.msk.bf16.mxu1 %vm503_vm2, %v486_v49  ;;  %v420_v5 = vmul.f32 %v5045_v8, %v285_v0  ;;  %v4973_v8 = vld [vmem:[%s7409_s1] ss:$0 sm:$0xff] }
  0x70   :  { %v289_v15 = vadd.f32 %v4973_v8, %v154_v11  ;;  %v291_v18 = vadd.f32 %v4973_v8, %v156_v12  ;;  %v292_v19 = vadd.f32 %v4973_v8, %v157_v13  ;;  %v293_v28 = vadd.f32 %v4973_v8, %v158_v25 }
  0x71   :  { %v489_v14 = vpack.c.bf16 %v421_v6, %v420_v5  ;;  %v294_v29 = vadd.f32 %v4973_v8, %v159_v26 }
  0x72   :  { %v424_v21 = vmul.f32 %v4974_v20, %v289_v15  ;;  %v426_v23 = vmul.f32 %v4974_v20, %v291_v18  ;;  %v427_v24 = vmul.f32 %v4974_v20, %v292_v19  ;;  %v428_v31 = vmul.f32 %v4974_v20, %v293_v28 }
  0x73   :  { %4623 = vmatmul.mubr.msk.bf16.gmra.mxu0 %vm503_vm2, %v457_v16  ;;  %v290_v16 = vadd.f32 %v4973_v8, %v155_v7  ;;  %v429_v32 = vmul.f32 %v4974_v20, %v294_v29  ;;  %v2520_v8 = vld [vmem:[%s7412_s7 + $0x18] sm:$0xff] }
  0x74   :  { %4626 = vmatprep.mubr.msk.bf16.mxu0 %vm503_vm2, %v458_v17  ;;  %v490_v17 = vpack.c.bf16 %v423_v10, %v422_v9  ;;  %v492_v30 = vpack.c.bf16 %v427_v24, %v426_v23 }
  0x75   :  { %v425_v22 = vmul.f32 %v4974_v20, %v290_v16  ;;  %v493_v33 = vpack.c.bf16 %v429_v32, %v428_v31 }
  0x76   :  { %4683 = vmatmul.mubr.msk.bf16.gmra.mxu1 %vm503_vm2, %v487_v63 }
  0x77   :  { %4686 = vmatprep.mubr.msk.bf16.mxu1 %vm503_vm2, %v488_v2  ;;  %v491_v27 = vpack.c.bf16 %v425_v22, %v424_v21 }
  0x7b   :  { %4627 = vmatmul.mubr.msk.bf16.gmra.mxu0 %vm503_vm2, %v459_v42  ;;  %v5778_v42 = vld [vmem:[%s7413_s4] ss:$0 sm:$0xff] }
  0x7c   :  { %4630 = vmatprep.mubr.msk.bf16.mxu0 %vm503_vm2, %v460_v48 }
  0x7e   :  { %4687 = vmatmul.mubr.msk.bf16.gmra.mxu1 %vm503_vm2, %v489_v14  ;;  %v2519_v14 = vld [vmem:[%s7412_s7 + $0x10] sm:$0xff] }
  0x7f   :  { %4690 = vmatprep.mubr.msk.bf16.mxu1 %vm503_vm2, %v490_v17  ;;  %v2526_v18 = vpack.c.bf16 %v2520_v8, %v2519_v14 }
  0x81   :  { %4838 = vmatprep.subr.bf16.mxu0 %v2526_v18 }
  0x82   :  { %4839 = vmatpush3.bf16.msra.mxu0 %v2526_v18 }
  0x83   :  { %4631 = vmatmul.mubr.msk.bf16.gmra.mxu0 %vm503_vm2, %v461_v62 }
  0x86   :  { %4691 = vmatmul.mubr.msk.bf16.gmra.mxu1 %vm503_vm2, %v491_v27 }
  0x87   :  { %4694 = vmatprep.mubr.msk.bf16.mxu1 %vm503_vm2, %v492_v30 }
  0x8e   :  { %4695 = vmatmul.mubr.msk.bf16.gmra.mxu1 %vm503_vm2, %v493_v33 }
  0xcb   :  { %v4572_v40 = vpop.f32.mrf.mxu0 }
  0xcc   :  { %v746_v46 = vadd.f32 %v4572_v40, %v5778_v42 }
  0xcd   :  { %v737_v41 = vpop.f32.mrf.mxu0 }
  0xce   :  { %v738_v44 = vadd.f32 %v5778_v42, %v737_v41  ;;  %v1250_v53 = vmax.f32 %v746_v46, 0.0 }
  0xcf   :  { %v4573_v43 = vpop.f32.mrf.mxu0 }
  0xd0   :  { %v749_v45 = vadd.f32 %v4573_v43, %v5778_v42  ;;  %v1248_v51 = vmax.f32 %v738_v44, 0.0 }
  0xd1   :  { %v740_v47 = vpop.f32.mrf.mxu0 }
  0xd2   :  { %v741_v48 = vadd.f32 %v5778_v42, %v740_v47  ;;  %v1251_v49 = vmax.f32 %v749_v45, 0.0 }
  0xd3   :  { %v4576_v50 = vpop.f32.mrf.mxu0 }
  0xd4   :  { %v1249_v52 = vmax.f32 %v741_v48, 0.0  ;;  %v1377_v56 = vpack.c.bf16 %v1251_v49, %v1250_v53  ;;  %v762_v60 = vadd.f32 %v4576_v50, %v5778_v42 }
  0xd5   :  { %v753_v54 = vpop.f32.mrf.mxu0 }
  0xd6   :  { %v1376_v55 = vpack.c.bf16 %v1249_v52, %v1248_v51  ;;  %v754_v58 = vadd.f32 %v5778_v42, %v753_v54  ;;  %v1254_v3 = vmax.f32 %v762_v60, 0.0  ;;  %v5802_v17 = vpop.f32.mrf.mxu1 }
  0xd7   :  { %v4577_v57 = vpop.f32.mrf.mxu0 }
  0xd8   :  { %v765_v59 = vadd.f32 %v4577_v57, %v5778_v42  ;;  %4706 = vmatprep.mubr.msk.bf16.mxu1 %vm1459_vm3, %v1376_v55  ;;  %v1252_v1 = vmax.f32 %v754_v58, 0.0  ;;  %v5804_v23 = vpop.f32.mrf.mxu1 }
  0xd9   :  { %v756_v61 = vpop.f32.mrf.mxu0  ;;  %4707 = vmatmul.mubr.msk.bf16.vlgmr.msra.gmra.mxu1 %vm1459_vm3, %v1377_v56 }
  0xda   :  { %v757_v62 = vadd.f32 %v5778_v42, %v756_v61  ;;  %v1255_v63 = vmax.f32 %v765_v59, 0.0  ;;  %v5806_v27 = vpop.f32.mrf.mxu1 }
  0xdb   :  { %v4580_v0 = vpop.f32.mrf.mxu0 }
  0xdc   :  { %v1253_v2 = vmax.f32 %v757_v62, 0.0  ;;  %v1379_v6 = vpack.c.bf16 %v1255_v63, %v1254_v3  ;;  %v778_v7 = vadd.f32 %v4580_v0, %v5778_v42  ;;  %v5813_v32 = vpop.f32.mrf.mxu1 }
  0xdd   :  { %v769_v4 = vpop.f32.mrf.mxu0 }
  0xde   :  { %v1378_v5 = vpack.c.bf16 %v1253_v2, %v1252_v1  ;;  %v770_v10 = vadd.f32 %v5778_v42, %v769_v4  ;;  %v1258_v21 = vmax.f32 %v778_v7, 0.0  ;;  %v5816_v36 = vpop.f32.mrf.mxu1 }
  0xdf   :  { %v4581_v9 = vpop.f32.mrf.mxu0 }
  0xe0   :  { %v781_v11 = vadd.f32 %v4581_v9, %v5778_v42  ;;  %4710 = vmatprep.mubr.msk.bf16.mxu1 %vm1459_vm3, %v1378_v5  ;;  %v1256_v19 = vmax.f32 %v770_v10, 0.0  ;;  %v5818_v41 = vpop.f32.mrf.mxu1 }
  0xe1   :  { %v772_v12 = vpop.f32.mrf.mxu0  ;;  %4711 = vmatmul.mubr.msk.bf16.gmra.mxu1 %vm1459_vm3, %v1379_v6 }
  0xe2   :  { %v773_v13 = vadd.f32 %v5778_v42, %v772_v12  ;;  %v1259_v15 = vmax.f32 %v781_v11, 0.0  ;;  %v5820_v46 = vpop.f32.mrf.mxu1 }
  0xe3   :  { %v4584_v16 = vpop.f32.mrf.mxu0 }
  0xe4   :  { %v1257_v20 = vmax.f32 %v773_v13, 0.0  ;;  %v1381_v25 = vpack.c.bf16 %v1259_v15, %v1258_v21  ;;  %v794_v30 = vadd.f32 %v4584_v16, %v5778_v42  ;;  %v5827_v51 = vpop.f32.mrf.mxu1 }
  0xe5   :  { %v785_v22 = vpop.f32.mrf.mxu0 }
  0xe6   :  { %v1380_v24 = vpack.c.bf16 %v1257_v20, %v1256_v19  ;;  %v786_v28 = vadd.f32 %v5778_v42, %v785_v22  ;;  %v1262_v39 = vmax.f32 %v794_v30, 0.0  ;;  %v5830_v55 = vpop.f32.mrf.mxu1 }
  0xe7   :  { %v4585_v26 = vpop.f32.mrf.mxu0 }
  0xe8   :  { %v797_v29 = vadd.f32 %v4585_v26, %v5778_v42  ;;  %4714 = vmatprep.mubr.msk.bf16.mxu1 %vm1459_vm3, %v1380_v24  ;;  %v1260_v37 = vmax.f32 %v786_v28, 0.0  ;;  %v5832_v60 = vpop.f32.mrf.mxu1  ;;  %v2517_v28 = vld [vmem:[%s7412_s7] sm:$0xff] }
  0xe9   :  { %v788_v31 = vpop.f32.mrf.mxu0  ;;  %4715 = vmatmul.mubr.msk.bf16.gmra.mxu1 %vm1459_vm3, %v1381_v25 }
  0xea   :  { %v789_v33 = vadd.f32 %v5778_v42, %v788_v31  ;;  %v1263_v34 = vmax.f32 %v797_v29, 0.0  ;;  %v5834_v0 = vpop.f32.mrf.mxu1  ;;  %v2518_v29 = vld [vmem:[%s7412_s7 + $0x8] sm:$0xff] }
  0xeb   :  { %v4588_v35 = vpop.f32.mrf.mxu0 }
  0xec   :  { %v1261_v38 = vmax.f32 %v789_v33, 0.0  ;;  %v1383_v44 = vpack.c.bf16 %v1263_v34, %v1262_v39  ;;  %v810_v49 = vadd.f32 %v4588_v35, %v5778_v42  ;;  %v5841_v5 = vpop.f32.mrf.mxu1  ;;  %v2525_v34 = vpack.c.bf16 %v2518_v29, %v2517_v28 }
  0xed   :  { %v801_v40 = vpop.f32.mrf.mxu0 }
  0xee   :  { %v1382_v43 = vpack.c.bf16 %v1261_v38, %v1260_v37  ;;  %v802_v47 = vadd.f32 %v5778_v42, %v801_v40  ;;  %v1266_v58 = vmax.f32 %v810_v49, 0.0  ;;  %v5844_v11 = vpop.f32.mrf.mxu1  ;;  %4840 = vmatprep.subr.bf16.mxu0 %v2525_v34 }
  0xef   :  { %v4589_v45 = vpop.f32.mrf.mxu0  ;;  %4841 = vmatpush3.bf16.msra.mxu0 %v2525_v34 }
  0xf0   :  { %v813_v48 = vadd.f32 %v4589_v45, %v5778_v42  ;;  %4718 = vmatprep.mubr.msk.bf16.mxu1 %vm1459_vm3, %v1382_v43  ;;  %v1264_v56 = vmax.f32 %v802_v47, 0.0  ;;  %v5846_v8 = vpop.f32.mrf.mxu1 }
  0xf1   :  { %v804_v50 = vpop.f32.mrf.mxu0  ;;  %4719 = vmatmul.mubr.msk.bf16.gmra.mxu1 %vm1459_vm3, %v1383_v44 }
  0xf2   :  { %v805_v52 = vadd.f32 %v5778_v42, %v804_v50  ;;  %v1267_v53 = vmax.f32 %v813_v48, 0.0  ;;  %v5848_v19 = vpop.f32.mrf.mxu1 }
  0xf3   :  { %v4592_v54 = vpop.f32.mrf.mxu0 }
  0xf4   :  { %v1265_v57 = vmax.f32 %v805_v52, 0.0  ;;  %v1385_v62 = vpack.c.bf16 %v1267_v53, %v1266_v58  ;;  %v826_v3 = vadd.f32 %v4592_v54, %v5778_v42  ;;  %v5855_v25 = vpop.f32.mrf.mxu1 }
  0xf5   :  { %v817_v59 = vpop.f32.mrf.mxu0 }
  0xf6   :  { %v1384_v61 = vpack.c.bf16 %v1265_v57, %v1264_v56  ;;  %v818_v1 = vadd.f32 %v5778_v42, %v817_v59  ;;  %v1270_v13 = vmax.f32 %v826_v3, 0.0  ;;  %v5864_v33 = vpop.f32.mrf.mxu1 }
  0xf7   :  { %v4593_v63 = vpop.f32.mrf.mxu0 }
  0xf8   :  { %v829_v2 = vadd.f32 %v4593_v63, %v5778_v42  ;;  %4722 = vmatprep.mubr.msk.bf16.mxu1 %vm1459_vm3, %v1384_v61  ;;  %v1268_v7 = vmax.f32 %v818_v1, 0.0  ;;  %v5866_v40 = vpop.f32.mrf.mxu1 }
  0xf9   :  { %v820_v4 = vpop.f32.mrf.mxu0  ;;  %4723 = vmatmul.mubr.msk.bf16.gmra.mxu1 %vm1459_vm3, %v1385_v62 }
  0xfa   :  { %v821_v6 = vadd.f32 %v5778_v42, %v820_v4  ;;  %v1271_v9 = vmax.f32 %v829_v2, 0.0  ;;  %v5868_v47 = vpop.f32.mrf.mxu1 }
  0xfb   :  { %v4596_v10 = vpop.f32.mrf.mxu0 }
  0xfc   :  { %v1269_v12 = vmax.f32 %v821_v6, 0.0  ;;  %v1387_v16 = vpack.c.bf16 %v1271_v9, %v1270_v13  ;;  %v842_v22 = vadd.f32 %v4596_v10, %v5778_v42  ;;  %v5875_v53 = vpop.f32.mrf.mxu1 }
  0xfd   :  { %v833_v14 = vpop.f32.mrf.mxu0 }
  0xfe   :  { %v1386_v15 = vpack.c.bf16 %v1269_v12, %v1268_v7  ;;  %v834_v20 = vadd.f32 %v5778_v42, %v833_v14  ;;  %v1274_v38 = vmax.f32 %v842_v22, 0.0  ;;  %v5878_v58 = vpop.f32.mrf.mxu1 }
  0xff   :  { %v4597_v18 = vpop.f32.mrf.mxu0 }
 0x100   :  { %v845_v21 = vadd.f32 %v4597_v18, %v5778_v42  ;;  %4726 = vmatprep.mubr.msk.bf16.mxu1 %vm1459_vm3, %v1386_v15  ;;  %v1272_v35 = vmax.f32 %v834_v20, 0.0  ;;  %v5880_v1 = vpop.f32.mrf.mxu1 }
 0x101   :  { %v836_v24 = vpop.f32.mrf.mxu0  ;;  %4727 = vmatmul.mubr.msk.bf16.gmra.mxu1 %vm1459_vm3, %v1387_v16 }
 0x102   :  { %v837_v26 = vadd.f32 %v5778_v42, %v836_v24  ;;  %v1275_v30 = vmax.f32 %v845_v21, 0.0  ;;  %v5882_v6 = vpop.f32.mrf.mxu1 }
 0x103   :  { %v4600_v31 = vpop.f32.mrf.mxu0 }
 0x104   :  { %v1273_v37 = vmax.f32 %v837_v26, 0.0  ;;  %v1389_v44 = vpack.c.bf16 %v1275_v30, %v1274_v38  ;;  %v858_v50 = vadd.f32 %v4600_v31, %v5778_v42  ;;  %v5889_v13 = vpop.f32.mrf.mxu1 }
 0x105   :  { %v849_v39 = vpop.f32.mrf.mxu0 }
 0x106   :  { %v1388_v43 = vpack.c.bf16 %v1273_v37, %v1272_v35  ;;  %v850_v48 = vadd.f32 %v5778_v42, %v849_v39  ;;  %v1278_v62 = vmax.f32 %v858_v50, 0.0  ;;  %v5892_v18 = vpop.f32.mrf.mxu1 }
 0x107   :  { %v4601_v45 = vpop.f32.mrf.mxu0 }
 0x108   :  { %v861_v49 = vadd.f32 %v4601_v45, %v5778_v42  ;;  %4730 = vmatprep.mubr.msk.bf16.mxu1 %vm1459_vm3, %v1388_v43  ;;  %v1276_v59 = vmax.f32 %v850_v48, 0.0  ;;  %v5894_v26 = vpop.f32.mrf.mxu1 }
 0x109   :  { %v852_v52 = vpop.f32.mrf.mxu0  ;;  %4731 = vmatmul.mubr.msk.bf16.gmra.mxu1 %vm1459_vm3, %v1389_v44 }
 0x10a   :  { %v853_v54 = vadd.f32 %v5778_v42, %v852_v52  ;;  %v1279_v56 = vmax.f32 %v861_v49, 0.0  ;;  %v5896_v31 = vpop.f32.mrf.mxu1 }
 0x10b   :  { %v4604_v57 = vpop.f32.mrf.mxu0 }
 0x10c   :  { %v1277_v61 = vmax.f32 %v853_v54, 0.0  ;;  %v1391_v3 = vpack.c.bf16 %v1279_v56, %v1278_v62  ;;  %v874_v7 = vadd.f32 %v4604_v57, %v5778_v42  ;;  %v5903_v39 = vpop.f32.mrf.mxu1 }
 0x10d   :  { %v865_v63 = vpop.f32.mrf.mxu0 }
 0x10e   :  { %v1390_v2 = vpack.c.bf16 %v1277_v61, %v1276_v59  ;;  %v866_v9 = vadd.f32 %v5778_v42, %v865_v63  ;;  %v1282_v22 = vmax.f32 %v874_v7, 0.0  ;;  %v5906_v48 = vpop.f32.mrf.mxu1 }
 0x10f   :  { %v4605_v4 = vpop.f32.mrf.mxu0 }
 0x110   :  { %v877_v10 = vadd.f32 %v4605_v4, %v5778_v42  ;;  %4734 = vmatprep.mubr.msk.bf16.mxu1 %vm1459_vm3, %v1390_v2  ;;  %v1280_v20 = vmax.f32 %v866_v9, 0.0  ;;  %v5908_v56 = vpop.f32.mrf.mxu1 }
 0x111   :  { %v868_v12 = vpop.f32.mrf.mxu0  ;;  %4735 = vmatmul.mubr.msk.bf16.gmra.mxu1 %vm1459_vm3, %v1391_v3 }
 0x112   :  { %v869_v14 = vadd.f32 %v5778_v42, %v868_v12  ;;  %v1283_v15 = vmax.f32 %v877_v10, 0.0  ;;  %v5910_v62 = vpop.f32.mrf.mxu1 }
 0x113   :  { %v4608_v16 = vpop.f32.mrf.mxu0 }
 0x114   :  { %v1281_v21 = vmax.f32 %v869_v14, 0.0  ;;  %v1393_v29 = vpack.c.bf16 %v1283_v15, %v1282_v22  ;;  %v890_v37 = vadd.f32 %v4608_v16, %v5778_v42  ;;  %v5917_v9 = vpop.f32.mrf.mxu1 }
 0x115   :  { %v881_v24 = vpop.f32.mrf.mxu0 }
 0x116   :  { %v1392_v28 = vpack.c.bf16 %v1281_v21, %v1280_v20  ;;  %v882_v34 = vadd.f32 %v5778_v42, %v881_v24  ;;  %v1286_v52 = vmax.f32 %v890_v37, 0.0  ;;  %v5920_v14 = vpop.f32.mrf.mxu1 }
 0x117   :  { %v4609_v30 = vpop.f32.mrf.mxu0 }
 0x118   :  { %v893_v35 = vadd.f32 %v4609_v30, %v5778_v42  ;;  %4738 = vmatprep.mubr.msk.bf16.mxu1 %vm1459_vm3, %v1392_v28  ;;  %v1284_v49 = vmax.f32 %v882_v34, 0.0  ;;  %v5922_v22 = vpop.f32.mrf.mxu1 }
 0x119   :  { %v884_v38 = vpop.f32.mrf.mxu0  ;;  %4739 = vmatmul.mubr.msk.bf16.gmra.mxu1 %vm1459_vm3, %v1393_v29 }
 0x11a   :  { %v885_v43 = vadd.f32 %v5778_v42, %v884_v38  ;;  %v1287_v44 = vmax.f32 %v893_v35, 0.0  ;;  %v5924_v30 = vpop.f32.mrf.mxu1 }
 0x11b   :  { %v4612_v45 = vpop.f32.mrf.mxu0 }
 0x11c   :  { %v1285_v50 = vmax.f32 %v885_v43, 0.0  ;;  %v1395_v59 = vpack.c.bf16 %v1287_v44, %v1286_v52  ;;  %v906_v3 = vadd.f32 %v4612_v45, %v5778_v42  ;;  %v5931_v43 = vpop.f32.mrf.mxu1 }
 0x11d   :  { %v897_v54 = vpop.f32.mrf.mxu0 }
 0x11e   :  { %v1394_v57 = vpack.c.bf16 %v1285_v50, %v1284_v49  ;;  %v898_v63 = vadd.f32 %v5778_v42, %v897_v54  ;;  %v1290_v20 = vmax.f32 %v906_v3, 0.0  ;;  %v5934_v50 = vpop.f32.mrf.mxu1 }
 0x11f   :  { %v4613_v61 = vpop.f32.mrf.mxu0 }
 0x120   :  { %v909_v2 = vadd.f32 %v4613_v61, %v5778_v42  ;;  %4742 = vmatprep.mubr.msk.bf16.mxu1 %vm1459_vm3, %v1394_v57  ;;  %v1288_v15 = vmax.f32 %v898_v63, 0.0  ;;  %v5936_v3 = vpop.f32.mrf.mxu1 }
 0x121   :  { %v900_v4 = vpop.f32.mrf.mxu0  ;;  %4743 = vmatmul.mubr.msk.bf16.gmra.mxu1 %vm1459_vm3, %v1395_v59 }
 0x122   :  { %v901_v10 = vadd.f32 %v5778_v42, %v900_v4  ;;  %v1291_v7 = vmax.f32 %v909_v2, 0.0 }
 0x123   :  { %v4616_v12 = vpop.f32.mrf.mxu0 }
 0x124   :  { %v1289_v16 = vmax.f32 %v901_v10, 0.0  ;;  %v1397_v28 = vpack.c.bf16 %v1291_v7, %v1290_v20  ;;  %v922_v37 = vadd.f32 %v4616_v12, %v5778_v42 }
 0x125   :  { %v913_v21 = vpop.f32.mrf.mxu0 }
 0x126   :  { %v1396_v24 = vpack.c.bf16 %v1289_v16, %v1288_v15  ;;  %v914_v34 = vadd.f32 %v5778_v42, %v913_v21  ;;  %v1294_v57 = vmax.f32 %v922_v37, 0.0  ;;  %v5944_v21 = vpop.f32.mrf.mxu1 }
 0x127   :  { %v4617_v29 = vpop.f32.mrf.mxu0 }
 0x128   :  { %v925_v35 = vadd.f32 %v4617_v29, %v5778_v42  ;;  %4746 = vmatprep.mubr.msk.bf16.mxu1 %vm1459_vm3, %v1396_v24  ;;  %v1292_v52 = vmax.f32 %v914_v34, 0.0 }
 0x129   :  { %v916_v38 = vpop.f32.mrf.mxu0  ;;  %4747 = vmatmul.mubr.msk.bf16.gmra.mxu1 %vm1459_vm3, %v1397_v28 }
 0x12a   :  { %v917_v44 = vadd.f32 %v5778_v42, %v916_v38  ;;  %v1295_v45 = vmax.f32 %v925_v35, 0.0 }
 0x12b   :  { %v4620_v49 = vpop.f32.mrf.mxu0 }
 0x12c   :  { %v1293_v54 = vmax.f32 %v917_v44, 0.0  ;;  %v1399_v63 = vpack.c.bf16 %v1295_v45, %v1294_v57  ;;  %v938_v7 = vadd.f32 %v4620_v49, %v5778_v42  ;;  %v5946_v44 = vpop.f32.mrf.mxu1 }
 0x12d   :  { %v929_v59 = vpop.f32.mrf.mxu0 }
 0x12e   :  { %v1398_v61 = vpack.c.bf16 %v1293_v54, %v1292_v52  ;;  %v930_v4 = vadd.f32 %v5778_v42, %v929_v59  ;;  %v1298_v29 = vmax.f32 %v938_v7, 0.0 }
 0x12f   :  { %v4621_v2 = vpop.f32.mrf.mxu0 }
 0x130   :  { %v941_v10 = vadd.f32 %v4621_v2, %v5778_v42  ;;  %4750 = vmatprep.mubr.msk.bf16.mxu1 %vm1459_vm3, %v1398_v61  ;;  %v1296_v24 = vmax.f32 %v930_v4, 0.0 }
 0x131   :  { %v932_v12 = vpop.f32.mrf.mxu0  ;;  %4751 = vmatmul.mubr.msk.bf16.gmra.mxu1 %vm1459_vm3, %v1399_v63  ;;  %v5954_v63 = vpop.f32.mrf.mxu1 }
 0x132   :  { %v933_v15 = vadd.f32 %v5778_v42, %v932_v12  ;;  %v1299_v16 = vmax.f32 %v941_v10, 0.0 }
 0x133   :  { %v4624_v20 = vpop.f32.mrf.mxu0 }
 0x134   :  { %v1297_v28 = vmax.f32 %v933_v15, 0.0  ;;  %v1401_v37 = vpack.c.bf16 %v1299_v16, %v1298_v29  ;;  %v954_v52 = vadd.f32 %v4624_v20, %v5778_v42 }
 0x135   :  { %v945_v34 = vpop.f32.mrf.mxu0 }
 0x136   :  { %v1400_v35 = vpack.c.bf16 %v1297_v28, %v1296_v24  ;;  %v946_v45 = vadd.f32 %v5778_v42, %v945_v34  ;;  %v1302_v10 = vmax.f32 %v954_v52, 0.0  ;;  %v5956_v24 = vpop.f32.mrf.mxu1 }
 0x137   :  { %v4625_v38 = vpop.f32.mrf.mxu0 }
 0x138   :  { %v957_v49 = vadd.f32 %v4625_v38, %v5778_v42  ;;  %4754 = vmatprep.mubr.msk.bf16.mxu1 %vm1459_vm3, %v1400_v35  ;;  %v1300_v2 = vmax.f32 %v946_v45, 0.0  ;;  %v5964_v45 = vpop.f32.mrf.mxu1 }
 0x139   :  { %v948_v54 = vpop.f32.mrf.mxu0  ;;  %4755 = vmatmul.mubr.msk.bf16.gmra.mxu1 %vm1459_vm3, %v1401_v37 }
 0x13a   :  { %v949_v57 = vadd.f32 %v5778_v42, %v948_v54  ;;  %v1303_v59 = vmax.f32 %v957_v49, 0.0 }
 0x13b   :  { %v4628_v61 = vpop.f32.mrf.mxu0 }
 0x13c   :  { %v1301_v4 = vmax.f32 %v949_v57, 0.0  ;;  %v1403_v15 = vpack.c.bf16 %v1303_v59, %v1302_v10  ;;  %v970_v29 = vadd.f32 %v4628_v61, %v5778_v42  ;;  %v5966_v10 = vpop.f32.mrf.mxu1  ;;  %v994_v61 = vadd.f32 %v5778_v42, %v5804_v23 }
 0x13d   :  { %v961_v7 = vpop.f32.mrf.mxu0 }
 0x13e   :  { %v1402_v12 = vpack.c.bf16 %v1301_v4, %v1300_v2  ;;  %v962_v20 = vadd.f32 %v5778_v42, %v961_v7  ;;  %v1306_v54 = vmax.f32 %v970_v29, 0.0  ;;  %v997_v7 = vadd.f32 %v5778_v42, %v5813_v32 }
 0x13f   :  { %v4629_v16 = vpop.f32.mrf.mxu0  ;;  %v1312_v23 = vmax.f32 %v994_v61, 0.0  ;;  %v1013_v61 = vadd.f32 %v5778_v42, %v5827_v51 }
 0x140   :  { %v973_v28 = vadd.f32 %v4629_v16, %v5778_v42  ;;  %4758 = vmatprep.mubr.msk.bf16.mxu1 %vm1459_vm3, %v1402_v12  ;;  %v1304_v49 = vmax.f32 %v962_v20, 0.0 }
 0x141   :  { %v964_v34 = vpop.f32.mrf.mxu0  ;;  %4759 = vmatmul.mubr.msk.bf16.gmra.mxu1 %vm1459_vm3, %v1403_v15 }
 0x142   :  { %v965_v35 = vadd.f32 %v5778_v42, %v964_v34  ;;  %v1307_v37 = vmax.f32 %v973_v28, 0.0  ;;  %v5978_v34 = vpop.f32.mrf.mxu1 }
 0x143   :  { %v4632_v38 = vpop.f32.mrf.mxu0 }
 0x144   :  { %v1305_v52 = vmax.f32 %v965_v35, 0.0  ;;  %v1405_v2 = vpack.c.bf16 %v1307_v37, %v1306_v54  ;;  %v986_v16 = vadd.f32 %v4632_v38, %v5778_v42  ;;  %v1313_v35 = vmax.f32 %v997_v7, 0.0 }
 0x145   :  { %v977_v57 = vpop.f32.mrf.mxu0  ;;  %v1002_v54 = vadd.f32 %v5802_v17, %v5778_v42  ;;  %v1005_v38 = vadd.f32 %v5806_v27, %v5778_v42 }
 0x146   :  { %v1404_v59 = vpack.c.bf16 %v1305_v52, %v1304_v49  ;;  %v978_v12 = vadd.f32 %v5778_v42, %v977_v57  ;;  %v1310_v49 = vmax.f32 %v986_v16, 0.0 }
 0x147   :  { %v4633_v4 = vpop.f32.mrf.mxu0  ;;  %v1314_v17 = vmax.f32 %v1002_v54, 0.0  ;;  %v1315_v7 = vmax.f32 %v1005_v38, 0.0  ;;  %v1042_v38 = vadd.f32 %v5778_v42, %v5846_v8  ;;  %v1053_v8 = vadd.f32 %v5848_v19, %v5778_v42 }
 0x148   :  { %v989_v15 = vadd.f32 %v4633_v4, %v5778_v42  ;;  %4762 = vmatprep.mubr.msk.bf16.mxu1 %vm1459_vm3, %v1404_v59  ;;  %v1308_v37 = vmax.f32 %v978_v12, 0.0  ;;  %v5984_v59 = vpop.f32.mrf.mxu1  ;;  %v1010_v4 = vadd.f32 %v5778_v42, %v5818_v41  ;;  %v1021_v41 = vadd.f32 %v5820_v46, %v5778_v42 }
 0x149   :  { %v980_v20 = vpop.f32.mrf.mxu0  ;;  %4763 = vmatmul.mubr.msk.bf16.gmra.mxu1 %vm1459_vm3, %v1405_v2  ;;  %v1408_v2 = vpack.c.bf16 %v1313_v35, %v1312_v23  ;;  %v1409_v16 = vpack.c.bf16 %v1315_v7, %v1314_v17  ;;  %v1029_v23 = vadd.f32 %v5778_v42, %v5841_v5  ;;  %v1050_v7 = vadd.f32 %v5844_v11, %v5778_v42 }
 0x14a   :  { %v981_v28 = vadd.f32 %v5778_v42, %v980_v20  ;;  %v1311_v29 = vmax.f32 %v989_v15, 0.0  ;;  %v5993_v12 = vpop.f32.mrf.mxu1  ;;  %v1316_v27 = vmax.f32 %v1010_v4, 0.0  ;;  %v1317_v15 = vmax.f32 %v1013_v61, 0.0 }
 0x14b   :  { %v1018_v20 = vadd.f32 %v5816_v36, %v5778_v42 }
 0x14c   :  { %v1309_v32 = vmax.f32 %v981_v28, 0.0  ;;  %v1407_v57 = vpack.c.bf16 %v1311_v29, %v1310_v49  ;;  %v5999_v51 = vpop.f32.mrf.mxu1  ;;  %v1410_v28 = vpack.c.bf16 %v1317_v15, %v1316_v27  ;;  %v1026_v29 = vadd.f32 %v5778_v42, %v5832_v60 }
 0x14d   :  { %v1318_v35 = vmax.f32 %v1018_v20, 0.0  ;;  %v1321_v49 = vmax.f32 %v1029_v23, 0.0  ;;  %v1037_v60 = vadd.f32 %v5834_v0, %v5778_v42  ;;  %v1058_v15 = vadd.f32 %v5778_v42, %v5866_v40 }
 0x14e   :  { %v1406_v52 = vpack.c.bf16 %v1309_v32, %v1308_v37  ;;  %v1319_v37 = vmax.f32 %v1021_v41, 0.0  ;;  %v6007_v32 = vpop.f32.mrf.mxu1  ;;  %v1320_v36 = vmax.f32 %v1026_v29, 0.0  ;;  %v1326_v20 = vmax.f32 %v1050_v7, 0.0 }
 0x14f   :  { %v1323_v4 = vmax.f32 %v1037_v60, 0.0  ;;  %v1327_v41 = vmax.f32 %v1053_v8, 0.0  ;;  %v1328_v11 = vmax.f32 %v1058_v15, 0.0  ;;  %v1066_v23 = vadd.f32 %v5864_v33, %v5778_v42 }
 0x150   :  { %4766 = vmatprep.mubr.msk.bf16.mxu1 %vm1459_vm3, %v1406_v52  ;;  %v1411_v46 = vpack.c.bf16 %v1319_v37, %v1318_v35  ;;  %v1034_v52 = vadd.f32 %v5830_v55, %v5778_v42  ;;  %v6013_v54 = vpop.f32.mrf.mxu1  ;;  %v1412_v5 = vpack.c.bf16 %v1321_v49, %v1320_v36  ;;  %v1324_v55 = vmax.f32 %v1042_v38, 0.0 }
 0x151   :  { %4767 = vmatmul.mubr.msk.bf16.gmra.mxu1 %vm1459_vm3, %v1407_v57  ;;  %v1045_v57 = vadd.f32 %v5778_v42, %v5855_v25  ;;  %v1415_v19 = vpack.c.bf16 %v1327_v41, %v1326_v20  ;;  %v1069_v40 = vadd.f32 %v5868_v47, %v5778_v42  ;;  %v1074_v37 = vadd.f32 %v5778_v42, %v5880_v1 }
 0x152   :  { %4770 = vmatprep.mubr.msk.bf16.mxu1 %vm1459_vm3, %v1408_v2  ;;  %v1322_v2 = vmax.f32 %v1034_v52, 0.0  ;;  %v6021_v61 = vpop.f32.mrf.mxu1  ;;  %v1077_v36 = vadd.f32 %v5778_v42, %v5889_v13  ;;  %v1330_v49 = vmax.f32 %v1066_v23, 0.0  ;;  %v1085_v1 = vadd.f32 %v5882_v6, %v5778_v42 }
 0x153   :  { %v1325_v17 = vmax.f32 %v1045_v57, 0.0  ;;  %v1332_v33 = vmax.f32 %v1074_v37, 0.0  ;;  %v1090_v57 = vadd.f32 %v5778_v42, %v5894_v26  ;;  %v1098_v7 = vadd.f32 %v5892_v18, %v5778_v42 }
 0x154   :  { %v1413_v0 = vpack.c.bf16 %v1323_v4, %v1322_v2  ;;  %v6027_v27 = vpop.f32.mrf.mxu1  ;;  %v1333_v60 = vmax.f32 %v1077_v36, 0.0  ;;  %v1093_v2 = vadd.f32 %v5778_v42, %v5903_v39  ;;  %v1101_v26 = vadd.f32 %v5896_v31, %v5778_v42 }
 0x155   :  { %v1414_v25 = vpack.c.bf16 %v1325_v17, %v1324_v55  ;;  %v1335_v55 = vmax.f32 %v1085_v1, 0.0  ;;  %v1109_v15 = vadd.f32 %v5778_v42, %v5917_v9  ;;  %v1122_v23 = vadd.f32 %v5778_v42, %v5922_v22 }
 0x156   :  { %v1418_v13 = vpack.c.bf16 %v1333_v60, %v1332_v33  ;;  %v1339_v20 = vmax.f32 %v1101_v26, 0.0  ;;  %v1133_v22 = vadd.f32 %v5924_v30, %v5778_v42  ;;  %v1138_v60 = vadd.f32 %v5778_v42, %v5936_v3 }
 0x157   :  { %v1149_v3 = vadd.f32 %v5944_v21, %v5778_v42 }
 0x158   :  { %v1347_v1 = vmax.f32 %v1133_v22, 0.0 }
 0x159   :  { %4771 = vmatmul.mubr.msk.bf16.gmra.mxu1 %vm1459_vm3, %v1409_v16  ;;  %v1061_v16 = vadd.f32 %v5778_v42, %v5875_v53 }
 0x15a   :  { %4774 = vmatprep.mubr.msk.bf16.mxu1 %vm1459_vm3, %v1410_v28  ;;  %v6035_v28 = vpop.f32.mrf.mxu1 }
 0x15b   :  { %v1329_v29 = vmax.f32 %v1061_v16, 0.0  ;;  %v1338_v16 = vmax.f32 %v1098_v7, 0.0  ;;  %v1351_v7 = vmax.f32 %v1149_v3, 0.0 }
 0x15c   :  { %v6041_v35 = vpop.f32.mrf.mxu1 }
 0x15d   :  { %v1416_v53 = vpack.c.bf16 %v1329_v29, %v1328_v11  ;;  %v1341_v11 = vmax.f32 %v1109_v15, 0.0  ;;  %v1421_v31 = vpack.c.bf16 %v1339_v20, %v1338_v16  ;;  %v1114_v29 = vadd.f32 %v5906_v48, %v5778_v42 }
 0x15e   :  { %v6049_v52 = vpop.f32.mrf.mxu1  ;;  %v1344_v48 = vmax.f32 %v1122_v23, 0.0  ;;  %v1173_v23 = vadd.f32 %v5778_v42, %v5999_v51 }
 0x160   :  { %v6055_v38 = vpop.f32.mrf.mxu1 }
 0x161   :  { %4775 = vmatmul.mubr.msk.bf16.gmra.mxu1 %vm1459_vm3, %v1411_v46  ;;  %v1331_v46 = vmax.f32 %v1069_v40, 0.0  ;;  %v1125_v40 = vadd.f32 %v5778_v42, %v5931_v43 }
 0x162   :  { %4778 = vmatprep.mubr.msk.bf16.mxu1 %vm1459_vm3, %v1412_v5  ;;  %v1082_v5 = vadd.f32 %v5878_v58, %v5778_v42  ;;  %v6063_v17 = vpop.f32.mrf.mxu1  ;;  %v1336_v58 = vmax.f32 %v1090_v57, 0.0 }
 0x163   :  { %v1417_v47 = vpack.c.bf16 %v1331_v46, %v1330_v49  ;;  %v1345_v49 = vmax.f32 %v1125_v40, 0.0  ;;  %v1130_v46 = vadd.f32 %v5920_v14, %v5778_v42  ;;  %v1348_v14 = vmax.f32 %v1138_v60, 0.0 }
 0x164   :  { %v1334_v4 = vmax.f32 %v1082_v5, 0.0  ;;  %v6069_v8 = vpop.f32.mrf.mxu1 }
 0x165   :  { %v1424_v43 = vpack.c.bf16 %v1345_v49, %v1344_v48  ;;  %v1346_v5 = vmax.f32 %v1130_v46, 0.0 }
 0x166   :  { %v1419_v6 = vpack.c.bf16 %v1335_v55, %v1334_v4  ;;  %v6077_v41 = vpop.f32.mrf.mxu1 }
 0x167   :  { %v1425_v30 = vpack.c.bf16 %v1347_v1, %v1346_v5 }
 0x169   :  { %4779 = vmatmul.mubr.msk.bf16.gmra.mxu1 %vm1459_vm3, %v1413_v0  ;;  %v1337_v0 = vmax.f32 %v1093_v2, 0.0  ;;  %v1146_v2 = vadd.f32 %v5934_v50, %v5778_v42 }
 0x16a   :  { %4782 = vmatprep.mubr.msk.bf16.mxu1 %vm1459_vm3, %v1414_v25  ;;  %v1106_v25 = vadd.f32 %v5778_v42, %v5908_v56  ;;  %v1117_v56 = vadd.f32 %v5910_v62, %v5778_v42 }
 0x16b   :  { %v1420_v39 = vpack.c.bf16 %v1337_v0, %v1336_v58  ;;  %v1154_v58 = vadd.f32 %v5778_v42, %v5956_v24  ;;  %v1157_v0 = vadd.f32 %v5778_v42, %v5966_v10  ;;  %v1350_v21 = vmax.f32 %v1146_v2, 0.0 }
 0x16c   :  { %v1340_v18 = vmax.f32 %v1106_v25, 0.0  ;;  %v1343_v37 = vmax.f32 %v1117_v56, 0.0  ;;  %v1186_v2 = vadd.f32 %v5778_v42, %v6013_v54 }
 0x16d   :  { %v1353_v25 = vmax.f32 %v1157_v0, 0.0 }
 0x16e   :  { %v1422_v9 = vpack.c.bf16 %v1341_v11, %v1340_v18  ;;  %v1427_v18 = vpack.c.bf16 %v1351_v7, %v1350_v21  ;;  %v1162_v11 = vadd.f32 %v5954_v63, %v5778_v42 }
 0x170   :  { %v1354_v51 = vmax.f32 %v1162_v11, 0.0 }
 0x171   :  { %4783 = vmatmul.mubr.msk.bf16.gmra.mxu1 %vm1459_vm3, %v1415_v19  ;;  %v6083_v19 = vpop.f32.mrf.mxu1 }
 0x172   :  { %4786 = vmatprep.mubr.msk.bf16.mxu1 %vm1459_vm3, %v1416_v53  ;;  %v1342_v53 = vmax.f32 %v1114_v29, 0.0  ;;  %v1170_v29 = vadd.f32 %v5778_v42, %v5984_v59 }
 0x173   :  { %v6091_v36 = vpop.f32.mrf.mxu1 }
 0x174   :  { %v1423_v62 = vpack.c.bf16 %v1343_v37, %v1342_v53  ;;  %v1356_v48 = vmax.f32 %v1170_v29, 0.0 }
 0x175   :  { %v6097_v33 = vpop.f32.mrf.mxu1 }
 0x179   :  { %4787 = vmatmul.mubr.msk.bf16.gmra.mxu1 %vm1459_vm3, %v1417_v47  ;;  %v1141_v47 = vadd.f32 %v5778_v42, %v5946_v44  ;;  %v6116_v44 = vld [vmem:[%s7414_s6] ss:$0 sm:$0xff] }
 0x17a   :  { %4790 = vmatprep.mubr.msk.bf16.mxu1 %vm1459_vm3, %v1418_v13  ;;  %v6105_v13 = vpop.f32.mrf.mxu1 }
 0x17b   :  { %v1349_v57 = vmax.f32 %v1141_v47, 0.0 }
 0x17c   :  { %v6111_v4 = vpop.f32.mrf.mxu1 }
 0x17d   :  { %v1426_v55 = vpack.c.bf16 %v1349_v57, %v1348_v14  ;;  %v1178_v57 = vadd.f32 %v5978_v34, %v5778_v42 }
 0x181   :  { %4791 = vmatmul.mubr.msk.bf16.gmra.mxu1 %vm1459_vm3, %v1419_v6 }
 0x182   :  { %4794 = vmatprep.mubr.msk.bf16.mxu1 %vm1459_vm3, %v1420_v39  ;;  %v1352_v39 = vmax.f32 %v1154_v58, 0.0  ;;  %v1189_v58 = vadd.f32 %v5778_v42, %v6027_v27 }
 0x184   :  { %v1361_v7 = vmax.f32 %v1189_v58, 0.0 }
 0x189   :  { %4795 = vmatmul.mubr.msk.bf16.gmra.mxu1 %vm1459_vm3, %v1421_v31  ;;  %v1165_v31 = vadd.f32 %v5964_v45, %v5778_v42 }
 0x18a   :  { %4798 = vmatprep.mubr.msk.bf16.mxu1 %vm1459_vm3, %v1422_v9  ;;  %v1428_v9 = vpack.c.bf16 %v1353_v25, %v1352_v39 }
 0x18b   :  { %v1355_v37 = vmax.f32 %v1165_v31, 0.0 }
 0x18d   :  { %v1429_v14 = vpack.c.bf16 %v1355_v37, %v1354_v51 }
 0x191   :  { %4799 = vmatmul.mubr.msk.bf16.gmra.mxu1 %vm1459_vm3, %v1423_v62  ;;  %v1357_v62 = vmax.f32 %v1173_v23, 0.0 }
 0x192   :  { %4802 = vmatprep.mubr.msk.bf16.mxu1 %vm1459_vm3, %v1424_v43 }
 0x199   :  { %v4708_v6 = vpop.f32.mrf.mxu1  ;;  %4803 = vmatmul.mubr.msk.bf16.gmra.mxu1 %vm1459_vm3, %v1425_v30  ;;  %v1181_v30 = vadd.f32 %v5993_v12, %v5778_v42  ;;  %v1358_v42 = vmax.f32 %v1178_v57, 0.0 }
 0x19a   :  { %v1695_v50 = vadd.f32 %v4708_v6, %v6116_v44  ;;  %4806 = vmatprep.mubr.msk.bf16.mxu1 %vm1459_vm3, %v1426_v55  ;;  %v1430_v55 = vpack.c.bf16 %v1357_v62, %v1356_v48 }
 0x19b   :  { %v1686_v26 = vpop.f32.mrf.mxu1  ;;  %v1359_v27 = vmax.f32 %v1181_v30, 0.0 }
 0x19c   :  { %v2199_v15 = vmax.f32 %v1695_v50, 0.0  ;;  %v1687_v16 = vadd.f32 %v6116_v44, %v1686_v26  ;;  %v1360_v50 = vmax.f32 %v1186_v2, 0.0 }
 0x19d   :  { %v4709_v20 = vpop.f32.mrf.mxu1 }
 0x19e   :  { %2327 = vst.msk [vmem:[%s7415_s8 + $0x10] sm:$0xff] %vm1459_vm3, %v2199_v15  ;;  %v2197_v24 = vmax.f32 %v1687_v16, 0.0  ;;  %v1698_v10 = vadd.f32 %v4709_v20, %v6116_v44 }
 0x19f   :  { %v1689_v56 = vpop.f32.mrf.mxu1 }
 0x1a0   :  { %2325 = vst.msk [vmem:[%s7415_s8] sm:$0xff] %vm1459_vm3, %v2197_v24  ;;  %v2200_v40 = vmax.f32 %v1698_v10, 0.0  ;;  %v1690_v53 = vadd.f32 %v6116_v44, %v1689_v56  ;;  %v1431_v10 = vpack.c.bf16 %v1359_v27, %v1358_v42 }
 0x1a1   :  { %v4712_v63 = vpop.f32.mrf.mxu1  ;;  %4807 = vmatmul.mubr.msk.bf16.gmra.mxu1 %vm1459_vm3, %v1427_v18  ;;  %v6197_v18 = vld [vmem:[%s7413_s4] ss:$0 sm:$0xff] }
 0x1a2   :  { %2328 = vst.msk [vmem:[%s7415_s8 + $0x18] sm:$0xff] %vm1459_vm3, %v2200_v40  ;;  %v2198_v45 = vmax.f32 %v1690_v53, 0.0  ;;  %v1711_v59 = vadd.f32 %v4712_v63, %v6116_v44  ;;  %4810 = vmatprep.mubr.msk.bf16.mxu1 %vm1459_vm3, %v1428_v9  ;;  %v2454_v60 = vpack.c.bf16 %v2200_v40, %v2199_v15  ;;  %v1194_v11 = vadd.f32 %v6197_v18, %v6007_v32 }
 0x1a3   :  { %v1702_v49 = vpop.f32.mrf.mxu1  ;;  %v1197_v31 = vadd.f32 %v6197_v18, %v6021_v61  ;;  %v1202_v29 = vadd.f32 %v6197_v18, %v6041_v35  ;;  %v1432_v9 = vpack.c.bf16 %v1361_v7, %v1360_v50  ;;  %v1205_v23 = vadd.f32 %v6197_v18, %v6055_v38 }
 0x1a4   :  { %2326 = vst.msk [vmem:[%s7415_s8 + $0x8] sm:$0xff] %vm1459_vm3, %v2198_v45  ;;  %v2453_v46 = vpack.c.bf16 %v2198_v45, %v2197_v24  ;;  %v2203_v22 = vmax.f32 %v1711_v59, 0.0  ;;  %v1703_v43 = vadd.f32 %v6116_v44, %v1702_v49  ;;  %v1362_v38 = vmax.f32 %v1194_v11, 0.0 }
 0x1a5   :  { %v4713_v47 = vpop.f32.mrf.mxu1  ;;  %v1363_v63 = vmax.f32 %v1197_v31, 0.0  ;;  %v1364_v45 = vmax.f32 %v1202_v29, 0.0  ;;  %v1365_v51 = vmax.f32 %v1205_v23, 0.0  ;;  %v1221_v30 = vadd.f32 %v6197_v18, %v6083_v19 }
 0x1a6   :  { %2331 = vst.msk [vmem:[%s7415_s8 + $0x30] sm:$0xff] %vm1459_vm3, %v2203_v22  ;;  %v2201_v5 = vmax.f32 %v1703_v43, 0.0  ;;  %v1714_v1 = vadd.f32 %v4713_v47, %v6116_v44  ;;  %4842 = vmatprep.mubr.msk.bf16.mxu0 %vm1459_vm3, %v2453_v46  ;;  %v1210_v47 = vadd.f32 %v6197_v18, %v6035_v28 }
 0x1a7   :  { %v1705_v3 = vpop.f32.mrf.mxu1  ;;  %4843 = vmatmul.mubr.msk.bf16.vlgmr.msra.gmra.mxu0 %vm1459_vm3, %v2454_v60  ;;  %v1433_v60 = vpack.c.bf16 %v1363_v63, %v1362_v38  ;;  %v1434_v57 = vpack.c.bf16 %v1365_v51, %v1364_v45  ;;  %v1242_v63 = vadd.f32 %v6197_v18, %v6091_v36  ;;  %v1245_v45 = vadd.f32 %v6197_v18, %v6105_v13 }
 0x1a8   :  { %2329 = vst.msk [vmem:[%s7415_s8 + $0x20] sm:$0xff] %vm1459_vm3, %v2201_v5  ;;  %v2204_v0 = vmax.f32 %v1714_v1, 0.0  ;;  %v1706_v34 = vadd.f32 %v6116_v44, %v1705_v3  ;;  %v1218_v1 = vadd.f32 %v6197_v18, %v6069_v8  ;;  %v1366_v19 = vmax.f32 %v1210_v47, 0.0 }
 0x1a9   :  { %v4716_v6 = vpop.f32.mrf.mxu1  ;;  %4811 = vmatmul.mubr.msk.bf16.gmra.mxu1 %vm1459_vm3, %v1429_v14 }
 0x1aa   :  { %2332 = vst.msk [vmem:[%s7415_s8 + $0x38] sm:$0xff] %vm1459_vm3, %v2204_v0  ;;  %v2202_v12 = vmax.f32 %v1706_v34, 0.0  ;;  %v1727_v54 = vadd.f32 %v4716_v6, %v6116_v44  ;;  %4814 = vmatprep.mubr.msk.bf16.mxu1 %vm1459_vm3, %v1430_v55  ;;  %v2456_v15 = vpack.c.bf16 %v2204_v0, %v2203_v22  ;;  %v1368_v58 = vmax.f32 %v1218_v1, 0.0 }
 0x1ab   :  { %v1718_v21 = vpop.f32.mrf.mxu1  ;;  %v1369_v34 = vmax.f32 %v1221_v30, 0.0 }
 0x1ac   :  { %2330 = vst.msk [vmem:[%s7415_s8 + $0x28] sm:$0xff] %vm1459_vm3, %v2202_v12  ;;  %v2455_v26 = vpack.c.bf16 %v2202_v12, %v2201_v5  ;;  %v2207_v39 = vmax.f32 %v1727_v54, 0.0  ;;  %v1719_v25 = vadd.f32 %v6116_v44, %v1718_v21  ;;  %v1213_v5 = vadd.f32 %v6197_v18, %v6049_v52 }
 0x1ad   :  { %v4717_v16 = vpop.f32.mrf.mxu1 }
 0x1ae   :  { %2335 = vst.msk [vmem:[%s7415_s8 + $0x50] sm:$0xff] %vm1459_vm3, %v2207_v39  ;;  %v2205_v20 = vmax.f32 %v1719_v25, 0.0  ;;  %v1730_v24 = vadd.f32 %v4717_v16, %v6116_v44  ;;  %4846 = vmatprep.mubr.msk.bf16.mxu0 %vm1459_vm3, %v2455_v26  ;;  %v1367_v55 = vmax.f32 %v1213_v5, 0.0  ;;  %v1226_v26 = vadd.f32 %v6197_v18, %v6063_v17 }
 0x1af   :  { %v1721_v56 = vpop.f32.mrf.mxu1  ;;  %4847 = vmatmul.mubr.msk.bf16.gmra.mxu0 %vm1459_vm3, %v2456_v15  ;;  %v1234_v25 = vadd.f32 %v6197_v18, %v6097_v33  ;;  %v1436_v16 = vpack.c.bf16 %v1369_v34, %v1368_v58 }
 0x1b0   :  { %2333 = vst.msk [vmem:[%s7415_s8 + $0x40] sm:$0xff] %vm1459_vm3, %v2205_v20  ;;  %v2208_v40 = vmax.f32 %v1730_v24, 0.0  ;;  %v1722_v32 = vadd.f32 %v6116_v44, %v1721_v56  ;;  %v1435_v7 = vpack.c.bf16 %v1367_v55, %v1366_v19 }
 0x1b1   :  { %v4720_v53 = vpop.f32.mrf.mxu1  ;;  %4815 = vmatmul.mubr.msk.bf16.gmra.mxu1 %vm1459_vm3, %v1431_v10  ;;  %v1372_v31 = vmax.f32 %v1234_v25, 0.0 }
 0x1b2   :  { %2336 = vst.msk [vmem:[%s7415_s8 + $0x58] sm:$0xff] %vm1459_vm3, %v2208_v40  ;;  %v2206_v61 = vmax.f32 %v1722_v32, 0.0  ;;  %v1743_v35 = vadd.f32 %v4720_v53, %v6116_v44  ;;  %4818 = vmatprep.mubr.msk.bf16.mxu1 %vm1459_vm3, %v1432_v9  ;;  %v2458_v62 = vpack.c.bf16 %v2208_v40, %v2207_v39  ;;  %v1229_v39 = vadd.f32 %v6197_v18, %v6077_v41 }
 0x1b3   :  { %v1734_v59 = vpop.f32.mrf.mxu1 }
 0x1b4   :  { %2334 = vst.msk [vmem:[%s7415_s8 + $0x48] sm:$0xff] %vm1459_vm3, %v2206_v61  ;;  %v2457_v37 = vpack.c.bf16 %v2206_v61, %v2205_v20  ;;  %v2211_v48 = vmax.f32 %v1743_v35, 0.0  ;;  %v1735_v49 = vadd.f32 %v6116_v44, %v1734_v59  ;;  %v1237_v20 = vadd.f32 %v6197_v18, %v6111_v4 }
 0x1b5   :  { %v4721_v46 = vpop.f32.mrf.mxu1  ;;  %v1370_v4 = vmax.f32 %v1226_v26, 0.0  ;;  %v1371_v11 = vmax.f32 %v1229_v39, 0.0  ;;  %v1374_v18 = vmax.f32 %v1242_v63, 0.0 }
 0x1b6   :  { %2339 = vst.msk [vmem:[%s7415_s8 + $0x70] sm:$0xff] %vm1459_vm3, %v2211_v48  ;;  %v2209_v22 = vmax.f32 %v1735_v49, 0.0  ;;  %v1746_v43 = vadd.f32 %v4721_v46, %v6116_v44  ;;  %4850 = vmatprep.mubr.msk.bf16.mxu0 %vm1459_vm3, %v2457_v37  ;;  %v1373_v56 = vmax.f32 %v1237_v20, 0.0 }
 0x1b7   :  { %v1737_v14 = vpop.f32.mrf.mxu1  ;;  %4851 = vmatmul.mubr.msk.bf16.gmra.mxu0 %vm1459_vm3, %v2458_v62  ;;  %v1437_v38 = vpack.c.bf16 %v1371_v11, %v1370_v4  ;;  %v1375_v62 = vmax.f32 %v1245_v45, 0.0 }
 0x1b8   :  { %2337 = vst.msk [vmem:[%s7415_s8 + $0x60] sm:$0xff] %vm1459_vm3, %v2209_v22  ;;  %v2212_v2 = vmax.f32 %v1746_v43, 0.0  ;;  %v1738_v28 = vadd.f32 %v6116_v44, %v1737_v14  ;;  %v1438_v51 = vpack.c.bf16 %v1373_v56, %v1372_v31 }
 0x1b9   :  { %v4724_v3 = vpop.f32.mrf.mxu1  ;;  %4819 = vmatmul.mubr.msk.bf16.gmra.mxu1 %vm1459_vm3, %v1433_v60 }
 0x1ba   :  { %2340 = vst.msk [vmem:[%s7415_s8 + $0x78] sm:$0xff] %vm1459_vm3, %v2212_v2  ;;  %v2210_v52 = vmax.f32 %v1738_v28, 0.0  ;;  %v1759_v8 = vadd.f32 %v4724_v3, %v6116_v44  ;;  %4822 = vmatprep.mubr.msk.bf16.mxu1 %vm1459_vm3, %v1434_v57  ;;  %v2460_v42 = vpack.c.bf16 %v2212_v2, %v2211_v48  ;;  %v1439_v57 = vpack.c.bf16 %v1375_v62, %v1374_v18 }
 0x1bb   :  { %v1750_v0 = vpop.f32.mrf.mxu1 }
 0x1bc   :  { %2338 = vst.msk [vmem:[%s7415_s8 + $0x68] sm:$0xff] %vm1459_vm3, %v2210_v52  ;;  %v2459_v6 = vpack.c.bf16 %v2210_v52, %v2209_v22  ;;  %v2215_v12 = vmax.f32 %v1759_v8, 0.0  ;;  %v1751_v54 = vadd.f32 %v6116_v44, %v1750_v0 }
 0x1bd   :  { %v4725_v27 = vpop.f32.mrf.mxu1 }
 0x1be   :  { %2343 = vst.msk [vmem:[%s7415_s8 + $0x90] sm:$0xff] %vm1459_vm3, %v2215_v12  ;;  %v2213_v50 = vmax.f32 %v1751_v54, 0.0  ;;  %v1762_v21 = vadd.f32 %v4725_v27, %v6116_v44  ;;  %4854 = vmatprep.mubr.msk.bf16.mxu0 %vm1459_vm3, %v2459_v6 }
 0x1bf   :  { %v1753_v15 = vpop.f32.mrf.mxu1  ;;  %4855 = vmatmul.mubr.msk.bf16.gmra.mxu0 %vm1459_vm3, %v2460_v42 }
 0x1c0   :  { %2341 = vst.msk [vmem:[%s7415_s8 + $0x80] sm:$0xff] %vm1459_vm3, %v2213_v50  ;;  %v2216_v24 = vmax.f32 %v1762_v21, 0.0  ;;  %v1754_v17 = vadd.f32 %v6116_v44, %v1753_v15 }
 0x1c1   :  { %v4728_v10 = vpop.f32.mrf.mxu1  ;;  %4823 = vmatmul.mubr.msk.bf16.gmra.mxu1 %vm1459_vm3, %v1435_v7 }
 0x1c2   :  { %2344 = vst.msk [vmem:[%s7415_s8 + $0x98] sm:$0xff] %vm1459_vm3, %v2216_v24  ;;  %v2214_v41 = vmax.f32 %v1754_v17, 0.0  ;;  %v1775_v33 = vadd.f32 %v4728_v10, %v6116_v44  ;;  %4826 = vmatprep.mubr.msk.bf16.mxu1 %vm1459_vm3, %v1436_v16  ;;  %v2462_v32 = vpack.c.bf16 %v2216_v24, %v2215_v12 }
 0x1c3   :  { %v1766_v29 = vpop.f32.mrf.mxu1 }
 0x1c4   :  { %2342 = vst.msk [vmem:[%s7415_s8 + $0x88] sm:$0xff] %vm1459_vm3, %v2214_v41  ;;  %v2461_v9 = vpack.c.bf16 %v2214_v41, %v2213_v50  ;;  %v2219_v23 = vmax.f32 %v1775_v33, 0.0  ;;  %v1767_v40 = vadd.f32 %v6116_v44, %v1766_v29 }
 0x1c5   :  { %v4729_v53 = vpop.f32.mrf.mxu1 }
 0x1c6   :  { %2347 = vst.msk [vmem:[%s7415_s8 + $0xb0] sm:$0xff] %vm1459_vm3, %v2219_v23  ;;  %v2217_v61 = vmax.f32 %v1767_v40, 0.0  ;;  %v1778_v35 = vadd.f32 %v4729_v53, %v6116_v44  ;;  %4858 = vmatprep.mubr.msk.bf16.mxu0 %vm1459_vm3, %v2461_v9 }
 0x1c7   :  { %v1769_v59 = vpop.f32.mrf.mxu1  ;;  %4859 = vmatmul.mubr.msk.bf16.gmra.mxu0 %vm1459_vm3, %v2462_v32 }
 0x1c8   :  { %2345 = vst.msk [vmem:[%s7415_s8 + $0xa0] sm:$0xff] %vm1459_vm3, %v2217_v61  ;;  %v2220_v37 = vmax.f32 %v1778_v35, 0.0  ;;  %v1770_v48 = vadd.f32 %v6116_v44, %v1769_v59 }
 0x1c9   :  { %v4732_v49 = vpop.f32.mrf.mxu1  ;;  %4827 = vmatmul.mubr.msk.bf16.gmra.mxu1 %vm1459_vm3, %v1437_v38 }
 0x1ca   :  { %2348 = vst.msk [vmem:[%s7415_s8 + $0xb8] sm:$0xff] %vm1459_vm3, %v2220_v37  ;;  %v2218_v36 = vmax.f32 %v1770_v48, 0.0  ;;  %v1791_v13 = vadd.f32 %v4732_v49, %v6116_v44  ;;  %4830 = vmatprep.mubr.msk.bf16.mxu1 %vm1459_vm3, %v1438_v51  ;;  %v2464_v47 = vpack.c.bf16 %v2220_v37, %v2219_v23 }
 0x1cb   :  { %v1782_v46 = vpop.f32.mrf.mxu1 }
 0x1cc   :  { %2346 = vst.msk [vmem:[%s7415_s8 + $0xa8] sm:$0xff] %vm1459_vm3, %v2218_v36  ;;  %v2463_v22 = vpack.c.bf16 %v2218_v36, %v2217_v61  ;;  %v2223_v43 = vmax.f32 %v1791_v13, 0.0  ;;  %v1783_v60 = vadd.f32 %v6116_v44, %v1782_v46 }
 0x1cd   :  { %v4733_v5 = vpop.f32.mrf.mxu1 }
 0x1ce   :  { %2351 = vst.msk [vmem:[%s7415_s8 + $0xd0] sm:$0xff] %vm1459_vm3, %v2223_v43  ;;  %v2221_v1 = vmax.f32 %v1783_v60, 0.0  ;;  %v1794_v14 = vadd.f32 %v4733_v5, %v6116_v44  ;;  %4862 = vmatprep.mubr.msk.bf16.mxu0 %vm1459_vm3, %v2463_v22 }
 0x1cf   :  { %v1785_v30 = vpop.f32.mrf.mxu1  ;;  %4863 = vmatmul.mubr.msk.bf16.gmra.mxu0 %vm1459_vm3, %v2464_v47 }
 0x1d0   :  { %2349 = vst.msk [vmem:[%s7415_s8 + $0xc0] sm:$0xff] %vm1459_vm3, %v2221_v1  ;;  %v2224_v2 = vmax.f32 %v1794_v14, 0.0  ;;  %v1786_v28 = vadd.f32 %v6116_v44, %v1785_v30 }
 0x1d1   :  { %v4736_v3 = vpop.f32.mrf.mxu1  ;;  %4831 = vmatmul.mubr.msk.bf16.gmra.mxu1 %vm1459_vm3, %v1439_v57 }
 0x1d2   :  { %2352 = vst.msk [vmem:[%s7415_s8 + $0xd8] sm:$0xff] %vm1459_vm3, %v2224_v2  ;;  %v2222_v52 = vmax.f32 %v1786_v28, 0.0  ;;  %v1807_v8 = vadd.f32 %v4736_v3, %v6116_v44  ;;  %v2466_v34 = vpack.c.bf16 %v2224_v2, %v2223_v43 }
 0x1d3   :  { %v1798_v19 = vpop.f32.mrf.mxu1 }
 0x1d4   :  { %2350 = vst.msk [vmem:[%s7415_s8 + $0xc8] sm:$0xff] %vm1459_vm3, %v2222_v52  ;;  %v2465_v55 = vpack.c.bf16 %v2222_v52, %v2221_v1  ;;  %v2227_v58 = vmax.f32 %v1807_v8, 0.0  ;;  %v1799_v0 = vadd.f32 %v6116_v44, %v1798_v19 }
 0x1d5   :  { %v4737_v6 = vpop.f32.mrf.mxu1 }
 0x1d6   :  { %2355 = vst.msk [vmem:[%s7415_s8 + $0xf0] sm:$0xff] %vm1459_vm3, %v2227_v58  ;;  %v2225_v12 = vmax.f32 %v1799_v0, 0.0  ;;  %v1810_v54 = vadd.f32 %v4737_v6, %v6116_v44  ;;  %4866 = vmatprep.mubr.msk.bf16.mxu0 %vm1459_vm3, %v2465_v55 }
 0x1d7   :  { %v1801_v42 = vpop.f32.mrf.mxu1  ;;  %4867 = vmatmul.mubr.msk.bf16.gmra.mxu0 %vm1459_vm3, %v2466_v34 }
 0x1d8   :  { %2353 = vst.msk [vmem:[%s7415_s8 + $0xe0] sm:$0xff] %vm1459_vm3, %v2225_v12  ;;  %v2228_v27 = vmax.f32 %v1810_v54, 0.0  ;;  %v1802_v50 = vadd.f32 %v6116_v44, %v1801_v42 }
 0x1d9   :  { %v4740_v21 = vpop.f32.mrf.mxu1 }
 0x1da   :  { %2356 = vst.msk [vmem:[%s7415_s8 + $0xf8] sm:$0xff] %vm1459_vm3, %v2228_v27  ;;  %v2226_v7 = vmax.f32 %v1802_v50, 0.0  ;;  %v1823_v26 = vadd.f32 %v4740_v21, %v6116_v44  ;;  %v2468_v20 = vpack.c.bf16 %v2228_v27, %v2227_v58 }
 0x1db   :  { %v1814_v39 = vpop.f32.mrf.mxu1 }
 0x1dc   :  { %2354 = vst.msk [vmem:[%s7415_s8 + $0xe8] sm:$0xff] %vm1459_vm3, %v2226_v7  ;;  %v2467_v25 = vpack.c.bf16 %v2226_v7, %v2225_v12  ;;  %v2231_v15 = vmax.f32 %v1823_v26, 0.0  ;;  %v1815_v16 = vadd.f32 %v6116_v44, %v1814_v39 }
 0x1dd   :  { %v4741_v24 = vpop.f32.mrf.mxu1 }
 0x1de   :  { %2359 = vst.msk [vmem:[%s7415_s8 + $0x110] sm:$0xff] %vm1459_vm3, %v2231_v15  ;;  %v2229_v17 = vmax.f32 %v1815_v16, 0.0  ;;  %v1826_v10 = vadd.f32 %v4741_v24, %v6116_v44  ;;  %4870 = vmatprep.mubr.msk.bf16.mxu0 %vm1459_vm3, %v2467_v25 }
 0x1df   :  { %v1817_v41 = vpop.f32.mrf.mxu1  ;;  %4871 = vmatmul.mubr.msk.bf16.gmra.mxu0 %vm1459_vm3, %v2468_v20 }
 0x1e0   :  { %2357 = vst.msk [vmem:[%s7415_s8 + $0x100] sm:$0xff] %vm1459_vm3, %v2229_v17  ;;  %v2232_v33 = vmax.f32 %v1826_v10, 0.0  ;;  %v1818_v4 = vadd.f32 %v6116_v44, %v1817_v41 }
 0x1e1   :  { %v4744_v11 = vpop.f32.mrf.mxu1 }
 0x1e2   :  { %2360 = vst.msk [vmem:[%s7415_s8 + $0x118] sm:$0xff] %vm1459_vm3, %v2232_v33  ;;  %v2230_v31 = vmax.f32 %v1818_v4, 0.0  ;;  %v1839_v29 = vadd.f32 %v4744_v11, %v6116_v44  ;;  %v2470_v32 = vpack.c.bf16 %v2232_v33, %v2231_v15 }
 0x1e3   :  { %v1830_v56 = vpop.f32.mrf.mxu1 }
 0x1e4   :  { %2358 = vst.msk [vmem:[%s7415_s8 + $0x108] sm:$0xff] %vm1459_vm3, %v2230_v31  ;;  %v2469_v9 = vpack.c.bf16 %v2230_v31, %v2229_v17  ;;  %v2235_v23 = vmax.f32 %v1839_v29, 0.0  ;;  %v1831_v40 = vadd.f32 %v6116_v44, %v1830_v56 }
 0x1e5   :  { %v4745_v53 = vpop.f32.mrf.mxu1 }
 0x1e6   :  { %2363 = vst.msk [vmem:[%s7415_s8 + $0x130] sm:$0xff] %vm1459_vm3, %v2235_v23  ;;  %v2233_v61 = vmax.f32 %v1831_v40, 0.0  ;;  %v1842_v35 = vadd.f32 %v4745_v53, %v6116_v44  ;;  %4874 = vmatprep.mubr.msk.bf16.mxu0 %vm1459_vm3, %v2469_v9 }
 0x1e7   :  { %v1833_v38 = vpop.f32.mrf.mxu1  ;;  %4875 = vmatmul.mubr.msk.bf16.gmra.mxu0 %vm1459_vm3, %v2470_v32 }
 0x1e8   :  { %2361 = vst.msk [vmem:[%s7415_s8 + $0x120] sm:$0xff] %vm1459_vm3, %v2233_v61  ;;  %v2236_v63 = vmax.f32 %v1842_v35, 0.0  ;;  %v1834_v45 = vadd.f32 %v6116_v44, %v1833_v38 }
 0x1e9   :  { %v4748_v59 = vpop.f32.mrf.mxu1 }
 0x1ea   :  { %2364 = vst.msk [vmem:[%s7415_s8 + $0x138] sm:$0xff] %vm1459_vm3, %v2236_v63  ;;  %v2234_v51 = vmax.f32 %v1834_v45, 0.0  ;;  %v1855_v37 = vadd.f32 %v4748_v59, %v6116_v44  ;;  %v2472_v18 = vpack.c.bf16 %v2236_v63, %v2235_v23 }
 0x1eb   :  { %v1846_v48 = vpop.f32.mrf.mxu1 }
 0x1ec   :  { %2362 = vst.msk [vmem:[%s7415_s8 + $0x128] sm:$0xff] %vm1459_vm3, %v2234_v51  ;;  %v2471_v49 = vpack.c.bf16 %v2234_v51, %v2233_v61  ;;  %v2239_v36 = vmax.f32 %v1855_v37, 0.0  ;;  %v1847_v13 = vadd.f32 %v6116_v44, %v1846_v48 }
 0x1ed   :  { %v4749_v62 = vpop.f32.mrf.mxu1 }
 0x1ee   :  { %2367 = vst.msk [vmem:[%s7415_s8 + $0x150] sm:$0xff] %vm1459_vm3, %v2239_v36  ;;  %v2237_v46 = vmax.f32 %v1847_v13, 0.0  ;;  %v1858_v22 = vadd.f32 %v4749_v62, %v6116_v44  ;;  %4878 = vmatprep.mubr.msk.bf16.mxu0 %vm1459_vm3, %v2471_v49 }
 0x1ef   :  { %v1849_v43 = vpop.f32.mrf.mxu1  ;;  %4879 = vmatmul.mubr.msk.bf16.gmra.mxu0 %vm1459_vm3, %v2472_v18 }
 0x1f0   :  { %2365 = vst.msk [vmem:[%s7415_s8 + $0x140] sm:$0xff] %vm1459_vm3, %v2237_v46  ;;  %v2240_v60 = vmax.f32 %v1858_v22, 0.0  ;;  %v1850_v47 = vadd.f32 %v6116_v44, %v1849_v43 }
 0x1f1   :  { %v4752_v5 = vpop.f32.mrf.mxu1 }
 0x1f2   :  { %2368 = vst.msk [vmem:[%s7415_s8 + $0x158] sm:$0xff] %vm1459_vm3, %v2240_v60  ;;  %v2238_v1 = vmax.f32 %v1850_v47, 0.0  ;;  %v1871_v14 = vadd.f32 %v4752_v5, %v6116_v44  ;;  %v2474_v3 = vpack.c.bf16 %v2240_v60, %v2239_v36 }
 0x1f3   :  { %v1862_v57 = vpop.f32.mrf.mxu1 }
 0x1f4   :  { %2366 = vst.msk [vmem:[%s7415_s8 + $0x148] sm:$0xff] %vm1459_vm3, %v2238_v1  ;;  %v2473_v30 = vpack.c.bf16 %v2238_v1, %v2237_v46  ;;  %v2243_v2 = vmax.f32 %v1871_v14, 0.0  ;;  %v1863_v28 = vadd.f32 %v6116_v44, %v1862_v57 }
 0x1f5   :  { %v4753_v52 = vpop.f32.mrf.mxu1 }
 0x1f6   :  { %2371 = vst.msk [vmem:[%s7415_s8 + $0x170] sm:$0xff] %vm1459_vm3, %v2243_v2  ;;  %v2241_v8 = vmax.f32 %v1863_v28, 0.0  ;;  %v1874_v19 = vadd.f32 %v4753_v52, %v6116_v44  ;;  %4882 = vmatprep.mubr.msk.bf16.mxu0 %vm1459_vm3, %v2473_v30 }
 0x1f7   :  { %v1865_v55 = vpop.f32.mrf.mxu1  ;;  %4883 = vmatmul.mubr.msk.bf16.gmra.mxu0 %vm1459_vm3, %v2474_v3 }
 0x1f8   :  { %2369 = vst.msk [vmem:[%s7415_s8 + $0x160] sm:$0xff] %vm1459_vm3, %v2241_v8  ;;  %v2244_v58 = vmax.f32 %v1874_v19, 0.0  ;;  %v1866_v0 = vadd.f32 %v6116_v44, %v1865_v55 }
 0x1f9   :  { %v4756_v34 = vpop.f32.mrf.mxu1 }
 0x1fa   :  { %2372 = vst.msk [vmem:[%s7415_s8 + $0x178] sm:$0xff] %vm1459_vm3, %v2244_v58  ;;  %v2242_v6 = vmax.f32 %v1866_v0, 0.0  ;;  %v1887_v12 = vadd.f32 %v4756_v34, %v6116_v44  ;;  %v2476_v21 = vpack.c.bf16 %v2244_v58, %v2243_v2 }
 0x1fb   :  { %v1878_v54 = vpop.f32.mrf.mxu1 }
 0x1fc   :  { %2370 = vst.msk [vmem:[%s7415_s8 + $0x168] sm:$0xff] %vm1459_vm3, %v2242_v6  ;;  %v2475_v42 = vpack.c.bf16 %v2242_v6, %v2241_v8  ;;  %v2247_v27 = vmax.f32 %v1887_v12, 0.0  ;;  %v1879_v50 = vadd.f32 %v6116_v44, %v1878_v54 }
 0x1fd   :  { %v4757_v7 = vpop.f32.mrf.mxu1 }
 0x1fe   :  { %2375 = vst.msk [vmem:[%s7415_s8 + $0x190] sm:$0xff] %vm1459_vm3, %v2247_v27  ;;  %v2245_v26 = vmax.f32 %v1879_v50, 0.0  ;;  %v1890_v39 = vadd.f32 %v4757_v7, %v6116_v44  ;;  %4886 = vmatprep.mubr.msk.bf16.mxu0 %vm1459_vm3, %v2475_v42 }
 0x1ff   :  { %v1881_v25 = vpop.f32.mrf.mxu1  ;;  %4887 = vmatmul.mubr.msk.bf16.gmra.mxu0 %vm1459_vm3, %v2476_v21 }
 0x200   :  { %2373 = vst.msk [vmem:[%s7415_s8 + $0x180] sm:$0xff] %vm1459_vm3, %v2245_v26  ;;  %v2248_v15 = vmax.f32 %v1890_v39, 0.0  ;;  %v1882_v16 = vadd.f32 %v6116_v44, %v1881_v25 }
 0x201   :  { %v4760_v20 = vpop.f32.mrf.mxu1 }
 0x202   :  { %2376 = vst.msk [vmem:[%s7415_s8 + $0x198] sm:$0xff] %vm1459_vm3, %v2248_v15  ;;  %v2246_v24 = vmax.f32 %v1882_v16, 0.0  ;;  %v1903_v17 = vadd.f32 %v4760_v20, %v6116_v44  ;;  %v2478_v11 = vpack.c.bf16 %v2248_v15, %v2247_v27 }
 0x203   :  { %v1894_v10 = vpop.f32.mrf.mxu1 }
 0x204   :  { %2374 = vst.msk [vmem:[%s7415_s8 + $0x188] sm:$0xff] %vm1459_vm3, %v2246_v24  ;;  %v2477_v41 = vpack.c.bf16 %v2246_v24, %v2245_v26  ;;  %v2251_v33 = vmax.f32 %v1903_v17, 0.0  ;;  %v1895_v4 = vadd.f32 %v6116_v44, %v1894_v10 }
 0x205   :  { %v4761_v31 = vpop.f32.mrf.mxu1 }
 0x206   :  { %2379 = vst.msk [vmem:[%s7415_s8 + $0x1b0] sm:$0xff] %vm1459_vm3, %v2251_v33  ;;  %v2249_v29 = vmax.f32 %v1895_v4, 0.0  ;;  %v1906_v56 = vadd.f32 %v4761_v31, %v6116_v44  ;;  %4890 = vmatprep.mubr.msk.bf16.mxu0 %vm1459_vm3, %v2477_v41 }
 0x207   :  { %v1897_v9 = vpop.f32.mrf.mxu1  ;;  %4891 = vmatmul.mubr.msk.bf16.gmra.mxu0 %vm1459_vm3, %v2478_v11 }
 0x208   :  { %2377 = vst.msk [vmem:[%s7415_s8 + $0x1a0] sm:$0xff] %vm1459_vm3, %v2249_v29  ;;  %v2252_v23 = vmax.f32 %v1906_v56, 0.0  ;;  %v1898_v40 = vadd.f32 %v6116_v44, %v1897_v9 }
 0x209   :  { %v4764_v32 = vpop.f32.mrf.mxu1 }
 0x20a   :  { %2380 = vst.msk [vmem:[%s7415_s8 + $0x1b8] sm:$0xff] %vm1459_vm3, %v2252_v23  ;;  %v2250_v53 = vmax.f32 %v1898_v40, 0.0  ;;  %v1919_v61 = vadd.f32 %v4764_v32, %v6116_v44  ;;  %v2480_v59 = vpack.c.bf16 %v2252_v23, %v2251_v33 }
 0x20b   :  { %v1910_v35 = vpop.f32.mrf.mxu1 }
 0x20c   :  { %2378 = vst.msk [vmem:[%s7415_s8 + $0x1a8] sm:$0xff] %vm1459_vm3, %v2250_v53  ;;  %v2479_v38 = vpack.c.bf16 %v2250_v53, %v2249_v29  ;;  %v2255_v63 = vmax.f32 %v1919_v61, 0.0  ;;  %v1911_v45 = vadd.f32 %v6116_v44, %v1910_v35 }
 0x20d   :  { %v4765_v51 = vpop.f32.mrf.mxu1 }
 0x20e   :  { %2383 = vst.msk [vmem:[%s7415_s8 + $0x1d0] sm:$0xff] %vm1459_vm3, %v2255_v63  ;;  %v2253_v37 = vmax.f32 %v1911_v45, 0.0  ;;  %v1922_v48 = vadd.f32 %v4765_v51, %v6116_v44  ;;  %4894 = vmatprep.mubr.msk.bf16.mxu0 %vm1459_vm3, %v2479_v38 }
 0x20f   :  { %v1913_v49 = vpop.f32.mrf.mxu1  ;;  %4895 = vmatmul.mubr.msk.bf16.gmra.mxu0 %vm1459_vm3, %v2480_v59 }
 0x210   :  { %2381 = vst.msk [vmem:[%s7415_s8 + $0x1c0] sm:$0xff] %vm1459_vm3, %v2253_v37  ;;  %v2256_v36 = vmax.f32 %v1922_v48, 0.0  ;;  %v1914_v13 = vadd.f32 %v6116_v44, %v1913_v49 }
 0x211   :  { %v4768_v18 = vpop.f32.mrf.mxu1 }
 0x212   :  { %2384 = vst.msk [vmem:[%s7415_s8 + $0x1d8] sm:$0xff] %vm1459_vm3, %v2256_v36  ;;  %v2254_v62 = vmax.f32 %v1914_v13, 0.0  ;;  %v1935_v46 = vadd.f32 %v4768_v18, %v6116_v44  ;;  %v2482_v5 = vpack.c.bf16 %v2256_v36, %v2255_v63 }
 0x213   :  { %v1926_v22 = vpop.f32.mrf.mxu1 }
 0x214   :  { %2382 = vst.msk [vmem:[%s7415_s8 + $0x1c8] sm:$0xff] %vm1459_vm3, %v2254_v62  ;;  %v2481_v43 = vpack.c.bf16 %v2254_v62, %v2253_v37  ;;  %v2259_v60 = vmax.f32 %v1935_v46, 0.0  ;;  %v1927_v47 = vadd.f32 %v6116_v44, %v1926_v22 }
 0x215   :  { %v4769_v1 = vpop.f32.mrf.mxu1 }
 0x216   :  { %2387 = vst.msk [vmem:[%s7415_s8 + $0x1f0] sm:$0xff] %vm1459_vm3, %v2259_v60  ;;  %v2257_v14 = vmax.f32 %v1927_v47, 0.0  ;;  %v1938_v57 = vadd.f32 %v4769_v1, %v6116_v44  ;;  %4898 = vmatprep.mubr.msk.bf16.mxu0 %vm1459_vm3, %v2481_v43 }
 0x217   :  { %v1929_v30 = vpop.f32.mrf.mxu1  ;;  %4899 = vmatmul.mubr.msk.bf16.gmra.mxu0 %vm1459_vm3, %v2482_v5 }
 0x218   :  { %2385 = vst.msk [vmem:[%s7415_s8 + $0x1e0] sm:$0xff] %vm1459_vm3, %v2257_v14  ;;  %v2260_v2 = vmax.f32 %v1938_v57, 0.0  ;;  %v1930_v28 = vadd.f32 %v6116_v44, %v1929_v30 }
 0x219   :  { %v4772_v3 = vpop.f32.mrf.mxu1 }
 0x21a   :  { %2388 = vst.msk [vmem:[%s7415_s8 + $0x1f8] sm:$0xff] %vm1459_vm3, %v2260_v2  ;;  %v2258_v52 = vmax.f32 %v1930_v28, 0.0  ;;  %v1951_v8 = vadd.f32 %v4772_v3, %v6116_v44  ;;  %v2484_v34 = vpack.c.bf16 %v2260_v2, %v2259_v60 }
 0x21b   :  { %v1942_v19 = vpop.f32.mrf.mxu1 }
 0x21c   :  { %2386 = vst.msk [vmem:[%s7415_s8 + $0x1e8] sm:$0xff] %vm1459_vm3, %v2258_v52  ;;  %v2483_v55 = vpack.c.bf16 %v2258_v52, %v2257_v14  ;;  %v2263_v58 = vmax.f32 %v1951_v8, 0.0  ;;  %v1943_v0 = vadd.f32 %v6116_v44, %v1942_v19 }
 0x21d   :  { %v4773_v6 = vpop.f32.mrf.mxu1 }
 0x21e   :  { %2391 = vst.msk [vmem:[%s7415_s8 + $0x210] sm:$0xff] %vm1459_vm3, %v2263_v58  ;;  %v2261_v12 = vmax.f32 %v1943_v0, 0.0  ;;  %v1954_v54 = vadd.f32 %v4773_v6, %v6116_v44  ;;  %4902 = vmatprep.mubr.msk.bf16.mxu0 %vm1459_vm3, %v2483_v55 }
 0x21f   :  { %v1945_v42 = vpop.f32.mrf.mxu1  ;;  %4903 = vmatmul.mubr.msk.bf16.gmra.mxu0 %vm1459_vm3, %v2484_v34 }
 0x220   :  { %2389 = vst.msk [vmem:[%s7415_s8 + $0x200] sm:$0xff] %vm1459_vm3, %v2261_v12  ;;  %v2264_v27 = vmax.f32 %v1954_v54, 0.0  ;;  %v1946_v50 = vadd.f32 %v6116_v44, %v1945_v42 }
 0x221   :  { %v4776_v21 = vpop.f32.mrf.mxu1 }
 0x222   :  { %2392 = vst.msk [vmem:[%s7415_s8 + $0x218] sm:$0xff] %vm1459_vm3, %v2264_v27  ;;  %v2262_v7 = vmax.f32 %v1946_v50, 0.0  ;;  %v1967_v26 = vadd.f32 %v4776_v21, %v6116_v44  ;;  %v2486_v20 = vpack.c.bf16 %v2264_v27, %v2263_v58 }
 0x223   :  { %v1958_v39 = vpop.f32.mrf.mxu1 }
 0x224   :  { %2390 = vst.msk [vmem:[%s7415_s8 + $0x208] sm:$0xff] %vm1459_vm3, %v2262_v7  ;;  %v2485_v25 = vpack.c.bf16 %v2262_v7, %v2261_v12  ;;  %v2267_v15 = vmax.f32 %v1967_v26, 0.0  ;;  %v1959_v16 = vadd.f32 %v6116_v44, %v1958_v39 }
 0x225   :  { %v4777_v24 = vpop.f32.mrf.mxu1 }
 0x226   :  { %2395 = vst.msk [vmem:[%s7415_s8 + $0x230] sm:$0xff] %vm1459_vm3, %v2267_v15  ;;  %v2265_v17 = vmax.f32 %v1959_v16, 0.0  ;;  %v1970_v10 = vadd.f32 %v4777_v24, %v6116_v44  ;;  %4906 = vmatprep.mubr.msk.bf16.mxu0 %vm1459_vm3, %v2485_v25  ;;  %v6662_v16 = vld [vmem:[%s7414_s6] ss:$0 sm:$0xff] }
 0x227   :  { %v1961_v41 = vpop.f32.mrf.mxu1  ;;  %4907 = vmatmul.mubr.msk.bf16.gmra.mxu0 %vm1459_vm3, %v2486_v20 }
 0x228   :  { %2393 = vst.msk [vmem:[%s7415_s8 + $0x220] sm:$0xff] %vm1459_vm3, %v2265_v17  ;;  %v2268_v33 = vmax.f32 %v1970_v10, 0.0  ;;  %v1962_v4 = vadd.f32 %v6116_v44, %v1961_v41 }
 0x229   :  { %v4780_v11 = vpop.f32.mrf.mxu1 }
 0x22a   :  { %2396 = vst.msk [vmem:[%s7415_s8 + $0x238] sm:$0xff] %vm1459_vm3, %v2268_v33  ;;  %v2266_v31 = vmax.f32 %v1962_v4, 0.0  ;;  %v1983_v29 = vadd.f32 %v4780_v11, %v6116_v44  ;;  %v2488_v32 = vpack.c.bf16 %v2268_v33, %v2267_v15 }
 0x22b   :  { %v1974_v56 = vpop.f32.mrf.mxu1 }
 0x22c   :  { %2394 = vst.msk [vmem:[%s7415_s8 + $0x228] sm:$0xff] %vm1459_vm3, %v2266_v31  ;;  %v2487_v9 = vpack.c.bf16 %v2266_v31, %v2265_v17  ;;  %v2271_v23 = vmax.f32 %v1983_v29, 0.0  ;;  %v1975_v40 = vadd.f32 %v6116_v44, %v1974_v56 }
 0x22d   :  { %v4781_v53 = vpop.f32.mrf.mxu1 }
 0x22e   :  { %2399 = vst.msk [vmem:[%s7415_s8 + $0x250] sm:$0xff] %vm1459_vm3, %v2271_v23  ;;  %v2269_v61 = vmax.f32 %v1975_v40, 0.0  ;;  %v1986_v35 = vadd.f32 %v4781_v53, %v6116_v44  ;;  %4910 = vmatprep.mubr.msk.bf16.mxu0 %vm1459_vm3, %v2487_v9 }
 0x22f   :  { %v1977_v38 = vpop.f32.mrf.mxu1  ;;  %4911 = vmatmul.mubr.msk.bf16.gmra.mxu0 %vm1459_vm3, %v2488_v32 }
 0x230   :  { %2397 = vst.msk [vmem:[%s7415_s8 + $0x240] sm:$0xff] %vm1459_vm3, %v2269_v61  ;;  %v2272_v63 = vmax.f32 %v1986_v35, 0.0  ;;  %v1978_v45 = vadd.f32 %v6116_v44, %v1977_v38 }
 0x231   :  { %v4784_v59 = vpop.f32.mrf.mxu1 }
 0x232   :  { %2400 = vst.msk [vmem:[%s7415_s8 + $0x258] sm:$0xff] %vm1459_vm3, %v2272_v63  ;;  %v2270_v51 = vmax.f32 %v1978_v45, 0.0  ;;  %v1999_v37 = vadd.f32 %v4784_v59, %v6116_v44  ;;  %v2490_v18 = vpack.c.bf16 %v2272_v63, %v2271_v23 }
 0x233   :  { %v1990_v48 = vpop.f32.mrf.mxu1 }
 0x234   :  { %2398 = vst.msk [vmem:[%s7415_s8 + $0x248] sm:$0xff] %vm1459_vm3, %v2270_v51  ;;  %v2489_v49 = vpack.c.bf16 %v2270_v51, %v2269_v61  ;;  %v2275_v36 = vmax.f32 %v1999_v37, 0.0  ;;  %v1991_v13 = vadd.f32 %v6116_v44, %v1990_v48 }
 0x235   :  { %v4785_v62 = vpop.f32.mrf.mxu1 }
 0x236   :  { %2403 = vst.msk [vmem:[%s7415_s8 + $0x270] sm:$0xff] %vm1459_vm3, %v2275_v36  ;;  %v2273_v46 = vmax.f32 %v1991_v13, 0.0  ;;  %v2002_v22 = vadd.f32 %v4785_v62, %v6116_v44  ;;  %4914 = vmatprep.mubr.msk.bf16.mxu0 %vm1459_vm3, %v2489_v49 }
 0x237   :  { %v1993_v43 = vpop.f32.mrf.mxu1  ;;  %4915 = vmatmul.mubr.msk.bf16.gmra.mxu0 %vm1459_vm3, %v2490_v18 }
 0x238   :  { %2401 = vst.msk [vmem:[%s7415_s8 + $0x260] sm:$0xff] %vm1459_vm3, %v2273_v46  ;;  %v2276_v60 = vmax.f32 %v2002_v22, 0.0  ;;  %v1994_v47 = vadd.f32 %v6116_v44, %v1993_v43 }
 0x239   :  { %v4788_v5 = vpop.f32.mrf.mxu1 }
 0x23a   :  { %2404 = vst.msk [vmem:[%s7415_s8 + $0x278] sm:$0xff] %vm1459_vm3, %v2276_v60  ;;  %v2274_v1 = vmax.f32 %v1994_v47, 0.0  ;;  %v2015_v14 = vadd.f32 %v4788_v5, %v6116_v44  ;;  %v2492_v3 = vpack.c.bf16 %v2276_v60, %v2275_v36 }
 0x23b   :  { %v2006_v57 = vpop.f32.mrf.mxu1 }
 0x23c   :  { %2402 = vst.msk [vmem:[%s7415_s8 + $0x268] sm:$0xff] %vm1459_vm3, %v2274_v1  ;;  %v2491_v30 = vpack.c.bf16 %v2274_v1, %v2273_v46  ;;  %v2279_v2 = vmax.f32 %v2015_v14, 0.0  ;;  %v2007_v28 = vadd.f32 %v6116_v44, %v2006_v57 }
 0x23d   :  { %v4789_v52 = vpop.f32.mrf.mxu1 }
 0x23e   :  { %2407 = vst.msk [vmem:[%s7415_s8 + $0x290] sm:$0xff] %vm1459_vm3, %v2279_v2  ;;  %v2277_v8 = vmax.f32 %v2007_v28, 0.0  ;;  %v2018_v19 = vadd.f32 %v4789_v52, %v6116_v44  ;;  %4918 = vmatprep.mubr.msk.bf16.mxu0 %vm1459_vm3, %v2491_v30 }
 0x23f   :  { %v2009_v55 = vpop.f32.mrf.mxu1  ;;  %4919 = vmatmul.mubr.msk.bf16.gmra.mxu0 %vm1459_vm3, %v2492_v3 }
 0x240   :  { %2405 = vst.msk [vmem:[%s7415_s8 + $0x280] sm:$0xff] %vm1459_vm3, %v2277_v8  ;;  %v2280_v58 = vmax.f32 %v2018_v19, 0.0  ;;  %v2010_v0 = vadd.f32 %v6116_v44, %v2009_v55 }
 0x241   :  { %v4792_v34 = vpop.f32.mrf.mxu1 }
 0x242   :  { %2408 = vst.msk [vmem:[%s7415_s8 + $0x298] sm:$0xff] %vm1459_vm3, %v2280_v58  ;;  %v2278_v6 = vmax.f32 %v2010_v0, 0.0  ;;  %v2031_v12 = vadd.f32 %v4792_v34, %v6116_v44  ;;  %v2494_v21 = vpack.c.bf16 %v2280_v58, %v2279_v2 }
 0x243   :  { %v2022_v54 = vpop.f32.mrf.mxu1 }
 0x244   :  { %2406 = vst.msk [vmem:[%s7415_s8 + $0x288] sm:$0xff] %vm1459_vm3, %v2278_v6  ;;  %v2493_v42 = vpack.c.bf16 %v2278_v6, %v2277_v8  ;;  %v2283_v27 = vmax.f32 %v2031_v12, 0.0  ;;  %v2023_v50 = vadd.f32 %v6116_v44, %v2022_v54 }
 0x245   :  { %v4793_v7 = vpop.f32.mrf.mxu1 }
 0x246   :  { %2411 = vst.msk [vmem:[%s7415_s8 + $0x2b0] sm:$0xff] %vm1459_vm3, %v2283_v27  ;;  %v2281_v26 = vmax.f32 %v2023_v50, 0.0  ;;  %v2034_v39 = vadd.f32 %v4793_v7, %v6116_v44  ;;  %4922 = vmatprep.mubr.msk.bf16.mxu0 %vm1459_vm3, %v2493_v42 }
 0x247   :  { %v2025_v25 = vpop.f32.mrf.mxu1  ;;  %4923 = vmatmul.mubr.msk.bf16.gmra.mxu0 %vm1459_vm3, %v2494_v21 }
 0x248   :  { %2409 = vst.msk [vmem:[%s7415_s8 + $0x2a0] sm:$0xff] %vm1459_vm3, %v2281_v26  ;;  %v2284_v15 = vmax.f32 %v2034_v39, 0.0  ;;  %v2026_v20 = vadd.f32 %v6662_v16, %v2025_v25 }
 0x249   :  { %v4796_v24 = vpop.f32.mrf.mxu1 }
 0x24a   :  { %2412 = vst.msk [vmem:[%s7415_s8 + $0x2b8] sm:$0xff] %vm1459_vm3, %v2284_v15  ;;  %v2282_v44 = vmax.f32 %v2026_v20, 0.0  ;;  %v2047_v17 = vadd.f32 %v6662_v16, %v4796_v24  ;;  %v2496_v11 = vpack.c.bf16 %v2284_v15, %v2283_v27 }
 0x24b   :  { %v2038_v10 = vpop.f32.mrf.mxu1 }
 0x24c   :  { %2410 = vst.msk [vmem:[%s7415_s8 + $0x2a8] sm:$0xff] %vm1459_vm3, %v2282_v44  ;;  %v2495_v41 = vpack.c.bf16 %v2282_v44, %v2281_v26  ;;  %v2287_v33 = vmax.f32 %v2047_v17, 0.0  ;;  %v2039_v4 = vadd.f32 %v6662_v16, %v2038_v10 }
 0x24d   :  { %v4797_v31 = vpop.f32.mrf.mxu1 }
 0x24e   :  { %2415 = vst.msk [vmem:[%s7415_s8 + $0x2d0] sm:$0xff] %vm1459_vm3, %v2287_v33  ;;  %v2285_v29 = vmax.f32 %v2039_v4, 0.0  ;;  %v2050_v56 = vadd.f32 %v6662_v16, %v4797_v31  ;;  %4926 = vmatprep.mubr.msk.bf16.mxu0 %vm1459_vm3, %v2495_v41 }
 0x24f   :  { %v2041_v9 = vpop.f32.mrf.mxu1  ;;  %4927 = vmatmul.mubr.msk.bf16.gmra.mxu0 %vm1459_vm3, %v2496_v11 }
 0x250   :  { %2413 = vst.msk [vmem:[%s7415_s8 + $0x2c0] sm:$0xff] %vm1459_vm3, %v2285_v29  ;;  %v2288_v23 = vmax.f32 %v2050_v56, 0.0  ;;  %v2042_v40 = vadd.f32 %v6662_v16, %v2041_v9 }
 0x251   :  { %v4800_v32 = vpop.f32.mrf.mxu1 }
 0x252   :  { %2416 = vst.msk [vmem:[%s7415_s8 + $0x2d8] sm:$0xff] %vm1459_vm3, %v2288_v23  ;;  %v2286_v53 = vmax.f32 %v2042_v40, 0.0  ;;  %v2063_v61 = vadd.f32 %v6662_v16, %v4800_v32  ;;  %v2498_v59 = vpack.c.bf16 %v2288_v23, %v2287_v33 }
 0x253   :  { %v2054_v35 = vpop.f32.mrf.mxu1 }
 0x254   :  { %2414 = vst.msk [vmem:[%s7415_s8 + $0x2c8] sm:$0xff] %vm1459_vm3, %v2286_v53  ;;  %v2497_v38 = vpack.c.bf16 %v2286_v53, %v2285_v29  ;;  %v2291_v63 = vmax.f32 %v2063_v61, 0.0  ;;  %v2055_v45 = vadd.f32 %v6662_v16, %v2054_v35 }
 0x255   :  { %v4801_v51 = vpop.f32.mrf.mxu1 }
 0x256   :  { %2419 = vst.msk [vmem:[%s7415_s8 + $0x2f0] sm:$0xff] %vm1459_vm3, %v2291_v63  ;;  %v2289_v37 = vmax.f32 %v2055_v45, 0.0  ;;  %v2066_v48 = vadd.f32 %v6662_v16, %v4801_v51  ;;  %4930 = vmatprep.mubr.msk.bf16.mxu0 %vm1459_vm3, %v2497_v38 }
 0x257   :  { %v2057_v49 = vpop.f32.mrf.mxu1  ;;  %4931 = vmatmul.mubr.msk.bf16.gmra.mxu0 %vm1459_vm3, %v2498_v59 }
 0x258   :  { %2417 = vst.msk [vmem:[%s7415_s8 + $0x2e0] sm:$0xff] %vm1459_vm3, %v2289_v37  ;;  %v2292_v36 = vmax.f32 %v2066_v48, 0.0  ;;  %v2058_v13 = vadd.f32 %v6662_v16, %v2057_v49 }
 0x259   :  { %v4804_v18 = vpop.f32.mrf.mxu1 }
 0x25a   :  { %2420 = vst.msk [vmem:[%s7415_s8 + $0x2f8] sm:$0xff] %vm1459_vm3, %v2292_v36  ;;  %v2290_v62 = vmax.f32 %v2058_v13, 0.0  ;;  %v2079_v46 = vadd.f32 %v6662_v16, %v4804_v18  ;;  %v2500_v5 = vpack.c.bf16 %v2292_v36, %v2291_v63 }
 0x25b   :  { %v2070_v22 = vpop.f32.mrf.mxu1 }
 0x25c   :  { %2418 = vst.msk [vmem:[%s7415_s8 + $0x2e8] sm:$0xff] %vm1459_vm3, %v2290_v62  ;;  %v2499_v43 = vpack.c.bf16 %v2290_v62, %v2289_v37  ;;  %v2295_v60 = vmax.f32 %v2079_v46, 0.0  ;;  %v2071_v47 = vadd.f32 %v6662_v16, %v2070_v22 }
 0x25d   :  { %v4805_v1 = vpop.f32.mrf.mxu1 }
 0x25e   :  { %2423 = vst.msk [vmem:[%s7415_s8 + $0x310] sm:$0xff] %vm1459_vm3, %v2295_v60  ;;  %v2293_v14 = vmax.f32 %v2071_v47, 0.0  ;;  %v2082_v57 = vadd.f32 %v6662_v16, %v4805_v1  ;;  %4934 = vmatprep.mubr.msk.bf16.mxu0 %vm1459_vm3, %v2499_v43 }
 0x25f   :  { %v2073_v30 = vpop.f32.mrf.mxu1  ;;  %4935 = vmatmul.mubr.msk.bf16.gmra.mxu0 %vm1459_vm3, %v2500_v5 }
 0x260   :  { %2421 = vst.msk [vmem:[%s7415_s8 + $0x300] sm:$0xff] %vm1459_vm3, %v2293_v14  ;;  %v2296_v2 = vmax.f32 %v2082_v57, 0.0  ;;  %v2074_v28 = vadd.f32 %v6662_v16, %v2073_v30 }
 0x261   :  { %v4808_v3 = vpop.f32.mrf.mxu1 }
 0x262   :  { %2424 = vst.msk [vmem:[%s7415_s8 + $0x318] sm:$0xff] %vm1459_vm3, %v2296_v2  ;;  %v2294_v52 = vmax.f32 %v2074_v28, 0.0  ;;  %v2095_v8 = vadd.f32 %v6662_v16, %v4808_v3  ;;  %v2502_v34 = vpack.c.bf16 %v2296_v2, %v2295_v60 }
 0x263   :  { %v2086_v19 = vpop.f32.mrf.mxu1 }
 0x264   :  { %2422 = vst.msk [vmem:[%s7415_s8 + $0x308] sm:$0xff] %vm1459_vm3, %v2294_v52  ;;  %v2501_v55 = vpack.c.bf16 %v2294_v52, %v2293_v14  ;;  %v2299_v58 = vmax.f32 %v2095_v8, 0.0  ;;  %v2087_v0 = vadd.f32 %v6662_v16, %v2086_v19 }
 0x265   :  { %v4809_v6 = vpop.f32.mrf.mxu1 }
 0x266   :  { %2427 = vst.msk [vmem:[%s7415_s8 + $0x330] sm:$0xff] %vm1459_vm3, %v2299_v58  ;;  %v2297_v12 = vmax.f32 %v2087_v0, 0.0  ;;  %v2098_v54 = vadd.f32 %v6662_v16, %v4809_v6  ;;  %4938 = vmatprep.mubr.msk.bf16.mxu0 %vm1459_vm3, %v2501_v55 }
 0x267   :  { %v2089_v42 = vpop.f32.mrf.mxu1  ;;  %v4844_v27 = vpop.f32.mrf.mxu0  ;;  %4939 = vmatmul.mubr.msk.bf16.gmra.mxu0 %vm1459_vm3, %v2502_v34 }
 0x268   :  { %2425 = vst.msk [vmem:[%s7415_s8 + $0x320] sm:$0xff] %vm1459_vm3, %v2297_v12  ;;  %v2300_v50 = vmax.f32 %v2098_v54, 0.0  ;;  %v2090_v21 = vadd.f32 %v6662_v16, %v2089_v42  ;;  %v4241_v7 = vpack.c.bf16 %v4844_v27, %v4844_v27 }
 0x269   :  { %v4812_v26 = vpop.f32.mrf.mxu1  ;;  %v2755_v39 = vpop.f32.mrf.mxu0 }
 0x26a   :  { %2428 = vst.msk [vmem:[%s7415_s8 + $0x338] sm:$0xff] %vm1459_vm3, %v2300_v50  ;;  %v2298_v25 = vmax.f32 %v2090_v21, 0.0  ;;  %v2111_v15 = vadd.f32 %v6662_v16, %v4812_v26  ;;  %v4239_v20 = vpack.c.bf16 %v2755_v39, %v2755_v39  ;;  %v2504_v4 = vpack.c.bf16 %v2300_v50, %v2299_v58 }
 0x26b   :  { %3781 = vst.msk [vmem:[%s7416_s9 + $0x8] sm:$0xf] %vm3778_vm4, %v4241_v7  ;;  %v2102_v24 = vpop.f32.mrf.mxu1  ;;  %v4845_v44 = vpop.f32.mrf.mxu0 }
 0x26c   :  { %2426 = vst.msk [vmem:[%s7415_s8 + $0x328] sm:$0xff] %vm1459_vm3, %v2298_v25  ;;  %v2503_v17 = vpack.c.bf16 %v2298_v25, %v2297_v12  ;;  %v2303_v10 = vmax.f32 %v2111_v15, 0.0  ;;  %v2103_v41 = vadd.f32 %v6662_v16, %v2102_v24  ;;  %v4242_v33 = vpack.c.bf16 %v4845_v44, %v4845_v44 }
 0x26d   :  { %3779 = vst.msk [vmem:[%s7416_s9] sm:$0xf] %vm3778_vm4, %v4239_v20  ;;  %v4813_v11 = vpop.f32.mrf.mxu1  ;;  %v2758_v31 = vpop.f32.mrf.mxu0 }
 0x26e   :  { %2431 = vst.msk [vmem:[%s7415_s8 + $0x350] sm:$0xff] %vm1459_vm3, %v2303_v10  ;;  %v2301_v29 = vmax.f32 %v2103_v41, 0.0  ;;  %v2114_v56 = vadd.f32 %v6662_v16, %v4813_v11  ;;  %v4240_v9 = vpack.c.bf16 %v2758_v31, %v2758_v31  ;;  %4942 = vmatprep.mubr.msk.bf16.mxu0 %vm1459_vm3, %v2503_v17 }
 0x26f   :  { %3782 = vst.msk [vmem:[%s7416_s9 + $0xc] sm:$0xf] %vm3778_vm4, %v4242_v33  ;;  %v2105_v23 = vpop.f32.mrf.mxu1  ;;  %v4848_v40 = vpop.f32.mrf.mxu0  ;;  %4943 = vmatmul.mubr.msk.bf16.gmra.mxu0 %vm1459_vm3, %v2504_v4 }
 0x270   :  { %2429 = vst.msk [vmem:[%s7415_s8 + $0x340] sm:$0xff] %vm1459_vm3, %v2301_v29  ;;  %v2304_v32 = vmax.f32 %v2114_v56, 0.0  ;;  %v2106_v53 = vadd.f32 %v6662_v16, %v2105_v23  ;;  %v4245_v61 = vpack.c.bf16 %v4848_v40, %v4848_v40 }
 0x271   :  { %3780 = vst.msk [vmem:[%s7416_s9 + $0x4] sm:$0xf] %vm3778_vm4, %v4240_v9  ;;  %v4816_v35 = vpop.f32.mrf.mxu1  ;;  %v2771_v38 = vpop.f32.mrf.mxu0 }
 0x272   :  { %2432 = vst.msk [vmem:[%s7415_s8 + $0x358] sm:$0xff] %vm1459_vm3, %v2304_v32  ;;  %v2302_v63 = vmax.f32 %v2106_v53, 0.0  ;;  %v2127_v45 = vadd.f32 %v6662_v16, %v4816_v35  ;;  %v4243_v59 = vpack.c.bf16 %v2771_v38, %v2771_v38  ;;  %v2506_v18 = vpack.c.bf16 %v2304_v32, %v2303_v10 }
 0x273   :  { %3785 = vst.msk [vmem:[%s7416_s9 + $0x18] sm:$0xf] %vm3778_vm4, %v4245_v61  ;;  %v2118_v51 = vpop.f32.mrf.mxu1  ;;  %v4849_v37 = vpop.f32.mrf.mxu0 }
 0x274   :  { %2430 = vst.msk [vmem:[%s7415_s8 + $0x348] sm:$0xff] %vm1459_vm3, %v2302_v63  ;;  %v2505_v48 = vpack.c.bf16 %v2302_v63, %v2301_v29  ;;  %v2307_v49 = vmax.f32 %v2127_v45, 0.0  ;;  %v2119_v36 = vadd.f32 %v6662_v16, %v2118_v51  ;;  %v4246_v13 = vpack.c.bf16 %v4849_v37, %v4849_v37 }
 0x275   :  { %3783 = vst.msk [vmem:[%s7416_s9 + $0x10] sm:$0xf] %vm3778_vm4, %v4243_v59  ;;  %v4817_v62 = vpop.f32.mrf.mxu1  ;;  %v2774_v46 = vpop.f32.mrf.mxu0 }
 0x276   :  { %2435 = vst.msk [vmem:[%s7415_s8 + $0x370] sm:$0xff] %vm1459_vm3, %v2307_v49  ;;  %v2305_v22 = vmax.f32 %v2119_v36, 0.0  ;;  %v2130_v43 = vadd.f32 %v6662_v16, %v4817_v62  ;;  %v4244_v60 = vpack.c.bf16 %v2774_v46, %v2774_v46  ;;  %4946 = vmatprep.mubr.msk.bf16.mxu0 %vm1459_vm3, %v2505_v48 }
 0x277   :  { %3786 = vst.msk [vmem:[%s7416_s9 + $0x1c] sm:$0xf] %vm3778_vm4, %v4246_v13  ;;  %v2121_v47 = vpop.f32.mrf.mxu1  ;;  %v4852_v5 = vpop.f32.mrf.mxu0  ;;  %4947 = vmatmul.mubr.msk.bf16.gmra.mxu0 %vm1459_vm3, %v2506_v18 }
 0x278   :  { %2433 = vst.msk [vmem:[%s7415_s8 + $0x360] sm:$0xff] %vm1459_vm3, %v2305_v22  ;;  %v2308_v1 = vmax.f32 %v2130_v43, 0.0  ;;  %v2122_v14 = vadd.f32 %v6662_v16, %v2121_v47  ;;  %v4249_v57 = vpack.c.bf16 %v4852_v5, %v4852_v5 }
 0x279   :  { %3784 = vst.msk [vmem:[%s7416_s9 + $0x14] sm:$0xf] %vm3778_vm4, %v4244_v60  ;;  %v4820_v30 = vpop.f32.mrf.mxu1  ;;  %v2787_v2 = vpop.f32.mrf.mxu0 }
 0x27a   :  { %2436 = vst.msk [vmem:[%s7415_s8 + $0x378] sm:$0xff] %vm1459_vm3, %v2308_v1  ;;  %v2306_v28 = vmax.f32 %v2122_v14, 0.0  ;;  %v2143_v3 = vadd.f32 %v6662_v16, %v4820_v30  ;;  %v4247_v52 = vpack.c.bf16 %v2787_v2, %v2787_v2  ;;  %v2508_v6 = vpack.c.bf16 %v2308_v1, %v2307_v49 }
 0x27b   :  { %3789 = vst.msk [vmem:[%s7416_s9 + $0x28] sm:$0xf] %vm3778_vm4, %v4249_v57  ;;  %v2134_v8 = vpop.f32.mrf.mxu1  ;;  %v4853_v19 = vpop.f32.mrf.mxu0 }
 0x27c   :  { %2434 = vst.msk [vmem:[%s7415_s8 + $0x368] sm:$0xff] %vm1459_vm3, %v2306_v28  ;;  %v2507_v55 = vpack.c.bf16 %v2306_v28, %v2305_v22  ;;  %v2311_v58 = vmax.f32 %v2143_v3, 0.0  ;;  %v2135_v0 = vadd.f32 %v6662_v16, %v2134_v8  ;;  %v4250_v34 = vpack.c.bf16 %v4853_v19, %v4853_v19 }
 0x27d   :  { %3787 = vst.msk [vmem:[%s7416_s9 + $0x20] sm:$0xf] %vm3778_vm4, %v4247_v52  ;;  %v4821_v12 = vpop.f32.mrf.mxu1  ;;  %v2790_v54 = vpop.f32.mrf.mxu0 }
 0x27e   :  { %2439 = vst.msk [vmem:[%s7415_s8 + $0x390] sm:$0xff] %vm1459_vm3, %v2311_v58  ;;  %v2309_v42 = vmax.f32 %v2135_v0, 0.0  ;;  %v2146_v27 = vadd.f32 %v6662_v16, %v4821_v12  ;;  %v4248_v50 = vpack.c.bf16 %v2790_v54, %v2790_v54  ;;  %4950 = vmatprep.mubr.msk.bf16.mxu0 %vm1459_vm3, %v2507_v55 }
 0x27f   :  { %3790 = vst.msk [vmem:[%s7416_s9 + $0x2c] sm:$0xf] %vm3778_vm4, %v4250_v34  ;;  %v2137_v21 = vpop.f32.mrf.mxu1  ;;  %v4856_v7 = vpop.f32.mrf.mxu0  ;;  %4951 = vmatmul.mubr.msk.bf16.gmra.mxu0 %vm1459_vm3, %v2508_v6 }
 0x280   :  { %2437 = vst.msk [vmem:[%s7415_s8 + $0x380] sm:$0xff] %vm1459_vm3, %v2309_v42  ;;  %v2312_v26 = vmax.f32 %v2146_v27, 0.0  ;;  %v2138_v39 = vadd.f32 %v6662_v16, %v2137_v21  ;;  %v4253_v25 = vpack.c.bf16 %v4856_v7, %v4856_v7 }
 0x281   :  { %3788 = vst.msk [vmem:[%s7416_s9 + $0x24] sm:$0xf] %vm3778_vm4, %v4248_v50  ;;  %v4824_v15 = vpop.f32.mrf.mxu1  ;;  %v2803_v20 = vpop.f32.mrf.mxu0 }
 0x282   :  { %2440 = vst.msk [vmem:[%s7415_s8 + $0x398] sm:$0xff] %vm1459_vm3, %v2312_v26  ;;  %v2310_v24 = vmax.f32 %v2138_v39, 0.0  ;;  %v2159_v44 = vadd.f32 %v6662_v16, %v4824_v15  ;;  %v4251_v17 = vpack.c.bf16 %v2803_v20, %v2803_v20  ;;  %v2510_v29 = vpack.c.bf16 %v2312_v26, %v2311_v58 }
 0x283   :  { %3793 = vst.msk [vmem:[%s7416_s9 + $0x38] sm:$0xf] %vm3778_vm4, %v4253_v25  ;;  %v2150_v10 = vpop.f32.mrf.mxu1  ;;  %v4857_v41 = vpop.f32.mrf.mxu0 }
 0x284   :  { %2438 = vst.msk [vmem:[%s7415_s8 + $0x388] sm:$0xff] %vm1459_vm3, %v2310_v24  ;;  %v2509_v33 = vpack.c.bf16 %v2310_v24, %v2309_v42  ;;  %v2315_v4 = vmax.f32 %v2159_v44, 0.0  ;;  %v2151_v11 = vadd.f32 %v6662_v16, %v2150_v10  ;;  %v4254_v31 = vpack.c.bf16 %v4857_v41, %v4857_v41 }
 0x285   :  { %3791 = vst.msk [vmem:[%s7416_s9 + $0x30] sm:$0xf] %vm3778_vm4, %v4251_v17  ;;  %v4825_v56 = vpop.f32.mrf.mxu1  ;;  %v2806_v9 = vpop.f32.mrf.mxu0 }
 0x286   :  { %2443 = vst.msk [vmem:[%s7415_s8 + $0x3b0] sm:$0xff] %vm1459_vm3, %v2315_v4  ;;  %v2313_v23 = vmax.f32 %v2151_v11, 0.0  ;;  %v2162_v40 = vadd.f32 %v6662_v16, %v4825_v56  ;;  %v4252_v32 = vpack.c.bf16 %v2806_v9, %v2806_v9  ;;  %4954 = vmatprep.mubr.msk.bf16.mxu0 %vm1459_vm3, %v2509_v33 }
 0x287   :  { %3794 = vst.msk [vmem:[%s7416_s9 + $0x3c] sm:$0xf] %vm3778_vm4, %v4254_v31  ;;  %v2153_v53 = vpop.f32.mrf.mxu1  ;;  %v4860_v61 = vpop.f32.mrf.mxu0  ;;  %4955 = vmatmul.mubr.msk.bf16.gmra.mxu0 %vm1459_vm3, %v2510_v29 }
 0x288   :  { %2441 = vst.msk [vmem:[%s7415_s8 + $0x3a0] sm:$0xff] %vm1459_vm3, %v2313_v23  ;;  %v2316_v35 = vmax.f32 %v2162_v40, 0.0  ;;  %v2154_v38 = vadd.f32 %v6662_v16, %v2153_v53  ;;  %v4257_v63 = vpack.c.bf16 %v4860_v61, %v4860_v61 }
 0x289   :  { %3792 = vst.msk [vmem:[%s7416_s9 + $0x34] sm:$0xf] %vm3778_vm4, %v4252_v32  ;;  %v4828_v45 = vpop.f32.mrf.mxu1  ;;  %v2819_v59 = vpop.f32.mrf.mxu0 }
 0x28a   :  { %2444 = vst.msk [vmem:[%s7415_s8 + $0x3b8] sm:$0xff] %vm1459_vm3, %v2316_v35  ;;  %v2314_v51 = vmax.f32 %v2154_v38, 0.0  ;;  %v2175_v37 = vadd.f32 %v6662_v16, %v4828_v45  ;;  %v4255_v48 = vpack.c.bf16 %v2819_v59, %v2819_v59  ;;  %v2512_v22 = vpack.c.bf16 %v2316_v35, %v2315_v4 }
 0x28b   :  { %3797 = vst.msk [vmem:[%s7416_s9 + $0x48] sm:$0xf] %vm3778_vm4, %v4257_v63  ;;  %v2166_v49 = vpop.f32.mrf.mxu1  ;;  %v4861_v36 = vpop.f32.mrf.mxu0 }
 0x28c   :  { %2442 = vst.msk [vmem:[%s7415_s8 + $0x3a8] sm:$0xff] %vm1459_vm3, %v2314_v51  ;;  %v2511_v13 = vpack.c.bf16 %v2314_v51, %v2313_v23  ;;  %v2319_v18 = vmax.f32 %v2175_v37, 0.0  ;;  %v2167_v62 = vadd.f32 %v6662_v16, %v2166_v49  ;;  %v4258_v46 = vpack.c.bf16 %v4861_v36, %v4861_v36 }
 0x28d   :  { %3795 = vst.msk [vmem:[%s7416_s9 + $0x40] sm:$0xf] %vm3778_vm4, %v4255_v48  ;;  %v4829_v43 = vpop.f32.mrf.mxu1  ;;  %v2822_v60 = vpop.f32.mrf.mxu0 }
 0x28e   :  { %2447 = vst.msk [vmem:[%s7415_s8 + $0x3d0] sm:$0xff] %vm1459_vm3, %v2319_v18  ;;  %v2317_v47 = vmax.f32 %v2167_v62, 0.0  ;;  %v2178_v5 = vadd.f32 %v6662_v16, %v4829_v43  ;;  %v4256_v1 = vpack.c.bf16 %v2822_v60, %v2822_v60  ;;  %4958 = vmatprep.mubr.msk.bf16.mxu0 %vm1459_vm3, %v2511_v13 }
 0x28f   :  { %3798 = vst.msk [vmem:[%s7416_s9 + $0x4c] sm:$0xf] %vm3778_vm4, %v4258_v46  ;;  %v2169_v14 = vpop.f32.mrf.mxu1  ;;  %v4864_v57 = vpop.f32.mrf.mxu0  ;;  %4959 = vmatmul.mubr.msk.bf16.gmra.mxu0 %vm1459_vm3, %v2512_v22 }
 0x290   :  { %2445 = vst.msk [vmem:[%s7415_s8 + $0x3c0] sm:$0xff] %vm1459_vm3, %v2317_v47  ;;  %v2320_v30 = vmax.f32 %v2178_v5, 0.0  ;;  %v2170_v2 = vadd.f32 %v6662_v16, %v2169_v14  ;;  %v4261_v28 = vpack.c.bf16 %v4864_v57, %v4864_v57 }
 0x291   :  { %3796 = vst.msk [vmem:[%s7416_s9 + $0x44] sm:$0xf] %vm3778_vm4, %v4256_v1  ;;  %v4832_v3 = vpop.f32.mrf.mxu1  ;;  %v2835_v52 = vpop.f32.mrf.mxu0 }
 0x292   :  { %2448 = vst.msk [vmem:[%s7415_s8 + $0x3d8] sm:$0xff] %vm1459_vm3, %v2320_v30  ;;  %v2318_v8 = vmax.f32 %v2170_v2, 0.0  ;;  %v2191_v19 = vadd.f32 %v6662_v16, %v4832_v3  ;;  %v4259_v55 = vpack.c.bf16 %v2835_v52, %v2835_v52  ;;  %v2514_v42 = vpack.c.bf16 %v2320_v30, %v2319_v18 }
 0x293   :  { %3801 = vst.msk [vmem:[%s7416_s9 + $0x58] sm:$0xf] %vm3778_vm4, %v4261_v28  ;;  %v2182_v58 = vpop.f32.mrf.mxu1  ;;  %v4865_v0 = vpop.f32.mrf.mxu0 }
 0x294   :  { %2446 = vst.msk [vmem:[%s7415_s8 + $0x3c8] sm:$0xff] %vm1459_vm3, %v2318_v8  ;;  %v2513_v34 = vpack.c.bf16 %v2318_v8, %v2317_v47  ;;  %v2323_v6 = vmax.f32 %v2191_v19, 0.0  ;;  %v2183_v12 = vadd.f32 %v6662_v16, %v2182_v58  ;;  %v4262_v54 = vpack.c.bf16 %v4865_v0, %v4865_v0 }
 0x295   :  { %3799 = vst.msk [vmem:[%s7416_s9 + $0x50] sm:$0xf] %vm3778_vm4, %v4259_v55  ;;  %v4833_v27 = vpop.f32.mrf.mxu1  ;;  %v2838_v50 = vpop.f32.mrf.mxu0 }
 0x296   :  { %2451 = vst.msk [vmem:[%s7415_s8 + $0x3f0] sm:$0xff] %vm1459_vm3, %v2323_v6  ;;  %v2321_v21 = vmax.f32 %v2183_v12, 0.0  ;;  %v2194_v7 = vadd.f32 %v6662_v16, %v4833_v27  ;;  %v4260_v26 = vpack.c.bf16 %v2838_v50, %v2838_v50  ;;  %4962 = vmatprep.mubr.msk.bf16.mxu0 %vm1459_vm3, %v2513_v34 }
 0x297   :  { %3802 = vst.msk [vmem:[%s7416_s9 + $0x5c] sm:$0xf] %vm3778_vm4, %v4262_v54  ;;  %v2185_v39 = vpop.f32.mrf.mxu1  ;;  %v4868_v25 = vpop.f32.mrf.mxu0  ;;  %4963 = vmatmul.mubr.msk.bf16.gmra.mxu0 %vm1459_vm3, %v2514_v42 }
 0x298   :  { %2449 = vst.msk [vmem:[%s7415_s8 + $0x3e0] sm:$0xff] %vm1459_vm3, %v2321_v21  ;;  %v2324_v15 = vmax.f32 %v2194_v7, 0.0  ;;  %v2186_v20 = vadd.f32 %v6662_v16, %v2185_v39  ;;  %v4265_v24 = vpack.c.bf16 %v4868_v25, %v4868_v25 }
 0x299   :  { %3800 = vst.msk [vmem:[%s7416_s9 + $0x54] sm:$0xf] %vm3778_vm4, %v4260_v26  ;;  %v2851_v44 = vpop.f32.mrf.mxu0 }
 0x29a   :  { %2452 = vst.msk [vmem:[%s7415_s8 + $0x3f8] sm:$0xff] %vm1459_vm3, %v2324_v15  ;;  %v2322_v17 = vmax.f32 %v2186_v20, 0.0  ;;  %v4263_v10 = vpack.c.bf16 %v2851_v44, %v2851_v44  ;;  %v2516_v4 = vpack.c.bf16 %v2324_v15, %v2323_v6 }
 0x29b   :  { %3805 = vst.msk [vmem:[%s7416_s9 + $0x68] sm:$0xf] %vm3778_vm4, %v4265_v24  ;;  %v4869_v41 = vpop.f32.mrf.mxu0 }
 0x29c   :  { %2450 = vst.msk [vmem:[%s7415_s8 + $0x3e8] sm:$0xff] %vm1459_vm3, %v2322_v17  ;;  %v2515_v16 = vpack.c.bf16 %v2322_v17, %v2321_v21  ;;  %v4266_v33 = vpack.c.bf16 %v4869_v41, %v4869_v41 }
 0x29d   :  { %3803 = vst.msk [vmem:[%s7416_s9 + $0x60] sm:$0xf] %vm3778_vm4, %v4263_v10  ;;  %v2854_v11 = vpop.f32.mrf.mxu0 }
 0x29e   :  { %3806 = vst.msk [vmem:[%s7416_s9 + $0x6c] sm:$0xf] %vm3778_vm4, %v4266_v33  ;;  %v4264_v31 = vpack.c.bf16 %v2854_v11, %v2854_v11  ;;  %4966 = vmatprep.mubr.msk.bf16.mxu0 %vm1459_vm3, %v2515_v16 }
 0x29f   :  { %v4872_v29 = vpop.f32.mrf.mxu0  ;;  %4967 = vmatmul.mubr.msk.bf16.gmra.mxu0 %vm1459_vm3, %v2516_v4 }
 0x2a0   :  { %3804 = vst.msk [vmem:[%s7416_s9 + $0x64] sm:$0xf] %vm3778_vm4, %v4264_v31  ;;  %v4269_v56 = vpack.c.bf16 %v4872_v29, %v4872_v29 }
 0x2a1   :  { %v2867_v9 = vpop.f32.mrf.mxu0 }
 0x2a2   :  { %3809 = vst.msk [vmem:[%s7416_s9 + $0x78] sm:$0xf] %vm3778_vm4, %v4269_v56  ;;  %v4267_v23 = vpack.c.bf16 %v2867_v9, %v2867_v9 }
 0x2a3   :  { %v4873_v40 = vpop.f32.mrf.mxu0 }
 0x2a4   :  { %3807 = vst.msk [vmem:[%s7416_s9 + $0x70] sm:$0xf] %vm3778_vm4, %v4267_v23  ;;  %v4270_v32 = vpack.c.bf16 %v4873_v40, %v4873_v40 }
 0x2a5   :  { %v2870_v53 = vpop.f32.mrf.mxu0 }
 0x2a6   :  { %3810 = vst.msk [vmem:[%s7416_s9 + $0x7c] sm:$0xf] %vm3778_vm4, %v4270_v32  ;;  %v4268_v61 = vpack.c.bf16 %v2870_v53, %v2870_v53 }
 0x2a7   :  { %v4876_v35 = vpop.f32.mrf.mxu0 }
 0x2a8   :  { %3808 = vst.msk [vmem:[%s7416_s9 + $0x74] sm:$0xf] %vm3778_vm4, %v4268_v61  ;;  %v4273_v38 = vpack.c.bf16 %v4876_v35, %v4876_v35 }
 0x2a9   :  { %v2883_v63 = vpop.f32.mrf.mxu0 }
 0x2aa   :  { %3813 = vst.msk [vmem:[%s7416_s9 + $0x88] sm:$0xf] %vm3778_vm4, %v4273_v38  ;;  %v4271_v45 = vpack.c.bf16 %v2883_v63, %v2883_v63 }
 0x2ab   :  { %v4877_v59 = vpop.f32.mrf.mxu0 }
 0x2ac   :  { %3811 = vst.msk [vmem:[%s7416_s9 + $0x80] sm:$0xf] %vm3778_vm4, %v4271_v45  ;;  %v4274_v51 = vpack.c.bf16 %v4877_v59, %v4877_v59 }
 0x2ad   :  { %v2886_v37 = vpop.f32.mrf.mxu0 }
 0x2ae   :  { %3814 = vst.msk [vmem:[%s7416_s9 + $0x8c] sm:$0xf] %vm3778_vm4, %v4274_v51  ;;  %v4272_v48 = vpack.c.bf16 %v2886_v37, %v2886_v37 }
 0x2af   :  { %v4880_v49 = vpop.f32.mrf.mxu0 }
 0x2b0   :  { %3812 = vst.msk [vmem:[%s7416_s9 + $0x84] sm:$0xf] %vm3778_vm4, %v4272_v48  ;;  %v4277_v36 = vpack.c.bf16 %v4880_v49, %v4880_v49 }
 0x2b1   :  { %v2899_v13 = vpop.f32.mrf.mxu0 }
 0x2b2   :  { %3817 = vst.msk [vmem:[%s7416_s9 + $0x98] sm:$0xf] %vm3778_vm4, %v4277_v36  ;;  %v4275_v18 = vpack.c.bf16 %v2899_v13, %v2899_v13 }
 0x2b3   :  { %v4881_v62 = vpop.f32.mrf.mxu0 }
 0x2b4   :  { %3815 = vst.msk [vmem:[%s7416_s9 + $0x90] sm:$0xf] %vm3778_vm4, %v4275_v18  ;;  %v4278_v46 = vpack.c.bf16 %v4881_v62, %v4881_v62 }
 0x2b5   :  { %v2902_v22 = vpop.f32.mrf.mxu0 }
 0x2b6   :  { %3818 = vst.msk [vmem:[%s7416_s9 + $0x9c] sm:$0xf] %vm3778_vm4, %v4278_v46  ;;  %v4276_v43 = vpack.c.bf16 %v2902_v22, %v2902_v22 }
 0x2b7   :  { %v4884_v60 = vpop.f32.mrf.mxu0 }
 0x2b8   :  { %3816 = vst.msk [vmem:[%s7416_s9 + $0x94] sm:$0xf] %vm3778_vm4, %v4276_v43  ;;  %v4281_v47 = vpack.c.bf16 %v4884_v60, %v4884_v60 }
 0x2b9   :  { %v2915_v5 = vpop.f32.mrf.mxu0 }
 0x2ba   :  { %3821 = vst.msk [vmem:[%s7416_s9 + $0xa8] sm:$0xf] %vm3778_vm4, %v4281_v47  ;;  %v4279_v1 = vpack.c.bf16 %v2915_v5, %v2915_v5 }
 0x2bb   :  { %v4885_v14 = vpop.f32.mrf.mxu0 }
 0x2bc   :  { %3819 = vst.msk [vmem:[%s7416_s9 + $0xa0] sm:$0xf] %vm3778_vm4, %v4279_v1  ;;  %v4282_v57 = vpack.c.bf16 %v4885_v14, %v4885_v14 }
 0x2bd   :  { %v2918_v30 = vpop.f32.mrf.mxu0 }
 0x2be   :  { %3822 = vst.msk [vmem:[%s7416_s9 + $0xac] sm:$0xf] %vm3778_vm4, %v4282_v57  ;;  %v4280_v2 = vpack.c.bf16 %v2918_v30, %v2918_v30 }
 0x2bf   :  { %v4888_v28 = vpop.f32.mrf.mxu0 }
 0x2c0   :  { %3820 = vst.msk [vmem:[%s7416_s9 + $0xa4] sm:$0xf] %vm3778_vm4, %v4280_v2  ;;  %v4285_v3 = vpack.c.bf16 %v4888_v28, %v4888_v28 }
 0x2c1   :  { %v2931_v52 = vpop.f32.mrf.mxu0 }
 0x2c2   :  { %3825 = vst.msk [vmem:[%s7416_s9 + $0xb8] sm:$0xf] %vm3778_vm4, %v4285_v3  ;;  %v4283_v8 = vpack.c.bf16 %v2931_v52, %v2931_v52 }
 0x2c3   :  { %v4889_v19 = vpop.f32.mrf.mxu0 }
 0x2c4   :  { %3823 = vst.msk [vmem:[%s7416_s9 + $0xb0] sm:$0xf] %vm3778_vm4, %v4283_v8  ;;  %v4286_v55 = vpack.c.bf16 %v4889_v19, %v4889_v19 }
 0x2c5   :  { %v2934_v58 = vpop.f32.mrf.mxu0 }
 0x2c6   :  { %3826 = vst.msk [vmem:[%s7416_s9 + $0xbc] sm:$0xf] %vm3778_vm4, %v4286_v55  ;;  %v4284_v0 = vpack.c.bf16 %v2934_v58, %v2934_v58 }
 0x2c7   :  { %v4892_v34 = vpop.f32.mrf.mxu0 }
 0x2c8   :  { %3824 = vst.msk [vmem:[%s7416_s9 + $0xb4] sm:$0xf] %vm3778_vm4, %v4284_v0  ;;  %v4289_v6 = vpack.c.bf16 %v4892_v34, %v4892_v34 }
 0x2c9   :  { %v2947_v12 = vpop.f32.mrf.mxu0 }
 0x2ca   :  { %3829 = vst.msk [vmem:[%s7416_s9 + $0xc8] sm:$0xf] %vm3778_vm4, %v4289_v6  ;;  %v4287_v54 = vpack.c.bf16 %v2947_v12, %v2947_v12 }
 0x2cb   :  { %v4893_v42 = vpop.f32.mrf.mxu0 }
 0x2cc   :  { %3827 = vst.msk [vmem:[%s7416_s9 + $0xc0] sm:$0xf] %vm3778_vm4, %v4287_v54  ;;  %v4290_v27 = vpack.c.bf16 %v4893_v42, %v4893_v42 }
 0x2cd   :  { %v2950_v50 = vpop.f32.mrf.mxu0 }
 0x2ce   :  { %3830 = vst.msk [vmem:[%s7416_s9 + $0xcc] sm:$0xf] %vm3778_vm4, %v4290_v27  ;;  %v4288_v21 = vpack.c.bf16 %v2950_v50, %v2950_v50 }
 0x2cf   :  { %v4896_v7 = vpop.f32.mrf.mxu0 }
 0x2d0   :  { %3828 = vst.msk [vmem:[%s7416_s9 + $0xc4] sm:$0xf] %vm3778_vm4, %v4288_v21  ;;  %v4293_v26 = vpack.c.bf16 %v4896_v7, %v4896_v7 }
 0x2d1   :  { %v2963_v39 = vpop.f32.mrf.mxu0 }
 0x2d2   :  { %3833 = vst.msk [vmem:[%s7416_s9 + $0xd8] sm:$0xf] %vm3778_vm4, %v4293_v26  ;;  %v4291_v25 = vpack.c.bf16 %v2963_v39, %v2963_v39 }
 0x2d3   :  { %v4897_v15 = vpop.f32.mrf.mxu0 }
 0x2d4   :  { %3831 = vst.msk [vmem:[%s7416_s9 + $0xd0] sm:$0xf] %vm3778_vm4, %v4291_v25  ;;  %v4294_v20 = vpack.c.bf16 %v4897_v15, %v4897_v15 }
 0x2d5   :  { %v2966_v24 = vpop.f32.mrf.mxu0 }
 0x2d6   :  { %3834 = vst.msk [vmem:[%s7416_s9 + $0xdc] sm:$0xf] %vm3778_vm4, %v4294_v20  ;;  %v4292_v44 = vpack.c.bf16 %v2966_v24, %v2966_v24 }
 0x2d7   :  { %v4900_v17 = vpop.f32.mrf.mxu0 }
 0x2d8   :  { %3832 = vst.msk [vmem:[%s7416_s9 + $0xd4] sm:$0xf] %vm3778_vm4, %v4292_v44  ;;  %v4297_v10 = vpack.c.bf16 %v4900_v17, %v4900_v17 }
 0x2d9   :  { %v2979_v41 = vpop.f32.mrf.mxu0 }
 0x2da   :  { %3837 = vst.msk [vmem:[%s7416_s9 + $0xe8] sm:$0xf] %vm3778_vm4, %v4297_v10  ;;  %v4295_v16 = vpack.c.bf16 %v2979_v41, %v2979_v41 }
 0x2db   :  { %v4901_v33 = vpop.f32.mrf.mxu0 }
 0x2dc   :  { %3835 = vst.msk [vmem:[%s7416_s9 + $0xe0] sm:$0xf] %vm3778_vm4, %v4295_v16  ;;  %v4298_v4 = vpack.c.bf16 %v4901_v33, %v4901_v33 }
 0x2dd   :  { %v2982_v11 = vpop.f32.mrf.mxu0 }
 0x2de   :  { %3838 = vst.msk [vmem:[%s7416_s9 + $0xec] sm:$0xf] %vm3778_vm4, %v4298_v4  ;;  %v4296_v31 = vpack.c.bf16 %v2982_v11, %v2982_v11 }
 0x2df   :  { %v4904_v29 = vpop.f32.mrf.mxu0 }
 0x2e0   :  { %3836 = vst.msk [vmem:[%s7416_s9 + $0xe4] sm:$0xf] %vm3778_vm4, %v4296_v31  ;;  %v4301_v56 = vpack.c.bf16 %v4904_v29, %v4904_v29 }
 0x2e1   :  { %v2995_v9 = vpop.f32.mrf.mxu0 }
 0x2e2   :  { %3841 = vst.msk [vmem:[%s7416_s9 + $0xf8] sm:$0xf] %vm3778_vm4, %v4301_v56  ;;  %v4299_v23 = vpack.c.bf16 %v2995_v9, %v2995_v9 }
 0x2e3   :  { %v4905_v40 = vpop.f32.mrf.mxu0 }
 0x2e4   :  { %3839 = vst.msk [vmem:[%s7416_s9 + $0xf0] sm:$0xf] %vm3778_vm4, %v4299_v23  ;;  %v4302_v32 = vpack.c.bf16 %v4905_v40, %v4905_v40 }
 0x2e5   :  { %v2998_v53 = vpop.f32.mrf.mxu0 }
 0x2e6   :  { %3842 = vst.msk [vmem:[%s7416_s9 + $0xfc] sm:$0xf] %vm3778_vm4, %v4302_v32  ;;  %v4300_v61 = vpack.c.bf16 %v2998_v53, %v2998_v53 }
 0x2e7   :  { %v4908_v35 = vpop.f32.mrf.mxu0 }
 0x2e8   :  { %3840 = vst.msk [vmem:[%s7416_s9 + $0xf4] sm:$0xf] %vm3778_vm4, %v4300_v61  ;;  %v4305_v38 = vpack.c.bf16 %v4908_v35, %v4908_v35 }
 0x2e9   :  { %v3011_v63 = vpop.f32.mrf.mxu0 }
 0x2ea   :  { %3845 = vst.msk [vmem:[%s7416_s9 + $0x108] sm:$0xf] %vm3778_vm4, %v4305_v38  ;;  %v4303_v45 = vpack.c.bf16 %v3011_v63, %v3011_v63 }
 0x2eb   :  { %v4909_v59 = vpop.f32.mrf.mxu0 }
 0x2ec   :  { %3843 = vst.msk [vmem:[%s7416_s9 + $0x100] sm:$0xf] %vm3778_vm4, %v4303_v45  ;;  %v4306_v51 = vpack.c.bf16 %v4909_v59, %v4909_v59 }
 0x2ed   :  { %v3014_v37 = vpop.f32.mrf.mxu0 }
 0x2ee   :  { %3846 = vst.msk [vmem:[%s7416_s9 + $0x10c] sm:$0xf] %vm3778_vm4, %v4306_v51  ;;  %v4304_v48 = vpack.c.bf16 %v3014_v37, %v3014_v37 }
 0x2ef   :  { %v4912_v49 = vpop.f32.mrf.mxu0 }
 0x2f0   :  { %3844 = vst.msk [vmem:[%s7416_s9 + $0x104] sm:$0xf] %vm3778_vm4, %v4304_v48  ;;  %v4309_v36 = vpack.c.bf16 %v4912_v49, %v4912_v49 }
 0x2f1   :  { %v3027_v13 = vpop.f32.mrf.mxu0 }
 0x2f2   :  { %3849 = vst.msk [vmem:[%s7416_s9 + $0x118] sm:$0xf] %vm3778_vm4, %v4309_v36  ;;  %v4307_v18 = vpack.c.bf16 %v3027_v13, %v3027_v13 }
 0x2f3   :  { %v4913_v62 = vpop.f32.mrf.mxu0 }
 0x2f4   :  { %3847 = vst.msk [vmem:[%s7416_s9 + $0x110] sm:$0xf] %vm3778_vm4, %v4307_v18  ;;  %v4310_v46 = vpack.c.bf16 %v4913_v62, %v4913_v62 }
 0x2f5   :  { %v3030_v22 = vpop.f32.mrf.mxu0 }
 0x2f6   :  { %3850 = vst.msk [vmem:[%s7416_s9 + $0x11c] sm:$0xf] %vm3778_vm4, %v4310_v46  ;;  %v4308_v43 = vpack.c.bf16 %v3030_v22, %v3030_v22 }
 0x2f7   :  { %v4916_v60 = vpop.f32.mrf.mxu0 }
 0x2f8   :  { %3848 = vst.msk [vmem:[%s7416_s9 + $0x114] sm:$0xf] %vm3778_vm4, %v4308_v43  ;;  %v4313_v47 = vpack.c.bf16 %v4916_v60, %v4916_v60 }
 0x2f9   :  { %v3043_v5 = vpop.f32.mrf.mxu0 }
 0x2fa   :  { %3853 = vst.msk [vmem:[%s7416_s9 + $0x128] sm:$0xf] %vm3778_vm4, %v4313_v47  ;;  %v4311_v1 = vpack.c.bf16 %v3043_v5, %v3043_v5 }
 0x2fb   :  { %v4917_v14 = vpop.f32.mrf.mxu0 }
 0x2fc   :  { %3851 = vst.msk [vmem:[%s7416_s9 + $0x120] sm:$0xf] %vm3778_vm4, %v4311_v1  ;;  %v4314_v57 = vpack.c.bf16 %v4917_v14, %v4917_v14 }
 0x2fd   :  { %v3046_v30 = vpop.f32.mrf.mxu0 }
 0x2fe   :  { %3854 = vst.msk [vmem:[%s7416_s9 + $0x12c] sm:$0xf] %vm3778_vm4, %v4314_v57  ;;  %v4312_v2 = vpack.c.bf16 %v3046_v30, %v3046_v30 }
 0x2ff   :  { %v4920_v28 = vpop.f32.mrf.mxu0 }
 0x300   :  { %3852 = vst.msk [vmem:[%s7416_s9 + $0x124] sm:$0xf] %vm3778_vm4, %v4312_v2  ;;  %v4317_v3 = vpack.c.bf16 %v4920_v28, %v4920_v28 }
 0x301   :  { %v3059_v52 = vpop.f32.mrf.mxu0 }
 0x302   :  { %3857 = vst.msk [vmem:[%s7416_s9 + $0x138] sm:$0xf] %vm3778_vm4, %v4317_v3  ;;  %v4315_v8 = vpack.c.bf16 %v3059_v52, %v3059_v52 }
 0x303   :  { %v4921_v19 = vpop.f32.mrf.mxu0 }
 0x304   :  { %3855 = vst.msk [vmem:[%s7416_s9 + $0x130] sm:$0xf] %vm3778_vm4, %v4315_v8  ;;  %v4318_v55 = vpack.c.bf16 %v4921_v19, %v4921_v19 }
 0x305   :  { %v3062_v58 = vpop.f32.mrf.mxu0 }
 0x306   :  { %3858 = vst.msk [vmem:[%s7416_s9 + $0x13c] sm:$0xf] %vm3778_vm4, %v4318_v55  ;;  %v4316_v0 = vpack.c.bf16 %v3062_v58, %v3062_v58 }
 0x307   :  { %v4924_v34 = vpop.f32.mrf.mxu0 }
 0x308   :  { %3856 = vst.msk [vmem:[%s7416_s9 + $0x134] sm:$0xf] %vm3778_vm4, %v4316_v0  ;;  %v4321_v6 = vpack.c.bf16 %v4924_v34, %v4924_v34 }
 0x309   :  { %v3075_v12 = vpop.f32.mrf.mxu0 }
 0x30a   :  { %3861 = vst.msk [vmem:[%s7416_s9 + $0x148] sm:$0xf] %vm3778_vm4, %v4321_v6  ;;  %v4319_v54 = vpack.c.bf16 %v3075_v12, %v3075_v12 }
 0x30b   :  { %v4925_v42 = vpop.f32.mrf.mxu0 }
 0x30c   :  { %3859 = vst.msk [vmem:[%s7416_s9 + $0x140] sm:$0xf] %vm3778_vm4, %v4319_v54  ;;  %v4322_v27 = vpack.c.bf16 %v4925_v42, %v4925_v42 }
 0x30d   :  { %v3078_v50 = vpop.f32.mrf.mxu0 }
 0x30e   :  { %3862 = vst.msk [vmem:[%s7416_s9 + $0x14c] sm:$0xf] %vm3778_vm4, %v4322_v27  ;;  %v4320_v21 = vpack.c.bf16 %v3078_v50, %v3078_v50 }
 0x30f   :  { %v4928_v7 = vpop.f32.mrf.mxu0 }
 0x310   :  { %3860 = vst.msk [vmem:[%s7416_s9 + $0x144] sm:$0xf] %vm3778_vm4, %v4320_v21  ;;  %v4325_v26 = vpack.c.bf16 %v4928_v7, %v4928_v7 }
 0x311   :  { %v3091_v39 = vpop.f32.mrf.mxu0 }
 0x312   :  { %3865 = vst.msk [vmem:[%s7416_s9 + $0x158] sm:$0xf] %vm3778_vm4, %v4325_v26  ;;  %v4323_v25 = vpack.c.bf16 %v3091_v39, %v3091_v39 }
 0x313   :  { %v4929_v15 = vpop.f32.mrf.mxu0 }
 0x314   :  { %3863 = vst.msk [vmem:[%s7416_s9 + $0x150] sm:$0xf] %vm3778_vm4, %v4323_v25  ;;  %v4326_v20 = vpack.c.bf16 %v4929_v15, %v4929_v15 }
 0x315   :  { %v3094_v24 = vpop.f32.mrf.mxu0 }
 0x316   :  { %3866 = vst.msk [vmem:[%s7416_s9 + $0x15c] sm:$0xf] %vm3778_vm4, %v4326_v20  ;;  %v4324_v44 = vpack.c.bf16 %v3094_v24, %v3094_v24 }
 0x317   :  { %v4932_v17 = vpop.f32.mrf.mxu0 }
 0x318   :  { %3864 = vst.msk [vmem:[%s7416_s9 + $0x154] sm:$0xf] %vm3778_vm4, %v4324_v44  ;;  %v4329_v10 = vpack.c.bf16 %v4932_v17, %v4932_v17 }
 0x319   :  { %v3107_v41 = vpop.f32.mrf.mxu0 }
 0x31a   :  { %3869 = vst.msk [vmem:[%s7416_s9 + $0x168] sm:$0xf] %vm3778_vm4, %v4329_v10  ;;  %v4327_v16 = vpack.c.bf16 %v3107_v41, %v3107_v41 }
 0x31b   :  { %v4933_v33 = vpop.f32.mrf.mxu0 }
 0x31c   :  { %3867 = vst.msk [vmem:[%s7416_s9 + $0x160] sm:$0xf] %vm3778_vm4, %v4327_v16  ;;  %v4330_v4 = vpack.c.bf16 %v4933_v33, %v4933_v33 }
 0x31d   :  { %v3110_v11 = vpop.f32.mrf.mxu0 }
 0x31e   :  { %3870 = vst.msk [vmem:[%s7416_s9 + $0x16c] sm:$0xf] %vm3778_vm4, %v4330_v4  ;;  %v4328_v31 = vpack.c.bf16 %v3110_v11, %v3110_v11 }
 0x31f   :  { %v4936_v29 = vpop.f32.mrf.mxu0 }
 0x320   :  { %3868 = vst.msk [vmem:[%s7416_s9 + $0x164] sm:$0xf] %vm3778_vm4, %v4328_v31  ;;  %v4333_v56 = vpack.c.bf16 %v4936_v29, %v4936_v29 }
 0x321   :  { %v3123_v9 = vpop.f32.mrf.mxu0 }
 0x322   :  { %3873 = vst.msk [vmem:[%s7416_s9 + $0x178] sm:$0xf] %vm3778_vm4, %v4333_v56  ;;  %v4331_v23 = vpack.c.bf16 %v3123_v9, %v3123_v9 }
 0x323   :  { %v4937_v40 = vpop.f32.mrf.mxu0 }
 0x324   :  { %3871 = vst.msk [vmem:[%s7416_s9 + $0x170] sm:$0xf] %vm3778_vm4, %v4331_v23  ;;  %v4334_v32 = vpack.c.bf16 %v4937_v40, %v4937_v40 }
 0x325   :  { %v3126_v53 = vpop.f32.mrf.mxu0 }
 0x326   :  { %3874 = vst.msk [vmem:[%s7416_s9 + $0x17c] sm:$0xf] %vm3778_vm4, %v4334_v32  ;;  %v4332_v61 = vpack.c.bf16 %v3126_v53, %v3126_v53 }
 0x327   :  { %v4940_v35 = vpop.f32.mrf.mxu0 }
 0x328   :  { %3872 = vst.msk [vmem:[%s7416_s9 + $0x174] sm:$0xf] %vm3778_vm4, %v4332_v61  ;;  %v4337_v38 = vpack.c.bf16 %v4940_v35, %v4940_v35 }
 0x329   :  { %v3139_v63 = vpop.f32.mrf.mxu0 }
 0x32a   :  { %3877 = vst.msk [vmem:[%s7416_s9 + $0x188] sm:$0xf] %vm3778_vm4, %v4337_v38  ;;  %v4335_v45 = vpack.c.bf16 %v3139_v63, %v3139_v63 }
 0x32b   :  { %v4941_v59 = vpop.f32.mrf.mxu0 }
 0x32c   :  { %3875 = vst.msk [vmem:[%s7416_s9 + $0x180] sm:$0xf] %vm3778_vm4, %v4335_v45  ;;  %v4338_v51 = vpack.c.bf16 %v4941_v59, %v4941_v59 }
 0x32d   :  { %v3142_v37 = vpop.f32.mrf.mxu0 }
 0x32e   :  { %3878 = vst.msk [vmem:[%s7416_s9 + $0x18c] sm:$0xf] %vm3778_vm4, %v4338_v51  ;;  %v4336_v48 = vpack.c.bf16 %v3142_v37, %v3142_v37 }
 0x32f   :  { %v4944_v49 = vpop.f32.mrf.mxu0 }
 0x330   :  { %3876 = vst.msk [vmem:[%s7416_s9 + $0x184] sm:$0xf] %vm3778_vm4, %v4336_v48  ;;  %v4341_v36 = vpack.c.bf16 %v4944_v49, %v4944_v49 }
 0x331   :  { %v3155_v13 = vpop.f32.mrf.mxu0 }
 0x332   :  { %3881 = vst.msk [vmem:[%s7416_s9 + $0x198] sm:$0xf] %vm3778_vm4, %v4341_v36  ;;  %v4339_v18 = vpack.c.bf16 %v3155_v13, %v3155_v13 }
 0x333   :  { %v4945_v62 = vpop.f32.mrf.mxu0 }
 0x334   :  { %3879 = vst.msk [vmem:[%s7416_s9 + $0x190] sm:$0xf] %vm3778_vm4, %v4339_v18  ;;  %v4342_v46 = vpack.c.bf16 %v4945_v62, %v4945_v62 }
 0x335   :  { %v3158_v22 = vpop.f32.mrf.mxu0 }
 0x336   :  { %3882 = vst.msk [vmem:[%s7416_s9 + $0x19c] sm:$0xf] %vm3778_vm4, %v4342_v46  ;;  %v4340_v43 = vpack.c.bf16 %v3158_v22, %v3158_v22 }
 0x337   :  { %v4948_v60 = vpop.f32.mrf.mxu0 }
 0x338   :  { %3880 = vst.msk [vmem:[%s7416_s9 + $0x194] sm:$0xf] %vm3778_vm4, %v4340_v43  ;;  %v4345_v47 = vpack.c.bf16 %v4948_v60, %v4948_v60 }
 0x339   :  { %v3171_v5 = vpop.f32.mrf.mxu0 }
 0x33a   :  { %3885 = vst.msk [vmem:[%s7416_s9 + $0x1a8] sm:$0xf] %vm3778_vm4, %v4345_v47  ;;  %v4343_v1 = vpack.c.bf16 %v3171_v5, %v3171_v5 }
 0x33b   :  { %v4949_v14 = vpop.f32.mrf.mxu0 }
 0x33c   :  { %3883 = vst.msk [vmem:[%s7416_s9 + $0x1a0] sm:$0xf] %vm3778_vm4, %v4343_v1  ;;  %v4346_v57 = vpack.c.bf16 %v4949_v14, %v4949_v14 }
 0x33d   :  { %v3174_v30 = vpop.f32.mrf.mxu0 }
 0x33e   :  { %3886 = vst.msk [vmem:[%s7416_s9 + $0x1ac] sm:$0xf] %vm3778_vm4, %v4346_v57  ;;  %v4344_v2 = vpack.c.bf16 %v3174_v30, %v3174_v30 }
 0x33f   :  { %v4952_v28 = vpop.f32.mrf.mxu0 }
 0x340   :  { %3884 = vst.msk [vmem:[%s7416_s9 + $0x1a4] sm:$0xf] %vm3778_vm4, %v4344_v2  ;;  %v4349_v3 = vpack.c.bf16 %v4952_v28, %v4952_v28 }
 0x341   :  { %v3187_v52 = vpop.f32.mrf.mxu0 }
 0x342   :  { %3889 = vst.msk [vmem:[%s7416_s9 + $0x1b8] sm:$0xf] %vm3778_vm4, %v4349_v3  ;;  %v4347_v8 = vpack.c.bf16 %v3187_v52, %v3187_v52 }
 0x343   :  { %v4953_v19 = vpop.f32.mrf.mxu0 }
 0x344   :  { %3887 = vst.msk [vmem:[%s7416_s9 + $0x1b0] sm:$0xf] %vm3778_vm4, %v4347_v8  ;;  %v4350_v55 = vpack.c.bf16 %v4953_v19, %v4953_v19 }
 0x345   :  { %v3190_v58 = vpop.f32.mrf.mxu0 }
 0x346   :  { %3890 = vst.msk [vmem:[%s7416_s9 + $0x1bc] sm:$0xf] %vm3778_vm4, %v4350_v55  ;;  %v4348_v0 = vpack.c.bf16 %v3190_v58, %v3190_v58 }
 0x347   :  { %v4956_v34 = vpop.f32.mrf.mxu0 }
 0x348   :  { %3888 = vst.msk [vmem:[%s7416_s9 + $0x1b4] sm:$0xf] %vm3778_vm4, %v4348_v0  ;;  %v4353_v6 = vpack.c.bf16 %v4956_v34, %v4956_v34 }
 0x349   :  { %v3203_v12 = vpop.f32.mrf.mxu0 }
 0x34a   :  { %3893 = vst.msk [vmem:[%s7416_s9 + $0x1c8] sm:$0xf] %vm3778_vm4, %v4353_v6  ;;  %v4351_v54 = vpack.c.bf16 %v3203_v12, %v3203_v12 }
 0x34b   :  { %v4957_v42 = vpop.f32.mrf.mxu0 }
 0x34c   :  { %3891 = vst.msk [vmem:[%s7416_s9 + $0x1c0] sm:$0xf] %vm3778_vm4, %v4351_v54  ;;  %v4354_v27 = vpack.c.bf16 %v4957_v42, %v4957_v42 }
 0x34d   :  { %v3206_v50 = vpop.f32.mrf.mxu0 }
 0x34e   :  { %3894 = vst.msk [vmem:[%s7416_s9 + $0x1cc] sm:$0xf] %vm3778_vm4, %v4354_v27  ;;  %v4352_v21 = vpack.c.bf16 %v3206_v50, %v3206_v50 }
 0x34f   :  { %v4960_v7 = vpop.f32.mrf.mxu0 }
 0x350   :  { %3892 = vst.msk [vmem:[%s7416_s9 + $0x1c4] sm:$0xf] %vm3778_vm4, %v4352_v21  ;;  %v4357_v26 = vpack.c.bf16 %v4960_v7, %v4960_v7 }
 0x351   :  { %v3219_v39 = vpop.f32.mrf.mxu0 }
 0x352   :  { %3897 = vst.msk [vmem:[%s7416_s9 + $0x1d8] sm:$0xf] %vm3778_vm4, %v4357_v26  ;;  %v4355_v25 = vpack.c.bf16 %v3219_v39, %v3219_v39 }
 0x353   :  { %v4961_v15 = vpop.f32.mrf.mxu0 }
 0x354   :  { %3895 = vst.msk [vmem:[%s7416_s9 + $0x1d0] sm:$0xf] %vm3778_vm4, %v4355_v25  ;;  %v4358_v20 = vpack.c.bf16 %v4961_v15, %v4961_v15 }
 0x355   :  { %v3222_v24 = vpop.f32.mrf.mxu0 }
 0x356   :  { %3898 = vst.msk [vmem:[%s7416_s9 + $0x1dc] sm:$0xf] %vm3778_vm4, %v4358_v20  ;;  %v4356_v44 = vpack.c.bf16 %v3222_v24, %v3222_v24 }
 0x357   :  { %v4964_v17 = vpop.f32.mrf.mxu0 }
 0x358   :  { %3896 = vst.msk [vmem:[%s7416_s9 + $0x1d4] sm:$0xf] %vm3778_vm4, %v4356_v44  ;;  %v4361_v10 = vpack.c.bf16 %v4964_v17, %v4964_v17 }
 0x359   :  { %v3235_v41 = vpop.f32.mrf.mxu0 }
 0x35a   :  { %3901 = vst.msk [vmem:[%s7416_s9 + $0x1e8] sm:$0xf] %vm3778_vm4, %v4361_v10  ;;  %v4359_v16 = vpack.c.bf16 %v3235_v41, %v3235_v41 }
 0x35b   :  { %v4965_v33 = vpop.f32.mrf.mxu0 }
 0x35c   :  { %3899 = vst.msk [vmem:[%s7416_s9 + $0x1e0] sm:$0xf] %vm3778_vm4, %v4359_v16  ;;  %v4362_v4 = vpack.c.bf16 %v4965_v33, %v4965_v33 }
 0x35d   :  { %v3238_v11 = vpop.f32.mrf.mxu0 }
 0x35e   :  { %3902 = vst.msk [vmem:[%s7416_s9 + $0x1ec] sm:$0xf] %vm3778_vm4, %v4362_v4  ;;  %v4360_v31 = vpack.c.bf16 %v3238_v11, %v3238_v11 }
 0x35f   :  { %v4968_v29 = vpop.f32.mrf.mxu0 }
 0x360   :  { %3900 = vst.msk [vmem:[%s7416_s9 + $0x1e4] sm:$0xf] %vm3778_vm4, %v4360_v31  ;;  %v4365_v56 = vpack.c.bf16 %v4968_v29, %v4968_v29 }
 0x361   :  { %v3251_v9 = vpop.f32.mrf.mxu0 }
 0x362   :  { %3905 = vst.msk [vmem:[%s7416_s9 + $0x1f8] sm:$0xf] %vm3778_vm4, %v4365_v56  ;;  %v4363_v23 = vpack.c.bf16 %v3251_v9, %v3251_v9 }
 0x363   :  { %v4969_v40 = vpop.f32.mrf.mxu0 }
 0x364   :  { %3903 = vst.msk [vmem:[%s7416_s9 + $0x1f0] sm:$0xf] %vm3778_vm4, %v4363_v23  ;;  %v4366_v32 = vpack.c.bf16 %v4969_v40, %v4969_v40 }
 0x365   :  { %v3254_v53 = vpop.f32.mrf.mxu0 }
 0x366   :  { %3906 = vst.msk [vmem:[%s7416_s9 + $0x1fc] sm:$0xf] %vm3778_vm4, %v4366_v32  ;;  %v4364_v61 = vpack.c.bf16 %v3254_v53, %v3254_v53 }
 0x368   :  { %3904 = vst.msk [vmem:[%s7416_s9 + $0x1f4] sm:$0xf] %vm3778_vm4, %v4364_v61 }

</bundles_post_ra>
